<compile_context>
chip_gen: v7x
topology: tpu7x:2x2x1
jax: 0.10.0
libtpu: 0.0.40
codegen_flags: <defaults>
</compile_context>

<pallas_src>
import functools

import jax
import jax.numpy as jnp
from jax.experimental import pallas as pl
from jax.experimental.pallas import tpu as pltpu


def _pendulum_kernel(x_ref, vecs_ref, mats_ref, out_ref):
    B, T = x_ref.shape
    T_total = out_ref.shape[1]
    FUT = T_total - T
    H = mats_ref.shape[2]

    x_all = x_ref[...]                                   # (B, T)
    vecs = vecs_ref[...]                                 # (16, H)
    wih1 = [vecs[k:k + 1, :] for k in range(4)]          # 4 x (1,H), gate order [i,f,g,o]
    b1 = [vecs[4 + k:5 + k, :] for k in range(4)]        # fused b_ih1+b_hh1 per gate
    b2 = [vecs[8 + k:9 + k, :] for k in range(4)]        # fused b_ih2+b_hh2 per gate
    ab1 = vecs[12:13, :]
    ab2 = vecs[13:14, :]
    lw = vecs[14:15, :]                                  # (1, H)
    lb = vecs[15:16, 0:1]                                # (1, 1)

    whh1 = [mats_ref[k] for k in range(4)]               # 4 x (H,H) layer-1 recurrent
    w2x = [mats_ref[4 + k] for k in range(4)]            # 4 x (H,H) layer-2 input (h1n)
    w2h = [mats_ref[8 + k] for k in range(4)]            # 4 x (H,H) layer-2 recurrent (h2)
    aw1 = mats_ref[12]                                   # (H,H)
    aw2 = mats_ref[13]                                   # (H,H)

    def mm(a, b):
        return jnp.dot(a, b, preferred_element_type=jnp.float32)

    def cell_step(inp1, h1, c1, h2, c2):
        """One step of both LSTM cells. inp1: 4 x (B,H) precomputed x*W_ih1 + b."""
        # Layer-2 recurrent half depends only on last step's h2 -> off h1n's critical path.
        pre2 = [mm(h2, w2h[k]) + b2[k] for k in range(4)]
        # Layer 1: per-gate matmuls, every gate lands at lanes 0..H-1 (no lane shifts).
        g1 = [inp1[k] + mm(h1, whh1[k]) for k in range(4)]
        i1 = jax.nn.sigmoid(g1[0])
        f1 = jax.nn.sigmoid(g1[1])
        gg1 = jnp.tanh(g1[2])
        o1 = jax.nn.sigmoid(g1[3])
        c1n = f1 * c1 + i1 * gg1
        h1n = o1 * jnp.tanh(c1n)
        # Layer 2.
        g2 = [pre2[k] + mm(h1n, w2x[k]) for k in range(4)]
        i2 = jax.nn.sigmoid(g2[0])
        f2 = jax.nn.sigmoid(g2[1])
        gg2 = jnp.tanh(g2[2])
        o2 = jax.nn.sigmoid(g2[3])
        c2n = f2 * c2 + i2 * gg2
        h2n = o2 * jnp.tanh(c2n)
        # dropout(p=0.0) is the identity
        return h1n, c1n, h2n, c2n

    def attn_project(h):
        """softmax(linear2(tanh(linear1(h)))) * h -> Linear(H,1); h: (N,H) -> (N,1)."""
        a = jnp.tanh(mm(h, aw1) + ab1)
        a = mm(a, aw2) + ab2
        a = a - jnp.max(a, axis=-1, keepdims=True)
        e = jnp.exp(a)
        num = jnp.sum(e * h * lw, axis=-1, keepdims=True)   # lw folded into numerator
        den = jnp.sum(e, axis=-1, keepdims=True)
        return num * pl.reciprocal(den, approx=False) + lb

    zeros = jnp.zeros((B, H), jnp.float32)
    h1, c1, h2, c2 = zeros, zeros, zeros, zeros

    # ---- Phase 1: observed inputs.  Only the LSTM state is carried; attention is
    # hoisted out.  Layer-1 input contributions precomputed off the serial chain.
    xw = [[x_all[:, t:t + 1] * wih1[k] + b1[k] for k in range(4)] for t in range(T)]
    h2_hist = []
    for t in range(T):
        h1, c1, h2, c2 = cell_step(xw[t], h1, c1, h2, c2)
        h2_hist.append(h2)

    # One batched attention/softmax/projection pass over all observed steps.
    h2_stack = jnp.concatenate(h2_hist, axis=0)           # (T*B, H), sublane stack
    obs = attn_project(h2_stack)                          # (T*B, 1), row index = t*B + b
    cols = [obs[t * B:(t + 1) * B, :] for t in range(T)]  # T x (B, 1)

    # ---- Phase 2: future rollout feeding back the carried prediction; attention
    # must stay per-step here because `out` re-enters layer 1.
    out = cols[T - 1]
    for _ in range(FUT):
        inp1 = [out * wih1[k] + b1[k] for k in range(4)]
        h1, c1, h2, c2 = cell_step(inp1, h1, c1, h2, c2)
        out = attn_project(h2)
        cols.append(out)

    # Single lane-dense store of the whole (B, T_total) output (one-time assembly).
    out_ref[...] = jnp.concatenate(cols, axis=1)


def pack_params(params):
    """One-time weight plumbing: per-gate split, transposes, bias fusion, packing.
    Call once outside the per-call / jitted path."""
    H = params["w_hh1"].shape[1]

    def per_gate(w):  # (4H, ...) -> 4 x (H, ...), PyTorch gate order [i, f, g, o]
        return [w[k * H:(k + 1) * H] for k in range(4)]

    wih1 = [w[:, 0] for w in per_gate(params["w_ih1"])]                # 4 x (H,)
    b1 = per_gate(params["b_ih1"] + params["b_hh1"])                   # 4 x (H,)
    b2 = per_gate(params["b_ih2"] + params["b_hh2"])                   # 4 x (H,)
    lb = jnp.zeros((H,), jnp.float32).at[0].set(params["lb"][0])
    vecs = jnp.stack(
        wih1 + b1 + b2 +
        [params["ab1"], params["ab2"], params["lw"].reshape(H), lb],
        axis=0).astype(jnp.float32)                                    # (16, H)

    whh1 = [w.T for w in per_gate(params["w_hh1"])]                    # 4 x (H, H)
    w2x = [w.T for w in per_gate(params["w_ih2"])]
    w2h = [w.T for w in per_gate(params["w_hh2"])]
    mats = jnp.stack(whh1 + w2x + w2h + [params["aw1"].T, params["aw2"].T],
                     axis=0).astype(jnp.float32)                       # (14, H, H)
    return vecs, mats


def pendulum_rnn_sa(x, vecs, mats, future=0):
    """x: (B, T) float32; (vecs, mats) from pack_params. Returns (B, T+future)."""
    B, T = x.shape
    T_total = T + future
    return pl.pallas_call(
        _pendulum_kernel,
        out_shape=jax.ShapeDtypeStruct((B, T_total), jnp.float32),
        in_specs=[pl.BlockSpec(memory_space=pltpu.MemorySpace.VMEM)] * 3,
        out_specs=pl.BlockSpec(memory_space=pltpu.MemorySpace.VMEM),
        # Scaling guard: weights grow ~14*H^2*4B; keep an explicit VMEM budget so a
        # larger H fails loudly / can be re-tiled instead of silently spilling.
        compiler_params=pltpu.CompilerParams(vmem_limit_bytes=32 * 1024 * 1024),
    )(x, vecs, mats)


def init_params(key, hidden_dim):
    H = hidden_dim
    k_lstm = 1.0 / jnp.sqrt(H)
    keys = jax.random.split(key, 14)

    def u(k, shape, bound):
        return jax.random.uniform(k, shape, jnp.float32, -bound, bound)

    return {
        # LSTMCell(1, H)
        "w_ih1": u(keys[0], (4 * H, 1), k_lstm),
        "w_hh1": u(keys[1], (4 * H, H), k_lstm),
        "b_ih1": u(keys[2], (4 * H,), k_lstm),
        "b_hh1": u(keys[3], (4 * H,), k_lstm),
        # LSTMCell(H, H)
        "w_ih2": u(keys[4], (4 * H, H), k_lstm),
        "w_hh2": u(keys[5], (4 * H, H), k_lstm),
        "b_ih2": u(keys[6], (4 * H,), k_lstm),
        "b_hh2": u(keys[7], (4 * H,), k_lstm),
        # SelfAttention: Linear(H, H) x2
        "aw1": u(keys[8], (H, H), 1.0 / jnp.sqrt(H)),
        "ab1": u(keys[9], (H,), 1.0 / jnp.sqrt(H)),
        "aw2": u(keys[10], (H, H), 1.0 / jnp.sqrt(H)),
        "ab2": u(keys[11], (H,), 1.0 / jnp.sqrt(H)),
        # Linear(H, 1)
        "lw": u(keys[12], (1, H), 1.0 / jnp.sqrt(H)),
        "lb": u(keys[13], (1,), 1.0 / jnp.sqrt(H)),
    }


def reference_forward(x, params, future=0):
    """Pure-JAX mirror of the PyTorch forward (for correctness check)."""
    B, T = x.shape
    H = params["w_hh1"].shape[1]
    h1 = jnp.zeros((B, H)); c1 = jnp.zeros((B, H))
    h2 = jnp.zeros((B, H)); c2 = jnp.zeros((B, H))

    def lstm(xv, h, c, w_ih, w_hh, b_ih, b_hh):
        g = xv @ w_ih.T + b_ih + h @ w_hh.T + b_hh
        i, f, gg, o = jnp.split(g, 4, axis=1)
        c_new = jax.nn.sigmoid(f) * c + jax.nn.sigmoid(i) * jnp.tanh(gg)
        h_new = jax.nn.sigmoid(o) * jnp.tanh(c_new)
        return h_new, c_new

    def step(xv, h1, c1, h2, c2):
        h1, c1 = lstm(xv, h1, c1, params["w_ih1"], params["w_hh1"],
                      params["b_ih1"], params["b_hh1"])
        h2, c2 = lstm(h1, h2, c2, params["w_ih2"], params["w_hh2"],
                      params["b_ih2"], params["b_hh2"])
        a = jnp.tanh(h2 @ params["aw1"].T + params["ab1"])
        a = a @ params["aw2"].T + params["ab2"]
        sm = jax.nn.softmax(a, axis=-1)
        context = sm * h2
        out = context @ params["lw"].T + params["lb"]
        return out, h1, c1, h2, c2

    outs = []
    out = None
    for t in range(T):
        out, h1, c1, h2, c2 = step(x[:, t:t + 1], h1, c1, h2, c2)
        outs.append(out)
    for _ in range(future):
        out, h1, c1, h2, c2 = step(out, h1, c1, h2, c2)
        outs.append(out)
    return jnp.concatenate(outs, axis=1)


if __name__ == "__main__":
    B, T, H, FUTURE = 2, 8, 32, 4

    key = jax.random.PRNGKey(0)
    k_x, k_p = jax.random.split(key)
    x = jax.random.normal(k_x, (B, T), jnp.float32)
    params = init_params(k_p, H)

    vecs, mats = pack_params(params)   # one-time packing, outside the hot path
    run = jax.jit(functools.partial(pendulum_rnn_sa, future=FUTURE))
    y = jax.block_until_ready(run(x, vecs, mats))

    y_ref = reference_forward(x, params, future=FUTURE)
    assert y.shape == (B, T + FUTURE)
    err = jnp.max(jnp.abs(y - y_ref))
    assert jnp.allclose(y, y_ref, atol=1e-4, rtol=1e-4), f"mismatch: max abs err {err}"

    print("KERNEL_OK")
</pallas_src>

<mosaic_0001>
module attributes {stable_mosaic.version = 11 : i64} {
  func.func @_pendulum_kernel(%arg0: memref<2x8xf32, #tpu.memory_space<vmem>>, %arg1: memref<16x32xf32, #tpu.memory_space<vmem>>, %arg2: memref<14x32x32xf32, #tpu.memory_space<vmem>>, %arg3: memref<2x12xf32, #tpu.memory_space<vmem>>) attributes {dimension_semantics = [], scalar_prefetch = 0 : i64, scratch_operands = 0 : i64, tpu.core_type = #tpu.core_type<tc>} {
    %c0 = arith.constant 0 : index
    %c0_0 = arith.constant 0 : index
    %0 = vector.load %arg0[%c0, %c0_0] : memref<2x8xf32, #tpu.memory_space<vmem>>, vector<2x8xf32>
    %c0_1 = arith.constant 0 : index
    %c0_2 = arith.constant 0 : index
    %1 = vector.load %arg1[%c0_1, %c0_2] : memref<16x32xf32, #tpu.memory_space<vmem>>, vector<16x32xf32>
    %2 = vector.extract_strided_slice %1 {offsets = [0, 0], sizes = [1, 32], strides = [1, 1]} : vector<16x32xf32> to vector<1x32xf32>
    %3 = vector.extract_strided_slice %1 {offsets = [1, 0], sizes = [1, 32], strides = [1, 1]} : vector<16x32xf32> to vector<1x32xf32>
    %4 = vector.extract_strided_slice %1 {offsets = [2, 0], sizes = [1, 32], strides = [1, 1]} : vector<16x32xf32> to vector<1x32xf32>
    %5 = vector.extract_strided_slice %1 {offsets = [3, 0], sizes = [1, 32], strides = [1, 1]} : vector<16x32xf32> to vector<1x32xf32>
    %6 = vector.extract_strided_slice %1 {offsets = [4, 0], sizes = [1, 32], strides = [1, 1]} : vector<16x32xf32> to vector<1x32xf32>
    %7 = vector.extract_strided_slice %1 {offsets = [5, 0], sizes = [1, 32], strides = [1, 1]} : vector<16x32xf32> to vector<1x32xf32>
    %8 = vector.extract_strided_slice %1 {offsets = [6, 0], sizes = [1, 32], strides = [1, 1]} : vector<16x32xf32> to vector<1x32xf32>
    %9 = vector.extract_strided_slice %1 {offsets = [7, 0], sizes = [1, 32], strides = [1, 1]} : vector<16x32xf32> to vector<1x32xf32>
    %10 = vector.extract_strided_slice %1 {offsets = [8, 0], sizes = [1, 32], strides = [1, 1]} : vector<16x32xf32> to vector<1x32xf32>
    %11 = vector.extract_strided_slice %1 {offsets = [9, 0], sizes = [1, 32], strides = [1, 1]} : vector<16x32xf32> to vector<1x32xf32>
    %12 = vector.extract_strided_slice %1 {offsets = [10, 0], sizes = [1, 32], strides = [1, 1]} : vector<16x32xf32> to vector<1x32xf32>
    %13 = vector.extract_strided_slice %1 {offsets = [11, 0], sizes = [1, 32], strides = [1, 1]} : vector<16x32xf32> to vector<1x32xf32>
    %14 = vector.extract_strided_slice %1 {offsets = [12, 0], sizes = [1, 32], strides = [1, 1]} : vector<16x32xf32> to vector<1x32xf32>
    %15 = vector.extract_strided_slice %1 {offsets = [13, 0], sizes = [1, 32], strides = [1, 1]} : vector<16x32xf32> to vector<1x32xf32>
    %16 = vector.extract_strided_slice %1 {offsets = [14, 0], sizes = [1, 32], strides = [1, 1]} : vector<16x32xf32> to vector<1x32xf32>
    %17 = vector.extract_strided_slice %1 {offsets = [15, 0], sizes = [1, 1], strides = [1, 1]} : vector<16x32xf32> to vector<1x1xf32>
    %c0_3 = arith.constant 0 : index
    %c0_4 = arith.constant 0 : index
    %c0_5 = arith.constant 0 : index
    %18 = vector.load %arg2[%c0_3, %c0_4, %c0_5] : memref<14x32x32xf32, #tpu.memory_space<vmem>>, vector<1x32x32xf32>
    %19 = vector.shape_cast %18 : vector<1x32x32xf32> to vector<32x32xf32>
    %c1 = arith.constant 1 : index
    %c0_6 = arith.constant 0 : index
    %c0_7 = arith.constant 0 : index
    %20 = vector.load %arg2[%c1, %c0_6, %c0_7] : memref<14x32x32xf32, #tpu.memory_space<vmem>>, vector<1x32x32xf32>
    %21 = vector.shape_cast %20 : vector<1x32x32xf32> to vector<32x32xf32>
    %c2 = arith.constant 2 : index
    %c0_8 = arith.constant 0 : index
    %c0_9 = arith.constant 0 : index
    %22 = vector.load %arg2[%c2, %c0_8, %c0_9] : memref<14x32x32xf32, #tpu.memory_space<vmem>>, vector<1x32x32xf32>
    %23 = vector.shape_cast %22 : vector<1x32x32xf32> to vector<32x32xf32>
    %c3 = arith.constant 3 : index
    %c0_10 = arith.constant 0 : index
    %c0_11 = arith.constant 0 : index
    %24 = vector.load %arg2[%c3, %c0_10, %c0_11] : memref<14x32x32xf32, #tpu.memory_space<vmem>>, vector<1x32x32xf32>
    %25 = vector.shape_cast %24 : vector<1x32x32xf32> to vector<32x32xf32>
    %c4 = arith.constant 4 : index
    %c0_12 = arith.constant 0 : index
    %c0_13 = arith.constant 0 : index
    %26 = vector.load %arg2[%c4, %c0_12, %c0_13] : memref<14x32x32xf32, #tpu.memory_space<vmem>>, vector<1x32x32xf32>
    %27 = vector.shape_cast %26 : vector<1x32x32xf32> to vector<32x32xf32>
    %c5 = arith.constant 5 : index
    %c0_14 = arith.constant 0 : index
    %c0_15 = arith.constant 0 : index
    %28 = vector.load %arg2[%c5, %c0_14, %c0_15] : memref<14x32x32xf32, #tpu.memory_space<vmem>>, vector<1x32x32xf32>
    %29 = vector.shape_cast %28 : vector<1x32x32xf32> to vector<32x32xf32>
    %c6 = arith.constant 6 : index
    %c0_16 = arith.constant 0 : index
    %c0_17 = arith.constant 0 : index
    %30 = vector.load %arg2[%c6, %c0_16, %c0_17] : memref<14x32x32xf32, #tpu.memory_space<vmem>>, vector<1x32x32xf32>
    %31 = vector.shape_cast %30 : vector<1x32x32xf32> to vector<32x32xf32>
    %c7 = arith.constant 7 : index
    %c0_18 = arith.constant 0 : index
    %c0_19 = arith.constant 0 : index
    %32 = vector.load %arg2[%c7, %c0_18, %c0_19] : memref<14x32x32xf32, #tpu.memory_space<vmem>>, vector<1x32x32xf32>
    %33 = vector.shape_cast %32 : vector<1x32x32xf32> to vector<32x32xf32>
    %c8 = arith.constant 8 : index
    %c0_20 = arith.constant 0 : index
    %c0_21 = arith.constant 0 : index
    %34 = vector.load %arg2[%c8, %c0_20, %c0_21] : memref<14x32x32xf32, #tpu.memory_space<vmem>>, vector<1x32x32xf32>
    %35 = vector.shape_cast %34 : vector<1x32x32xf32> to vector<32x32xf32>
    %c9 = arith.constant 9 : index
    %c0_22 = arith.constant 0 : index
    %c0_23 = arith.constant 0 : index
    %36 = vector.load %arg2[%c9, %c0_22, %c0_23] : memref<14x32x32xf32, #tpu.memory_space<vmem>>, vector<1x32x32xf32>
    %37 = vector.shape_cast %36 : vector<1x32x32xf32> to vector<32x32xf32>
    %c10 = arith.constant 10 : index
    %c0_24 = arith.constant 0 : index
    %c0_25 = arith.constant 0 : index
    %38 = vector.load %arg2[%c10, %c0_24, %c0_25] : memref<14x32x32xf32, #tpu.memory_space<vmem>>, vector<1x32x32xf32>
    %39 = vector.shape_cast %38 : vector<1x32x32xf32> to vector<32x32xf32>
    %c11 = arith.constant 11 : index
    %c0_26 = arith.constant 0 : index
    %c0_27 = arith.constant 0 : index
    %40 = vector.load %arg2[%c11, %c0_26, %c0_27] : memref<14x32x32xf32, #tpu.memory_space<vmem>>, vector<1x32x32xf32>
    %41 = vector.shape_cast %40 : vector<1x32x32xf32> to vector<32x32xf32>
    %c12 = arith.constant 12 : index
    %c0_28 = arith.constant 0 : index
    %c0_29 = arith.constant 0 : index
    %42 = vector.load %arg2[%c12, %c0_28, %c0_29] : memref<14x32x32xf32, #tpu.memory_space<vmem>>, vector<1x32x32xf32>
    %43 = vector.shape_cast %42 : vector<1x32x32xf32> to vector<32x32xf32>
    %c13 = arith.constant 13 : index
    %c0_30 = arith.constant 0 : index
    %c0_31 = arith.constant 0 : index
    %44 = vector.load %arg2[%c13, %c0_30, %c0_31] : memref<14x32x32xf32, #tpu.memory_space<vmem>>, vector<1x32x32xf32>
    %45 = vector.shape_cast %44 : vector<1x32x32xf32> to vector<32x32xf32>
    %cst = arith.constant 0.000000e+00 : f32
    %46 = vector.broadcast %cst : f32 to vector<2x32xf32>
    %47 = vector.extract_strided_slice %0 {offsets = [0, 0], sizes = [2, 1], strides = [1, 1]} : vector<2x8xf32> to vector<2x1xf32>
    %48 = vector.broadcast %47 : vector<2x1xf32> to vector<2x32xf32>
    %49 = vector.broadcast %2 : vector<1x32xf32> to vector<2x32xf32>
    %50 = arith.mulf %48, %49 : vector<2x32xf32>
    %51 = vector.broadcast %6 : vector<1x32xf32> to vector<2x32xf32>
    %52 = arith.addf %50, %51 : vector<2x32xf32>
    %53 = vector.extract_strided_slice %0 {offsets = [0, 0], sizes = [2, 1], strides = [1, 1]} : vector<2x8xf32> to vector<2x1xf32>
    %54 = vector.broadcast %53 : vector<2x1xf32> to vector<2x32xf32>
    %55 = vector.broadcast %3 : vector<1x32xf32> to vector<2x32xf32>
    %56 = arith.mulf %54, %55 : vector<2x32xf32>
    %57 = vector.broadcast %7 : vector<1x32xf32> to vector<2x32xf32>
    %58 = arith.addf %56, %57 : vector<2x32xf32>
    %59 = vector.extract_strided_slice %0 {offsets = [0, 0], sizes = [2, 1], strides = [1, 1]} : vector<2x8xf32> to vector<2x1xf32>
    %60 = vector.broadcast %59 : vector<2x1xf32> to vector<2x32xf32>
    %61 = vector.broadcast %4 : vector<1x32xf32> to vector<2x32xf32>
    %62 = arith.mulf %60, %61 : vector<2x32xf32>
    %63 = vector.broadcast %8 : vector<1x32xf32> to vector<2x32xf32>
    %64 = arith.addf %62, %63 : vector<2x32xf32>
    %65 = vector.extract_strided_slice %0 {offsets = [0, 0], sizes = [2, 1], strides = [1, 1]} : vector<2x8xf32> to vector<2x1xf32>
    %66 = vector.broadcast %65 : vector<2x1xf32> to vector<2x32xf32>
    %67 = vector.broadcast %5 : vector<1x32xf32> to vector<2x32xf32>
    %68 = arith.mulf %66, %67 : vector<2x32xf32>
    %69 = vector.broadcast %9 : vector<1x32xf32> to vector<2x32xf32>
    %70 = arith.addf %68, %69 : vector<2x32xf32>
    %71 = vector.extract_strided_slice %0 {offsets = [0, 1], sizes = [2, 1], strides = [1, 1]} : vector<2x8xf32> to vector<2x1xf32>
    %72 = vector.broadcast %71 : vector<2x1xf32> to vector<2x32xf32>
    %73 = vector.broadcast %2 : vector<1x32xf32> to vector<2x32xf32>
    %74 = arith.mulf %72, %73 : vector<2x32xf32>
    %75 = vector.broadcast %6 : vector<1x32xf32> to vector<2x32xf32>
    %76 = arith.addf %74, %75 : vector<2x32xf32>
    %77 = vector.extract_strided_slice %0 {offsets = [0, 1], sizes = [2, 1], strides = [1, 1]} : vector<2x8xf32> to vector<2x1xf32>
    %78 = vector.broadcast %77 : vector<2x1xf32> to vector<2x32xf32>
    %79 = vector.broadcast %3 : vector<1x32xf32> to vector<2x32xf32>
    %80 = arith.mulf %78, %79 : vector<2x32xf32>
    %81 = vector.broadcast %7 : vector<1x32xf32> to vector<2x32xf32>
    %82 = arith.addf %80, %81 : vector<2x32xf32>
    %83 = vector.extract_strided_slice %0 {offsets = [0, 1], sizes = [2, 1], strides = [1, 1]} : vector<2x8xf32> to vector<2x1xf32>
    %84 = vector.broadcast %83 : vector<2x1xf32> to vector<2x32xf32>
    %85 = vector.broadcast %4 : vector<1x32xf32> to vector<2x32xf32>
    %86 = arith.mulf %84, %85 : vector<2x32xf32>
    %87 = vector.broadcast %8 : vector<1x32xf32> to vector<2x32xf32>
    %88 = arith.addf %86, %87 : vector<2x32xf32>
    %89 = vector.extract_strided_slice %0 {offsets = [0, 1], sizes = [2, 1], strides = [1, 1]} : vector<2x8xf32> to vector<2x1xf32>
    %90 = vector.broadcast %89 : vector<2x1xf32> to vector<2x32xf32>
    %91 = vector.broadcast %5 : vector<1x32xf32> to vector<2x32xf32>
    %92 = arith.mulf %90, %91 : vector<2x32xf32>
    %93 = vector.broadcast %9 : vector<1x32xf32> to vector<2x32xf32>
    %94 = arith.addf %92, %93 : vector<2x32xf32>
    %95 = vector.extract_strided_slice %0 {offsets = [0, 2], sizes = [2, 1], strides = [1, 1]} : vector<2x8xf32> to vector<2x1xf32>
    %96 = vector.broadcast %95 : vector<2x1xf32> to vector<2x32xf32>
    %97 = vector.broadcast %2 : vector<1x32xf32> to vector<2x32xf32>
    %98 = arith.mulf %96, %97 : vector<2x32xf32>
    %99 = vector.broadcast %6 : vector<1x32xf32> to vector<2x32xf32>
    %100 = arith.addf %98, %99 : vector<2x32xf32>
    %101 = vector.extract_strided_slice %0 {offsets = [0, 2], sizes = [2, 1], strides = [1, 1]} : vector<2x8xf32> to vector<2x1xf32>
    %102 = vector.broadcast %101 : vector<2x1xf32> to vector<2x32xf32>
    %103 = vector.broadcast %3 : vector<1x32xf32> to vector<2x32xf32>
    %104 = arith.mulf %102, %103 : vector<2x32xf32>
    %105 = vector.broadcast %7 : vector<1x32xf32> to vector<2x32xf32>
    %106 = arith.addf %104, %105 : vector<2x32xf32>
    %107 = vector.extract_strided_slice %0 {offsets = [0, 2], sizes = [2, 1], strides = [1, 1]} : vector<2x8xf32> to vector<2x1xf32>
    %108 = vector.broadcast %107 : vector<2x1xf32> to vector<2x32xf32>
    %109 = vector.broadcast %4 : vector<1x32xf32> to vector<2x32xf32>
    %110 = arith.mulf %108, %109 : vector<2x32xf32>
    %111 = vector.broadcast %8 : vector<1x32xf32> to vector<2x32xf32>
    %112 = arith.addf %110, %111 : vector<2x32xf32>
    %113 = vector.extract_strided_slice %0 {offsets = [0, 2], sizes = [2, 1], strides = [1, 1]} : vector<2x8xf32> to vector<2x1xf32>
    %114 = vector.broadcast %113 : vector<2x1xf32> to vector<2x32xf32>
    %115 = vector.broadcast %5 : vector<1x32xf32> to vector<2x32xf32>
    %116 = arith.mulf %114, %115 : vector<2x32xf32>
    %117 = vector.broadcast %9 : vector<1x32xf32> to vector<2x32xf32>
    %118 = arith.addf %116, %117 : vector<2x32xf32>
    %119 = vector.extract_strided_slice %0 {offsets = [0, 3], sizes = [2, 1], strides = [1, 1]} : vector<2x8xf32> to vector<2x1xf32>
    %120 = vector.broadcast %119 : vector<2x1xf32> to vector<2x32xf32>
    %121 = vector.broadcast %2 : vector<1x32xf32> to vector<2x32xf32>
    %122 = arith.mulf %120, %121 : vector<2x32xf32>
    %123 = vector.broadcast %6 : vector<1x32xf32> to vector<2x32xf32>
    %124 = arith.addf %122, %123 : vector<2x32xf32>
    %125 = vector.extract_strided_slice %0 {offsets = [0, 3], sizes = [2, 1], strides = [1, 1]} : vector<2x8xf32> to vector<2x1xf32>
    %126 = vector.broadcast %125 : vector<2x1xf32> to vector<2x32xf32>
    %127 = vector.broadcast %3 : vector<1x32xf32> to vector<2x32xf32>
    %128 = arith.mulf %126, %127 : vector<2x32xf32>
    %129 = vector.broadcast %7 : vector<1x32xf32> to vector<2x32xf32>
    %130 = arith.addf %128, %129 : vector<2x32xf32>
    %131 = vector.extract_strided_slice %0 {offsets = [0, 3], sizes = [2, 1], strides = [1, 1]} : vector<2x8xf32> to vector<2x1xf32>
    %132 = vector.broadcast %131 : vector<2x1xf32> to vector<2x32xf32>
    %133 = vector.broadcast %4 : vector<1x32xf32> to vector<2x32xf32>
    %134 = arith.mulf %132, %133 : vector<2x32xf32>
    %135 = vector.broadcast %8 : vector<1x32xf32> to vector<2x32xf32>
    %136 = arith.addf %134, %135 : vector<2x32xf32>
    %137 = vector.extract_strided_slice %0 {offsets = [0, 3], sizes = [2, 1], strides = [1, 1]} : vector<2x8xf32> to vector<2x1xf32>
    %138 = vector.broadcast %137 : vector<2x1xf32> to vector<2x32xf32>
    %139 = vector.broadcast %5 : vector<1x32xf32> to vector<2x32xf32>
    %140 = arith.mulf %138, %139 : vector<2x32xf32>
    %141 = vector.broadcast %9 : vector<1x32xf32> to vector<2x32xf32>
    %142 = arith.addf %140, %141 : vector<2x32xf32>
    %143 = vector.extract_strided_slice %0 {offsets = [0, 4], sizes = [2, 1], strides = [1, 1]} : vector<2x8xf32> to vector<2x1xf32>
    %144 = vector.broadcast %143 : vector<2x1xf32> to vector<2x32xf32>
    %145 = vector.broadcast %2 : vector<1x32xf32> to vector<2x32xf32>
    %146 = arith.mulf %144, %145 : vector<2x32xf32>
    %147 = vector.broadcast %6 : vector<1x32xf32> to vector<2x32xf32>
    %148 = arith.addf %146, %147 : vector<2x32xf32>
    %149 = vector.extract_strided_slice %0 {offsets = [0, 4], sizes = [2, 1], strides = [1, 1]} : vector<2x8xf32> to vector<2x1xf32>
    %150 = vector.broadcast %149 : vector<2x1xf32> to vector<2x32xf32>
    %151 = vector.broadcast %3 : vector<1x32xf32> to vector<2x32xf32>
    %152 = arith.mulf %150, %151 : vector<2x32xf32>
    %153 = vector.broadcast %7 : vector<1x32xf32> to vector<2x32xf32>
    %154 = arith.addf %152, %153 : vector<2x32xf32>
    %155 = vector.extract_strided_slice %0 {offsets = [0, 4], sizes = [2, 1], strides = [1, 1]} : vector<2x8xf32> to vector<2x1xf32>
    %156 = vector.broadcast %155 : vector<2x1xf32> to vector<2x32xf32>
    %157 = vector.broadcast %4 : vector<1x32xf32> to vector<2x32xf32>
    %158 = arith.mulf %156, %157 : vector<2x32xf32>
    %159 = vector.broadcast %8 : vector<1x32xf32> to vector<2x32xf32>
    %160 = arith.addf %158, %159 : vector<2x32xf32>
    %161 = vector.extract_strided_slice %0 {offsets = [0, 4], sizes = [2, 1], strides = [1, 1]} : vector<2x8xf32> to vector<2x1xf32>
    %162 = vector.broadcast %161 : vector<2x1xf32> to vector<2x32xf32>
    %163 = vector.broadcast %5 : vector<1x32xf32> to vector<2x32xf32>
    %164 = arith.mulf %162, %163 : vector<2x32xf32>
    %165 = vector.broadcast %9 : vector<1x32xf32> to vector<2x32xf32>
    %166 = arith.addf %164, %165 : vector<2x32xf32>
    %167 = vector.extract_strided_slice %0 {offsets = [0, 5], sizes = [2, 1], strides = [1, 1]} : vector<2x8xf32> to vector<2x1xf32>
    %168 = vector.broadcast %167 : vector<2x1xf32> to vector<2x32xf32>
    %169 = vector.broadcast %2 : vector<1x32xf32> to vector<2x32xf32>
    %170 = arith.mulf %168, %169 : vector<2x32xf32>
    %171 = vector.broadcast %6 : vector<1x32xf32> to vector<2x32xf32>
    %172 = arith.addf %170, %171 : vector<2x32xf32>
    %173 = vector.extract_strided_slice %0 {offsets = [0, 5], sizes = [2, 1], strides = [1, 1]} : vector<2x8xf32> to vector<2x1xf32>
    %174 = vector.broadcast %173 : vector<2x1xf32> to vector<2x32xf32>
    %175 = vector.broadcast %3 : vector<1x32xf32> to vector<2x32xf32>
    %176 = arith.mulf %174, %175 : vector<2x32xf32>
    %177 = vector.broadcast %7 : vector<1x32xf32> to vector<2x32xf32>
    %178 = arith.addf %176, %177 : vector<2x32xf32>
    %179 = vector.extract_strided_slice %0 {offsets = [0, 5], sizes = [2, 1], strides = [1, 1]} : vector<2x8xf32> to vector<2x1xf32>
    %180 = vector.broadcast %179 : vector<2x1xf32> to vector<2x32xf32>
    %181 = vector.broadcast %4 : vector<1x32xf32> to vector<2x32xf32>
    %182 = arith.mulf %180, %181 : vector<2x32xf32>
    %183 = vector.broadcast %8 : vector<1x32xf32> to vector<2x32xf32>
    %184 = arith.addf %182, %183 : vector<2x32xf32>
    %185 = vector.extract_strided_slice %0 {offsets = [0, 5], sizes = [2, 1], strides = [1, 1]} : vector<2x8xf32> to vector<2x1xf32>
    %186 = vector.broadcast %185 : vector<2x1xf32> to vector<2x32xf32>
    %187 = vector.broadcast %5 : vector<1x32xf32> to vector<2x32xf32>
    %188 = arith.mulf %186, %187 : vector<2x32xf32>
    %189 = vector.broadcast %9 : vector<1x32xf32> to vector<2x32xf32>
    %190 = arith.addf %188, %189 : vector<2x32xf32>
    %191 = vector.extract_strided_slice %0 {offsets = [0, 6], sizes = [2, 1], strides = [1, 1]} : vector<2x8xf32> to vector<2x1xf32>
    %192 = vector.broadcast %191 : vector<2x1xf32> to vector<2x32xf32>
    %193 = vector.broadcast %2 : vector<1x32xf32> to vector<2x32xf32>
    %194 = arith.mulf %192, %193 : vector<2x32xf32>
    %195 = vector.broadcast %6 : vector<1x32xf32> to vector<2x32xf32>
    %196 = arith.addf %194, %195 : vector<2x32xf32>
    %197 = vector.extract_strided_slice %0 {offsets = [0, 6], sizes = [2, 1], strides = [1, 1]} : vector<2x8xf32> to vector<2x1xf32>
    %198 = vector.broadcast %197 : vector<2x1xf32> to vector<2x32xf32>
    %199 = vector.broadcast %3 : vector<1x32xf32> to vector<2x32xf32>
    %200 = arith.mulf %198, %199 : vector<2x32xf32>
    %201 = vector.broadcast %7 : vector<1x32xf32> to vector<2x32xf32>
    %202 = arith.addf %200, %201 : vector<2x32xf32>
    %203 = vector.extract_strided_slice %0 {offsets = [0, 6], sizes = [2, 1], strides = [1, 1]} : vector<2x8xf32> to vector<2x1xf32>
    %204 = vector.broadcast %203 : vector<2x1xf32> to vector<2x32xf32>
    %205 = vector.broadcast %4 : vector<1x32xf32> to vector<2x32xf32>
    %206 = arith.mulf %204, %205 : vector<2x32xf32>
    %207 = vector.broadcast %8 : vector<1x32xf32> to vector<2x32xf32>
    %208 = arith.addf %206, %207 : vector<2x32xf32>
    %209 = vector.extract_strided_slice %0 {offsets = [0, 6], sizes = [2, 1], strides = [1, 1]} : vector<2x8xf32> to vector<2x1xf32>
    %210 = vector.broadcast %209 : vector<2x1xf32> to vector<2x32xf32>
    %211 = vector.broadcast %5 : vector<1x32xf32> to vector<2x32xf32>
    %212 = arith.mulf %210, %211 : vector<2x32xf32>
    %213 = vector.broadcast %9 : vector<1x32xf32> to vector<2x32xf32>
    %214 = arith.addf %212, %213 : vector<2x32xf32>
    %215 = vector.extract_strided_slice %0 {offsets = [0, 7], sizes = [2, 1], strides = [1, 1]} : vector<2x8xf32> to vector<2x1xf32>
    %216 = vector.broadcast %215 : vector<2x1xf32> to vector<2x32xf32>
    %217 = vector.broadcast %2 : vector<1x32xf32> to vector<2x32xf32>
    %218 = arith.mulf %216, %217 : vector<2x32xf32>
    %219 = vector.broadcast %6 : vector<1x32xf32> to vector<2x32xf32>
    %220 = arith.addf %218, %219 : vector<2x32xf32>
    %221 = vector.extract_strided_slice %0 {offsets = [0, 7], sizes = [2, 1], strides = [1, 1]} : vector<2x8xf32> to vector<2x1xf32>
    %222 = vector.broadcast %221 : vector<2x1xf32> to vector<2x32xf32>
    %223 = vector.broadcast %3 : vector<1x32xf32> to vector<2x32xf32>
    %224 = arith.mulf %222, %223 : vector<2x32xf32>
    %225 = vector.broadcast %7 : vector<1x32xf32> to vector<2x32xf32>
    %226 = arith.addf %224, %225 : vector<2x32xf32>
    %227 = vector.extract_strided_slice %0 {offsets = [0, 7], sizes = [2, 1], strides = [1, 1]} : vector<2x8xf32> to vector<2x1xf32>
    %228 = vector.broadcast %227 : vector<2x1xf32> to vector<2x32xf32>
    %229 = vector.broadcast %4 : vector<1x32xf32> to vector<2x32xf32>
    %230 = arith.mulf %228, %229 : vector<2x32xf32>
    %231 = vector.broadcast %8 : vector<1x32xf32> to vector<2x32xf32>
    %232 = arith.addf %230, %231 : vector<2x32xf32>
    %233 = vector.extract_strided_slice %0 {offsets = [0, 7], sizes = [2, 1], strides = [1, 1]} : vector<2x8xf32> to vector<2x1xf32>
    %234 = vector.broadcast %233 : vector<2x1xf32> to vector<2x32xf32>
    %235 = vector.broadcast %5 : vector<1x32xf32> to vector<2x32xf32>
    %236 = arith.mulf %234, %235 : vector<2x32xf32>
    %237 = vector.broadcast %9 : vector<1x32xf32> to vector<2x32xf32>
    %238 = arith.addf %236, %237 : vector<2x32xf32>
    %cst_32 = arith.constant dense<0.000000e+00> : vector<2x32xf32>
    %239 = tpu.matmul %46, %35, %cst_32 {dimension_numbers = #tpu.dot_dimension_numbers<[1], [0], [0], [1], [0, 0, 1, 1], [], []>} : vector<2x32xf32>, vector<32x32xf32>, vector<2x32xf32> -> vector<2x32xf32>
    %240 = vector.broadcast %10 : vector<1x32xf32> to vector<2x32xf32>
    %241 = arith.addf %239, %240 : vector<2x32xf32>
    %cst_33 = arith.constant dense<0.000000e+00> : vector<2x32xf32>
    %242 = tpu.matmul %46, %37, %cst_33 {dimension_numbers = #tpu.dot_dimension_numbers<[1], [0], [0], [1], [0, 0, 1, 1], [], []>} : vector<2x32xf32>, vector<32x32xf32>, vector<2x32xf32> -> vector<2x32xf32>
    %243 = vector.broadcast %11 : vector<1x32xf32> to vector<2x32xf32>
    %244 = arith.addf %242, %243 : vector<2x32xf32>
    %cst_34 = arith.constant dense<0.000000e+00> : vector<2x32xf32>
    %245 = tpu.matmul %46, %39, %cst_34 {dimension_numbers = #tpu.dot_dimension_numbers<[1], [0], [0], [1], [0, 0, 1, 1], [], []>} : vector<2x32xf32>, vector<32x32xf32>, vector<2x32xf32> -> vector<2x32xf32>
    %246 = vector.broadcast %12 : vector<1x32xf32> to vector<2x32xf32>
    %247 = arith.addf %245, %246 : vector<2x32xf32>
    %cst_35 = arith.constant dense<0.000000e+00> : vector<2x32xf32>
    %248 = tpu.matmul %46, %41, %cst_35 {dimension_numbers = #tpu.dot_dimension_numbers<[1], [0], [0], [1], [0, 0, 1, 1], [], []>} : vector<2x32xf32>, vector<32x32xf32>, vector<2x32xf32> -> vector<2x32xf32>
    %249 = vector.broadcast %13 : vector<1x32xf32> to vector<2x32xf32>
    %250 = arith.addf %248, %249 : vector<2x32xf32>
    %cst_36 = arith.constant dense<0.000000e+00> : vector<2x32xf32>
    %251 = tpu.matmul %46, %19, %cst_36 {dimension_numbers = #tpu.dot_dimension_numbers<[1], [0], [0], [1], [0, 0, 1, 1], [], []>} : vector<2x32xf32>, vector<32x32xf32>, vector<2x32xf32> -> vector<2x32xf32>
    %252 = arith.addf %52, %251 : vector<2x32xf32>
    %cst_37 = arith.constant dense<0.000000e+00> : vector<2x32xf32>
    %253 = tpu.matmul %46, %21, %cst_37 {dimension_numbers = #tpu.dot_dimension_numbers<[1], [0], [0], [1], [0, 0, 1, 1], [], []>} : vector<2x32xf32>, vector<32x32xf32>, vector<2x32xf32> -> vector<2x32xf32>
    %254 = arith.addf %58, %253 : vector<2x32xf32>
    %cst_38 = arith.constant dense<0.000000e+00> : vector<2x32xf32>
    %255 = tpu.matmul %46, %23, %cst_38 {dimension_numbers = #tpu.dot_dimension_numbers<[1], [0], [0], [1], [0, 0, 1, 1], [], []>} : vector<2x32xf32>, vector<32x32xf32>, vector<2x32xf32> -> vector<2x32xf32>
    %256 = arith.addf %64, %255 : vector<2x32xf32>
    %cst_39 = arith.constant dense<0.000000e+00> : vector<2x32xf32>
    %257 = tpu.matmul %46, %25, %cst_39 {dimension_numbers = #tpu.dot_dimension_numbers<[1], [0], [0], [1], [0, 0, 1, 1], [], []>} : vector<2x32xf32>, vector<32x32xf32>, vector<2x32xf32> -> vector<2x32xf32>
    %258 = arith.addf %70, %257 : vector<2x32xf32>
    %259 = arith.negf %252 : vector<2x32xf32>
    %260 = math.exp %259 : vector<2x32xf32>
    %cst_40 = arith.constant 1.000000e+00 : f32
    %261 = vector.broadcast %cst_40 : f32 to vector<2x32xf32>
    %262 = arith.addf %261, %260 : vector<2x32xf32>
    %263 = arith.divf %261, %262 : vector<2x32xf32>
    %264 = arith.negf %254 : vector<2x32xf32>
    %265 = math.exp %264 : vector<2x32xf32>
    %cst_41 = arith.constant 1.000000e+00 : f32
    %266 = vector.broadcast %cst_41 : f32 to vector<2x32xf32>
    %267 = arith.addf %266, %265 : vector<2x32xf32>
    %268 = arith.divf %266, %267 : vector<2x32xf32>
    %269 = math.tanh %256 : vector<2x32xf32>
    %270 = arith.negf %258 : vector<2x32xf32>
    %271 = math.exp %270 : vector<2x32xf32>
    %cst_42 = arith.constant 1.000000e+00 : f32
    %272 = vector.broadcast %cst_42 : f32 to vector<2x32xf32>
    %273 = arith.addf %272, %271 : vector<2x32xf32>
    %274 = arith.divf %272, %273 : vector<2x32xf32>
    %275 = arith.mulf %268, %46 : vector<2x32xf32>
    %276 = arith.mulf %263, %269 : vector<2x32xf32>
    %277 = arith.addf %275, %276 : vector<2x32xf32>
    %278 = math.tanh %277 : vector<2x32xf32>
    %279 = arith.mulf %274, %278 : vector<2x32xf32>
    %cst_43 = arith.constant dense<0.000000e+00> : vector<2x32xf32>
    %280 = tpu.matmul %279, %27, %cst_43 {dimension_numbers = #tpu.dot_dimension_numbers<[1], [0], [0], [1], [0, 0, 1, 1], [], []>} : vector<2x32xf32>, vector<32x32xf32>, vector<2x32xf32> -> vector<2x32xf32>
    %281 = arith.addf %241, %280 : vector<2x32xf32>
    %cst_44 = arith.constant dense<0.000000e+00> : vector<2x32xf32>
    %282 = tpu.matmul %279, %29, %cst_44 {dimension_numbers = #tpu.dot_dimension_numbers<[1], [0], [0], [1], [0, 0, 1, 1], [], []>} : vector<2x32xf32>, vector<32x32xf32>, vector<2x32xf32> -> vector<2x32xf32>
    %283 = arith.addf %244, %282 : vector<2x32xf32>
    %cst_45 = arith.constant dense<0.000000e+00> : vector<2x32xf32>
    %284 = tpu.matmul %279, %31, %cst_45 {dimension_numbers = #tpu.dot_dimension_numbers<[1], [0], [0], [1], [0, 0, 1, 1], [], []>} : vector<2x32xf32>, vector<32x32xf32>, vector<2x32xf32> -> vector<2x32xf32>
    %285 = arith.addf %247, %284 : vector<2x32xf32>
    %cst_46 = arith.constant dense<0.000000e+00> : vector<2x32xf32>
    %286 = tpu.matmul %279, %33, %cst_46 {dimension_numbers = #tpu.dot_dimension_numbers<[1], [0], [0], [1], [0, 0, 1, 1], [], []>} : vector<2x32xf32>, vector<32x32xf32>, vector<2x32xf32> -> vector<2x32xf32>
    %287 = arith.addf %250, %286 : vector<2x32xf32>
    %288 = arith.negf %281 : vector<2x32xf32>
    %289 = math.exp %288 : vector<2x32xf32>
    %cst_47 = arith.constant 1.000000e+00 : f32
    %290 = vector.broadcast %cst_47 : f32 to vector<2x32xf32>
    %291 = arith.addf %290, %289 : vector<2x32xf32>
    %292 = arith.divf %290, %291 : vector<2x32xf32>
    %293 = arith.negf %283 : vector<2x32xf32>
    %294 = math.exp %293 : vector<2x32xf32>
    %cst_48 = arith.constant 1.000000e+00 : f32
    %295 = vector.broadcast %cst_48 : f32 to vector<2x32xf32>
    %296 = arith.addf %295, %294 : vector<2x32xf32>
    %297 = arith.divf %295, %296 : vector<2x32xf32>
    %298 = math.tanh %285 : vector<2x32xf32>
    %299 = arith.negf %287 : vector<2x32xf32>
    %300 = math.exp %299 : vector<2x32xf32>
    %cst_49 = arith.constant 1.000000e+00 : f32
    %301 = vector.broadcast %cst_49 : f32 to vector<2x32xf32>
    %302 = arith.addf %301, %300 : vector<2x32xf32>
    %303 = arith.divf %301, %302 : vector<2x32xf32>
    %304 = arith.mulf %297, %46 : vector<2x32xf32>
    %305 = arith.mulf %292, %298 : vector<2x32xf32>
    %306 = arith.addf %304, %305 : vector<2x32xf32>
    %307 = math.tanh %306 : vector<2x32xf32>
    %308 = arith.mulf %303, %307 : vector<2x32xf32>
    %cst_50 = arith.constant dense<0.000000e+00> : vector<2x32xf32>
    %309 = tpu.matmul %308, %35, %cst_50 {dimension_numbers = #tpu.dot_dimension_numbers<[1], [0], [0], [1], [0, 0, 1, 1], [], []>} : vector<2x32xf32>, vector<32x32xf32>, vector<2x32xf32> -> vector<2x32xf32>
    %310 = vector.broadcast %10 : vector<1x32xf32> to vector<2x32xf32>
    %311 = arith.addf %309, %310 : vector<2x32xf32>
    %cst_51 = arith.constant dense<0.000000e+00> : vector<2x32xf32>
    %312 = tpu.matmul %308, %37, %cst_51 {dimension_numbers = #tpu.dot_dimension_numbers<[1], [0], [0], [1], [0, 0, 1, 1], [], []>} : vector<2x32xf32>, vector<32x32xf32>, vector<2x32xf32> -> vector<2x32xf32>
    %313 = vector.broadcast %11 : vector<1x32xf32> to vector<2x32xf32>
    %314 = arith.addf %312, %313 : vector<2x32xf32>
    %cst_52 = arith.constant dense<0.000000e+00> : vector<2x32xf32>
    %315 = tpu.matmul %308, %39, %cst_52 {dimension_numbers = #tpu.dot_dimension_numbers<[1], [0], [0], [1], [0, 0, 1, 1], [], []>} : vector<2x32xf32>, vector<32x32xf32>, vector<2x32xf32> -> vector<2x32xf32>
    %316 = vector.broadcast %12 : vector<1x32xf32> to vector<2x32xf32>
    %317 = arith.addf %315, %316 : vector<2x32xf32>
    %cst_53 = arith.constant dense<0.000000e+00> : vector<2x32xf32>
    %318 = tpu.matmul %308, %41, %cst_53 {dimension_numbers = #tpu.dot_dimension_numbers<[1], [0], [0], [1], [0, 0, 1, 1], [], []>} : vector<2x32xf32>, vector<32x32xf32>, vector<2x32xf32> -> vector<2x32xf32>
    %319 = vector.broadcast %13 : vector<1x32xf32> to vector<2x32xf32>
    %320 = arith.addf %318, %319 : vector<2x32xf32>
    %cst_54 = arith.constant dense<0.000000e+00> : vector<2x32xf32>
    %321 = tpu.matmul %279, %19, %cst_54 {dimension_numbers = #tpu.dot_dimension_numbers<[1], [0], [0], [1], [0, 0, 1, 1], [], []>} : vector<2x32xf32>, vector<32x32xf32>, vector<2x32xf32> -> vector<2x32xf32>
    %322 = arith.addf %76, %321 : vector<2x32xf32>
    %cst_55 = arith.constant dense<0.000000e+00> : vector<2x32xf32>
    %323 = tpu.matmul %279, %21, %cst_55 {dimension_numbers = #tpu.dot_dimension_numbers<[1], [0], [0], [1], [0, 0, 1, 1], [], []>} : vector<2x32xf32>, vector<32x32xf32>, vector<2x32xf32> -> vector<2x32xf32>
    %324 = arith.addf %82, %323 : vector<2x32xf32>
    %cst_56 = arith.constant dense<0.000000e+00> : vector<2x32xf32>
    %325 = tpu.matmul %279, %23, %cst_56 {dimension_numbers = #tpu.dot_dimension_numbers<[1], [0], [0], [1], [0, 0, 1, 1], [], []>} : vector<2x32xf32>, vector<32x32xf32>, vector<2x32xf32> -> vector<2x32xf32>
    %326 = arith.addf %88, %325 : vector<2x32xf32>
    %cst_57 = arith.constant dense<0.000000e+00> : vector<2x32xf32>
    %327 = tpu.matmul %279, %25, %cst_57 {dimension_numbers = #tpu.dot_dimension_numbers<[1], [0], [0], [1], [0, 0, 1, 1], [], []>} : vector<2x32xf32>, vector<32x32xf32>, vector<2x32xf32> -> vector<2x32xf32>
    %328 = arith.addf %94, %327 : vector<2x32xf32>
    %329 = arith.negf %322 : vector<2x32xf32>
    %330 = math.exp %329 : vector<2x32xf32>
    %cst_58 = arith.constant 1.000000e+00 : f32
    %331 = vector.broadcast %cst_58 : f32 to vector<2x32xf32>
    %332 = arith.addf %331, %330 : vector<2x32xf32>
    %333 = arith.divf %331, %332 : vector<2x32xf32>
    %334 = arith.negf %324 : vector<2x32xf32>
    %335 = math.exp %334 : vector<2x32xf32>
    %cst_59 = arith.constant 1.000000e+00 : f32
    %336 = vector.broadcast %cst_59 : f32 to vector<2x32xf32>
    %337 = arith.addf %336, %335 : vector<2x32xf32>
    %338 = arith.divf %336, %337 : vector<2x32xf32>
    %339 = math.tanh %326 : vector<2x32xf32>
    %340 = arith.negf %328 : vector<2x32xf32>
    %341 = math.exp %340 : vector<2x32xf32>
    %cst_60 = arith.constant 1.000000e+00 : f32
    %342 = vector.broadcast %cst_60 : f32 to vector<2x32xf32>
    %343 = arith.addf %342, %341 : vector<2x32xf32>
    %344 = arith.divf %342, %343 : vector<2x32xf32>
    %345 = arith.mulf %338, %277 : vector<2x32xf32>
    %346 = arith.mulf %333, %339 : vector<2x32xf32>
    %347 = arith.addf %345, %346 : vector<2x32xf32>
    %348 = math.tanh %347 : vector<2x32xf32>
    %349 = arith.mulf %344, %348 : vector<2x32xf32>
    %cst_61 = arith.constant dense<0.000000e+00> : vector<2x32xf32>
    %350 = tpu.matmul %349, %27, %cst_61 {dimension_numbers = #tpu.dot_dimension_numbers<[1], [0], [0], [1], [0, 0, 1, 1], [], []>} : vector<2x32xf32>, vector<32x32xf32>, vector<2x32xf32> -> vector<2x32xf32>
    %351 = arith.addf %311, %350 : vector<2x32xf32>
    %cst_62 = arith.constant dense<0.000000e+00> : vector<2x32xf32>
    %352 = tpu.matmul %349, %29, %cst_62 {dimension_numbers = #tpu.dot_dimension_numbers<[1], [0], [0], [1], [0, 0, 1, 1], [], []>} : vector<2x32xf32>, vector<32x32xf32>, vector<2x32xf32> -> vector<2x32xf32>
    %353 = arith.addf %314, %352 : vector<2x32xf32>
    %cst_63 = arith.constant dense<0.000000e+00> : vector<2x32xf32>
    %354 = tpu.matmul %349, %31, %cst_63 {dimension_numbers = #tpu.dot_dimension_numbers<[1], [0], [0], [1], [0, 0, 1, 1], [], []>} : vector<2x32xf32>, vector<32x32xf32>, vector<2x32xf32> -> vector<2x32xf32>
    %355 = arith.addf %317, %354 : vector<2x32xf32>
    %cst_64 = arith.constant dense<0.000000e+00> : vector<2x32xf32>
    %356 = tpu.matmul %349, %33, %cst_64 {dimension_numbers = #tpu.dot_dimension_numbers<[1], [0], [0], [1], [0, 0, 1, 1], [], []>} : vector<2x32xf32>, vector<32x32xf32>, vector<2x32xf32> -> vector<2x32xf32>
    %357 = arith.addf %320, %356 : vector<2x32xf32>
    %358 = arith.negf %351 : vector<2x32xf32>
    %359 = math.exp %358 : vector<2x32xf32>
    %cst_65 = arith.constant 1.000000e+00 : f32
    %360 = vector.broadcast %cst_65 : f32 to vector<2x32xf32>
    %361 = arith.addf %360, %359 : vector<2x32xf32>
    %362 = arith.divf %360, %361 : vector<2x32xf32>
    %363 = arith.negf %353 : vector<2x32xf32>
    %364 = math.exp %363 : vector<2x32xf32>
    %cst_66 = arith.constant 1.000000e+00 : f32
    %365 = vector.broadcast %cst_66 : f32 to vector<2x32xf32>
    %366 = arith.addf %365, %364 : vector<2x32xf32>
    %367 = arith.divf %365, %366 : vector<2x32xf32>
    %368 = math.tanh %355 : vector<2x32xf32>
    %369 = arith.negf %357 : vector<2x32xf32>
    %370 = math.exp %369 : vector<2x32xf32>
    %cst_67 = arith.constant 1.000000e+00 : f32
    %371 = vector.broadcast %cst_67 : f32 to vector<2x32xf32>
    %372 = arith.addf %371, %370 : vector<2x32xf32>
    %373 = arith.divf %371, %372 : vector<2x32xf32>
    %374 = arith.mulf %367, %306 : vector<2x32xf32>
    %375 = arith.mulf %362, %368 : vector<2x32xf32>
    %376 = arith.addf %374, %375 : vector<2x32xf32>
    %377 = math.tanh %376 : vector<2x32xf32>
    %378 = arith.mulf %373, %377 : vector<2x32xf32>
    %cst_68 = arith.constant dense<0.000000e+00> : vector<2x32xf32>
    %379 = tpu.matmul %378, %35, %cst_68 {dimension_numbers = #tpu.dot_dimension_numbers<[1], [0], [0], [1], [0, 0, 1, 1], [], []>} : vector<2x32xf32>, vector<32x32xf32>, vector<2x32xf32> -> vector<2x32xf32>
    %380 = vector.broadcast %10 : vector<1x32xf32> to vector<2x32xf32>
    %381 = arith.addf %379, %380 : vector<2x32xf32>
    %cst_69 = arith.constant dense<0.000000e+00> : vector<2x32xf32>
    %382 = tpu.matmul %378, %37, %cst_69 {dimension_numbers = #tpu.dot_dimension_numbers<[1], [0], [0], [1], [0, 0, 1, 1], [], []>} : vector<2x32xf32>, vector<32x32xf32>, vector<2x32xf32> -> vector<2x32xf32>
    %383 = vector.broadcast %11 : vector<1x32xf32> to vector<2x32xf32>
    %384 = arith.addf %382, %383 : vector<2x32xf32>
    %cst_70 = arith.constant dense<0.000000e+00> : vector<2x32xf32>
    %385 = tpu.matmul %378, %39, %cst_70 {dimension_numbers = #tpu.dot_dimension_numbers<[1], [0], [0], [1], [0, 0, 1, 1], [], []>} : vector<2x32xf32>, vector<32x32xf32>, vector<2x32xf32> -> vector<2x32xf32>
    %386 = vector.broadcast %12 : vector<1x32xf32> to vector<2x32xf32>
    %387 = arith.addf %385, %386 : vector<2x32xf32>
    %cst_71 = arith.constant dense<0.000000e+00> : vector<2x32xf32>
    %388 = tpu.matmul %378, %41, %cst_71 {dimension_numbers = #tpu.dot_dimension_numbers<[1], [0], [0], [1], [0, 0, 1, 1], [], []>} : vector<2x32xf32>, vector<32x32xf32>, vector<2x32xf32> -> vector<2x32xf32>
    %389 = vector.broadcast %13 : vector<1x32xf32> to vector<2x32xf32>
    %390 = arith.addf %388, %389 : vector<2x32xf32>
    %cst_72 = arith.constant dense<0.000000e+00> : vector<2x32xf32>
    %391 = tpu.matmul %349, %19, %cst_72 {dimension_numbers = #tpu.dot_dimension_numbers<[1], [0], [0], [1], [0, 0, 1, 1], [], []>} : vector<2x32xf32>, vector<32x32xf32>, vector<2x32xf32> -> vector<2x32xf32>
    %392 = arith.addf %100, %391 : vector<2x32xf32>
    %cst_73 = arith.constant dense<0.000000e+00> : vector<2x32xf32>
    %393 = tpu.matmul %349, %21, %cst_73 {dimension_numbers = #tpu.dot_dimension_numbers<[1], [0], [0], [1], [0, 0, 1, 1], [], []>} : vector<2x32xf32>, vector<32x32xf32>, vector<2x32xf32> -> vector<2x32xf32>
    %394 = arith.addf %106, %393 : vector<2x32xf32>
    %cst_74 = arith.constant dense<0.000000e+00> : vector<2x32xf32>
    %395 = tpu.matmul %349, %23, %cst_74 {dimension_numbers = #tpu.dot_dimension_numbers<[1], [0], [0], [1], [0, 0, 1, 1], [], []>} : vector<2x32xf32>, vector<32x32xf32>, vector<2x32xf32> -> vector<2x32xf32>
    %396 = arith.addf %112, %395 : vector<2x32xf32>
    %cst_75 = arith.constant dense<0.000000e+00> : vector<2x32xf32>
    %397 = tpu.matmul %349, %25, %cst_75 {dimension_numbers = #tpu.dot_dimension_numbers<[1], [0], [0], [1], [0, 0, 1, 1], [], []>} : vector<2x32xf32>, vector<32x32xf32>, vector<2x32xf32> -> vector<2x32xf32>
    %398 = arith.addf %118, %397 : vector<2x32xf32>
    %399 = arith.negf %392 : vector<2x32xf32>
    %400 = math.exp %399 : vector<2x32xf32>
    %cst_76 = arith.constant 1.000000e+00 : f32
    %401 = vector.broadcast %cst_76 : f32 to vector<2x32xf32>
    %402 = arith.addf %401, %400 : vector<2x32xf32>
    %403 = arith.divf %401, %402 : vector<2x32xf32>
    %404 = arith.negf %394 : vector<2x32xf32>
    %405 = math.exp %404 : vector<2x32xf32>
    %cst_77 = arith.constant 1.000000e+00 : f32
    %406 = vector.broadcast %cst_77 : f32 to vector<2x32xf32>
    %407 = arith.addf %406, %405 : vector<2x32xf32>
    %408 = arith.divf %406, %407 : vector<2x32xf32>
    %409 = math.tanh %396 : vector<2x32xf32>
    %410 = arith.negf %398 : vector<2x32xf32>
    %411 = math.exp %410 : vector<2x32xf32>
    %cst_78 = arith.constant 1.000000e+00 : f32
    %412 = vector.broadcast %cst_78 : f32 to vector<2x32xf32>
    %413 = arith.addf %412, %411 : vector<2x32xf32>
    %414 = arith.divf %412, %413 : vector<2x32xf32>
    %415 = arith.mulf %408, %347 : vector<2x32xf32>
    %416 = arith.mulf %403, %409 : vector<2x32xf32>
    %417 = arith.addf %415, %416 : vector<2x32xf32>
    %418 = math.tanh %417 : vector<2x32xf32>
    %419 = arith.mulf %414, %418 : vector<2x32xf32>
    %cst_79 = arith.constant dense<0.000000e+00> : vector<2x32xf32>
    %420 = tpu.matmul %419, %27, %cst_79 {dimension_numbers = #tpu.dot_dimension_numbers<[1], [0], [0], [1], [0, 0, 1, 1], [], []>} : vector<2x32xf32>, vector<32x32xf32>, vector<2x32xf32> -> vector<2x32xf32>
    %421 = arith.addf %381, %420 : vector<2x32xf32>
    %cst_80 = arith.constant dense<0.000000e+00> : vector<2x32xf32>
    %422 = tpu.matmul %419, %29, %cst_80 {dimension_numbers = #tpu.dot_dimension_numbers<[1], [0], [0], [1], [0, 0, 1, 1], [], []>} : vector<2x32xf32>, vector<32x32xf32>, vector<2x32xf32> -> vector<2x32xf32>
    %423 = arith.addf %384, %422 : vector<2x32xf32>
    %cst_81 = arith.constant dense<0.000000e+00> : vector<2x32xf32>
    %424 = tpu.matmul %419, %31, %cst_81 {dimension_numbers = #tpu.dot_dimension_numbers<[1], [0], [0], [1], [0, 0, 1, 1], [], []>} : vector<2x32xf32>, vector<32x32xf32>, vector<2x32xf32> -> vector<2x32xf32>
    %425 = arith.addf %387, %424 : vector<2x32xf32>
    %cst_82 = arith.constant dense<0.000000e+00> : vector<2x32xf32>
    %426 = tpu.matmul %419, %33, %cst_82 {dimension_numbers = #tpu.dot_dimension_numbers<[1], [0], [0], [1], [0, 0, 1, 1], [], []>} : vector<2x32xf32>, vector<32x32xf32>, vector<2x32xf32> -> vector<2x32xf32>
    %427 = arith.addf %390, %426 : vector<2x32xf32>
    %428 = arith.negf %421 : vector<2x32xf32>
    %429 = math.exp %428 : vector<2x32xf32>
    %cst_83 = arith.constant 1.000000e+00 : f32
    %430 = vector.broadcast %cst_83 : f32 to vector<2x32xf32>
    %431 = arith.addf %430, %429 : vector<2x32xf32>
    %432 = arith.divf %430, %431 : vector<2x32xf32>
    %433 = arith.negf %423 : vector<2x32xf32>
    %434 = math.exp %433 : vector<2x32xf32>
    %cst_84 = arith.constant 1.000000e+00 : f32
    %435 = vector.broadcast %cst_84 : f32 to vector<2x32xf32>
    %436 = arith.addf %435, %434 : vector<2x32xf32>
    %437 = arith.divf %435, %436 : vector<2x32xf32>
    %438 = math.tanh %425 : vector<2x32xf32>
    %439 = arith.negf %427 : vector<2x32xf32>
    %440 = math.exp %439 : vector<2x32xf32>
    %cst_85 = arith.constant 1.000000e+00 : f32
    %441 = vector.broadcast %cst_85 : f32 to vector<2x32xf32>
    %442 = arith.addf %441, %440 : vector<2x32xf32>
    %443 = arith.divf %441, %442 : vector<2x32xf32>
    %444 = arith.mulf %437, %376 : vector<2x32xf32>
    %445 = arith.mulf %432, %438 : vector<2x32xf32>
    %446 = arith.addf %444, %445 : vector<2x32xf32>
    %447 = math.tanh %446 : vector<2x32xf32>
    %448 = arith.mulf %443, %447 : vector<2x32xf32>
    %cst_86 = arith.constant dense<0.000000e+00> : vector<2x32xf32>
    %449 = tpu.matmul %448, %35, %cst_86 {dimension_numbers = #tpu.dot_dimension_numbers<[1], [0], [0], [1], [0, 0, 1, 1], [], []>} : vector<2x32xf32>, vector<32x32xf32>, vector<2x32xf32> -> vector<2x32xf32>
    %450 = vector.broadcast %10 : vector<1x32xf32> to vector<2x32xf32>
    %451 = arith.addf %449, %450 : vector<2x32xf32>
    %cst_87 = arith.constant dense<0.000000e+00> : vector<2x32xf32>
    %452 = tpu.matmul %448, %37, %cst_87 {dimension_numbers = #tpu.dot_dimension_numbers<[1], [0], [0], [1], [0, 0, 1, 1], [], []>} : vector<2x32xf32>, vector<32x32xf32>, vector<2x32xf32> -> vector<2x32xf32>
    %453 = vector.broadcast %11 : vector<1x32xf32> to vector<2x32xf32>
    %454 = arith.addf %452, %453 : vector<2x32xf32>
    %cst_88 = arith.constant dense<0.000000e+00> : vector<2x32xf32>
    %455 = tpu.matmul %448, %39, %cst_88 {dimension_numbers = #tpu.dot_dimension_numbers<[1], [0], [0], [1], [0, 0, 1, 1], [], []>} : vector<2x32xf32>, vector<32x32xf32>, vector<2x32xf32> -> vector<2x32xf32>
    %456 = vector.broadcast %12 : vector<1x32xf32> to vector<2x32xf32>
    %457 = arith.addf %455, %456 : vector<2x32xf32>
    %cst_89 = arith.constant dense<0.000000e+00> : vector<2x32xf32>
    %458 = tpu.matmul %448, %41, %cst_89 {dimension_numbers = #tpu.dot_dimension_numbers<[1], [0], [0], [1], [0, 0, 1, 1], [], []>} : vector<2x32xf32>, vector<32x32xf32>, vector<2x32xf32> -> vector<2x32xf32>
    %459 = vector.broadcast %13 : vector<1x32xf32> to vector<2x32xf32>
    %460 = arith.addf %458, %459 : vector<2x32xf32>
    %cst_90 = arith.constant dense<0.000000e+00> : vector<2x32xf32>
    %461 = tpu.matmul %419, %19, %cst_90 {dimension_numbers = #tpu.dot_dimension_numbers<[1], [0], [0], [1], [0, 0, 1, 1], [], []>} : vector<2x32xf32>, vector<32x32xf32>, vector<2x32xf32> -> vector<2x32xf32>
    %462 = arith.addf %124, %461 : vector<2x32xf32>
    %cst_91 = arith.constant dense<0.000000e+00> : vector<2x32xf32>
    %463 = tpu.matmul %419, %21, %cst_91 {dimension_numbers = #tpu.dot_dimension_numbers<[1], [0], [0], [1], [0, 0, 1, 1], [], []>} : vector<2x32xf32>, vector<32x32xf32>, vector<2x32xf32> -> vector<2x32xf32>
    %464 = arith.addf %130, %463 : vector<2x32xf32>
    %cst_92 = arith.constant dense<0.000000e+00> : vector<2x32xf32>
    %465 = tpu.matmul %419, %23, %cst_92 {dimension_numbers = #tpu.dot_dimension_numbers<[1], [0], [0], [1], [0, 0, 1, 1], [], []>} : vector<2x32xf32>, vector<32x32xf32>, vector<2x32xf32> -> vector<2x32xf32>
    %466 = arith.addf %136, %465 : vector<2x32xf32>
    %cst_93 = arith.constant dense<0.000000e+00> : vector<2x32xf32>
    %467 = tpu.matmul %419, %25, %cst_93 {dimension_numbers = #tpu.dot_dimension_numbers<[1], [0], [0], [1], [0, 0, 1, 1], [], []>} : vector<2x32xf32>, vector<32x32xf32>, vector<2x32xf32> -> vector<2x32xf32>
    %468 = arith.addf %142, %467 : vector<2x32xf32>
    %469 = arith.negf %462 : vector<2x32xf32>
    %470 = math.exp %469 : vector<2x32xf32>
    %cst_94 = arith.constant 1.000000e+00 : f32
    %471 = vector.broadcast %cst_94 : f32 to vector<2x32xf32>
    %472 = arith.addf %471, %470 : vector<2x32xf32>
    %473 = arith.divf %471, %472 : vector<2x32xf32>
    %474 = arith.negf %464 : vector<2x32xf32>
    %475 = math.exp %474 : vector<2x32xf32>
    %cst_95 = arith.constant 1.000000e+00 : f32
    %476 = vector.broadcast %cst_95 : f32 to vector<2x32xf32>
    %477 = arith.addf %476, %475 : vector<2x32xf32>
    %478 = arith.divf %476, %477 : vector<2x32xf32>
    %479 = math.tanh %466 : vector<2x32xf32>
    %480 = arith.negf %468 : vector<2x32xf32>
    %481 = math.exp %480 : vector<2x32xf32>
    %cst_96 = arith.constant 1.000000e+00 : f32
    %482 = vector.broadcast %cst_96 : f32 to vector<2x32xf32>
    %483 = arith.addf %482, %481 : vector<2x32xf32>
    %484 = arith.divf %482, %483 : vector<2x32xf32>
    %485 = arith.mulf %478, %417 : vector<2x32xf32>
    %486 = arith.mulf %473, %479 : vector<2x32xf32>
    %487 = arith.addf %485, %486 : vector<2x32xf32>
    %488 = math.tanh %487 : vector<2x32xf32>
    %489 = arith.mulf %484, %488 : vector<2x32xf32>
    %cst_97 = arith.constant dense<0.000000e+00> : vector<2x32xf32>
    %490 = tpu.matmul %489, %27, %cst_97 {dimension_numbers = #tpu.dot_dimension_numbers<[1], [0], [0], [1], [0, 0, 1, 1], [], []>} : vector<2x32xf32>, vector<32x32xf32>, vector<2x32xf32> -> vector<2x32xf32>
    %491 = arith.addf %451, %490 : vector<2x32xf32>
    %cst_98 = arith.constant dense<0.000000e+00> : vector<2x32xf32>
    %492 = tpu.matmul %489, %29, %cst_98 {dimension_numbers = #tpu.dot_dimension_numbers<[1], [0], [0], [1], [0, 0, 1, 1], [], []>} : vector<2x32xf32>, vector<32x32xf32>, vector<2x32xf32> -> vector<2x32xf32>
    %493 = arith.addf %454, %492 : vector<2x32xf32>
    %cst_99 = arith.constant dense<0.000000e+00> : vector<2x32xf32>
    %494 = tpu.matmul %489, %31, %cst_99 {dimension_numbers = #tpu.dot_dimension_numbers<[1], [0], [0], [1], [0, 0, 1, 1], [], []>} : vector<2x32xf32>, vector<32x32xf32>, vector<2x32xf32> -> vector<2x32xf32>
    %495 = arith.addf %457, %494 : vector<2x32xf32>
    %cst_100 = arith.constant dense<0.000000e+00> : vector<2x32xf32>
    %496 = tpu.matmul %489, %33, %cst_100 {dimension_numbers = #tpu.dot_dimension_numbers<[1], [0], [0], [1], [0, 0, 1, 1], [], []>} : vector<2x32xf32>, vector<32x32xf32>, vector<2x32xf32> -> vector<2x32xf32>
    %497 = arith.addf %460, %496 : vector<2x32xf32>
    %498 = arith.negf %491 : vector<2x32xf32>
    %499 = math.exp %498 : vector<2x32xf32>
    %cst_101 = arith.constant 1.000000e+00 : f32
    %500 = vector.broadcast %cst_101 : f32 to vector<2x32xf32>
    %501 = arith.addf %500, %499 : vector<2x32xf32>
    %502 = arith.divf %500, %501 : vector<2x32xf32>
    %503 = arith.negf %493 : vector<2x32xf32>
    %504 = math.exp %503 : vector<2x32xf32>
    %cst_102 = arith.constant 1.000000e+00 : f32
    %505 = vector.broadcast %cst_102 : f32 to vector<2x32xf32>
    %506 = arith.addf %505, %504 : vector<2x32xf32>
    %507 = arith.divf %505, %506 : vector<2x32xf32>
    %508 = math.tanh %495 : vector<2x32xf32>
    %509 = arith.negf %497 : vector<2x32xf32>
    %510 = math.exp %509 : vector<2x32xf32>
    %cst_103 = arith.constant 1.000000e+00 : f32
    %511 = vector.broadcast %cst_103 : f32 to vector<2x32xf32>
    %512 = arith.addf %511, %510 : vector<2x32xf32>
    %513 = arith.divf %511, %512 : vector<2x32xf32>
    %514 = arith.mulf %507, %446 : vector<2x32xf32>
    %515 = arith.mulf %502, %508 : vector<2x32xf32>
    %516 = arith.addf %514, %515 : vector<2x32xf32>
    %517 = math.tanh %516 : vector<2x32xf32>
    %518 = arith.mulf %513, %517 : vector<2x32xf32>
    %cst_104 = arith.constant dense<0.000000e+00> : vector<2x32xf32>
    %519 = tpu.matmul %518, %35, %cst_104 {dimension_numbers = #tpu.dot_dimension_numbers<[1], [0], [0], [1], [0, 0, 1, 1], [], []>} : vector<2x32xf32>, vector<32x32xf32>, vector<2x32xf32> -> vector<2x32xf32>
    %520 = vector.broadcast %10 : vector<1x32xf32> to vector<2x32xf32>
    %521 = arith.addf %519, %520 : vector<2x32xf32>
    %cst_105 = arith.constant dense<0.000000e+00> : vector<2x32xf32>
    %522 = tpu.matmul %518, %37, %cst_105 {dimension_numbers = #tpu.dot_dimension_numbers<[1], [0], [0], [1], [0, 0, 1, 1], [], []>} : vector<2x32xf32>, vector<32x32xf32>, vector<2x32xf32> -> vector<2x32xf32>
    %523 = vector.broadcast %11 : vector<1x32xf32> to vector<2x32xf32>
    %524 = arith.addf %522, %523 : vector<2x32xf32>
    %cst_106 = arith.constant dense<0.000000e+00> : vector<2x32xf32>
    %525 = tpu.matmul %518, %39, %cst_106 {dimension_numbers = #tpu.dot_dimension_numbers<[1], [0], [0], [1], [0, 0, 1, 1], [], []>} : vector<2x32xf32>, vector<32x32xf32>, vector<2x32xf32> -> vector<2x32xf32>
    %526 = vector.broadcast %12 : vector<1x32xf32> to vector<2x32xf32>
    %527 = arith.addf %525, %526 : vector<2x32xf32>
    %cst_107 = arith.constant dense<0.000000e+00> : vector<2x32xf32>
    %528 = tpu.matmul %518, %41, %cst_107 {dimension_numbers = #tpu.dot_dimension_numbers<[1], [0], [0], [1], [0, 0, 1, 1], [], []>} : vector<2x32xf32>, vector<32x32xf32>, vector<2x32xf32> -> vector<2x32xf32>
    %529 = vector.broadcast %13 : vector<1x32xf32> to vector<2x32xf32>
    %530 = arith.addf %528, %529 : vector<2x32xf32>
    %cst_108 = arith.constant dense<0.000000e+00> : vector<2x32xf32>
    %531 = tpu.matmul %489, %19, %cst_108 {dimension_numbers = #tpu.dot_dimension_numbers<[1], [0], [0], [1], [0, 0, 1, 1], [], []>} : vector<2x32xf32>, vector<32x32xf32>, vector<2x32xf32> -> vector<2x32xf32>
    %532 = arith.addf %148, %531 : vector<2x32xf32>
    %cst_109 = arith.constant dense<0.000000e+00> : vector<2x32xf32>
    %533 = tpu.matmul %489, %21, %cst_109 {dimension_numbers = #tpu.dot_dimension_numbers<[1], [0], [0], [1], [0, 0, 1, 1], [], []>} : vector<2x32xf32>, vector<32x32xf32>, vector<2x32xf32> -> vector<2x32xf32>
    %534 = arith.addf %154, %533 : vector<2x32xf32>
    %cst_110 = arith.constant dense<0.000000e+00> : vector<2x32xf32>
    %535 = tpu.matmul %489, %23, %cst_110 {dimension_numbers = #tpu.dot_dimension_numbers<[1], [0], [0], [1], [0, 0, 1, 1], [], []>} : vector<2x32xf32>, vector<32x32xf32>, vector<2x32xf32> -> vector<2x32xf32>
    %536 = arith.addf %160, %535 : vector<2x32xf32>
    %cst_111 = arith.constant dense<0.000000e+00> : vector<2x32xf32>
    %537 = tpu.matmul %489, %25, %cst_111 {dimension_numbers = #tpu.dot_dimension_numbers<[1], [0], [0], [1], [0, 0, 1, 1], [], []>} : vector<2x32xf32>, vector<32x32xf32>, vector<2x32xf32> -> vector<2x32xf32>
    %538 = arith.addf %166, %537 : vector<2x32xf32>
    %539 = arith.negf %532 : vector<2x32xf32>
    %540 = math.exp %539 : vector<2x32xf32>
    %cst_112 = arith.constant 1.000000e+00 : f32
    %541 = vector.broadcast %cst_112 : f32 to vector<2x32xf32>
    %542 = arith.addf %541, %540 : vector<2x32xf32>
    %543 = arith.divf %541, %542 : vector<2x32xf32>
    %544 = arith.negf %534 : vector<2x32xf32>
    %545 = math.exp %544 : vector<2x32xf32>
    %cst_113 = arith.constant 1.000000e+00 : f32
    %546 = vector.broadcast %cst_113 : f32 to vector<2x32xf32>
    %547 = arith.addf %546, %545 : vector<2x32xf32>
    %548 = arith.divf %546, %547 : vector<2x32xf32>
    %549 = math.tanh %536 : vector<2x32xf32>
    %550 = arith.negf %538 : vector<2x32xf32>
    %551 = math.exp %550 : vector<2x32xf32>
    %cst_114 = arith.constant 1.000000e+00 : f32
    %552 = vector.broadcast %cst_114 : f32 to vector<2x32xf32>
    %553 = arith.addf %552, %551 : vector<2x32xf32>
    %554 = arith.divf %552, %553 : vector<2x32xf32>
    %555 = arith.mulf %548, %487 : vector<2x32xf32>
    %556 = arith.mulf %543, %549 : vector<2x32xf32>
    %557 = arith.addf %555, %556 : vector<2x32xf32>
    %558 = math.tanh %557 : vector<2x32xf32>
    %559 = arith.mulf %554, %558 : vector<2x32xf32>
    %cst_115 = arith.constant dense<0.000000e+00> : vector<2x32xf32>
    %560 = tpu.matmul %559, %27, %cst_115 {dimension_numbers = #tpu.dot_dimension_numbers<[1], [0], [0], [1], [0, 0, 1, 1], [], []>} : vector<2x32xf32>, vector<32x32xf32>, vector<2x32xf32> -> vector<2x32xf32>
    %561 = arith.addf %521, %560 : vector<2x32xf32>
    %cst_116 = arith.constant dense<0.000000e+00> : vector<2x32xf32>
    %562 = tpu.matmul %559, %29, %cst_116 {dimension_numbers = #tpu.dot_dimension_numbers<[1], [0], [0], [1], [0, 0, 1, 1], [], []>} : vector<2x32xf32>, vector<32x32xf32>, vector<2x32xf32> -> vector<2x32xf32>
    %563 = arith.addf %524, %562 : vector<2x32xf32>
    %cst_117 = arith.constant dense<0.000000e+00> : vector<2x32xf32>
    %564 = tpu.matmul %559, %31, %cst_117 {dimension_numbers = #tpu.dot_dimension_numbers<[1], [0], [0], [1], [0, 0, 1, 1], [], []>} : vector<2x32xf32>, vector<32x32xf32>, vector<2x32xf32> -> vector<2x32xf32>
    %565 = arith.addf %527, %564 : vector<2x32xf32>
    %cst_118 = arith.constant dense<0.000000e+00> : vector<2x32xf32>
    %566 = tpu.matmul %559, %33, %cst_118 {dimension_numbers = #tpu.dot_dimension_numbers<[1], [0], [0], [1], [0, 0, 1, 1], [], []>} : vector<2x32xf32>, vector<32x32xf32>, vector<2x32xf32> -> vector<2x32xf32>
    %567 = arith.addf %530, %566 : vector<2x32xf32>
    %568 = arith.negf %561 : vector<2x32xf32>
    %569 = math.exp %568 : vector<2x32xf32>
    %cst_119 = arith.constant 1.000000e+00 : f32
    %570 = vector.broadcast %cst_119 : f32 to vector<2x32xf32>
    %571 = arith.addf %570, %569 : vector<2x32xf32>
    %572 = arith.divf %570, %571 : vector<2x32xf32>
    %573 = arith.negf %563 : vector<2x32xf32>
    %574 = math.exp %573 : vector<2x32xf32>
    %cst_120 = arith.constant 1.000000e+00 : f32
    %575 = vector.broadcast %cst_120 : f32 to vector<2x32xf32>
    %576 = arith.addf %575, %574 : vector<2x32xf32>
    %577 = arith.divf %575, %576 : vector<2x32xf32>
    %578 = math.tanh %565 : vector<2x32xf32>
    %579 = arith.negf %567 : vector<2x32xf32>
    %580 = math.exp %579 : vector<2x32xf32>
    %cst_121 = arith.constant 1.000000e+00 : f32
    %581 = vector.broadcast %cst_121 : f32 to vector<2x32xf32>
    %582 = arith.addf %581, %580 : vector<2x32xf32>
    %583 = arith.divf %581, %582 : vector<2x32xf32>
    %584 = arith.mulf %577, %516 : vector<2x32xf32>
    %585 = arith.mulf %572, %578 : vector<2x32xf32>
    %586 = arith.addf %584, %585 : vector<2x32xf32>
    %587 = math.tanh %586 : vector<2x32xf32>
    %588 = arith.mulf %583, %587 : vector<2x32xf32>
    %cst_122 = arith.constant dense<0.000000e+00> : vector<2x32xf32>
    %589 = tpu.matmul %588, %35, %cst_122 {dimension_numbers = #tpu.dot_dimension_numbers<[1], [0], [0], [1], [0, 0, 1, 1], [], []>} : vector<2x32xf32>, vector<32x32xf32>, vector<2x32xf32> -> vector<2x32xf32>
    %590 = vector.broadcast %10 : vector<1x32xf32> to vector<2x32xf32>
    %591 = arith.addf %589, %590 : vector<2x32xf32>
    %cst_123 = arith.constant dense<0.000000e+00> : vector<2x32xf32>
    %592 = tpu.matmul %588, %37, %cst_123 {dimension_numbers = #tpu.dot_dimension_numbers<[1], [0], [0], [1], [0, 0, 1, 1], [], []>} : vector<2x32xf32>, vector<32x32xf32>, vector<2x32xf32> -> vector<2x32xf32>
    %593 = vector.broadcast %11 : vector<1x32xf32> to vector<2x32xf32>
    %594 = arith.addf %592, %593 : vector<2x32xf32>
    %cst_124 = arith.constant dense<0.000000e+00> : vector<2x32xf32>
    %595 = tpu.matmul %588, %39, %cst_124 {dimension_numbers = #tpu.dot_dimension_numbers<[1], [0], [0], [1], [0, 0, 1, 1], [], []>} : vector<2x32xf32>, vector<32x32xf32>, vector<2x32xf32> -> vector<2x32xf32>
    %596 = vector.broadcast %12 : vector<1x32xf32> to vector<2x32xf32>
    %597 = arith.addf %595, %596 : vector<2x32xf32>
    %cst_125 = arith.constant dense<0.000000e+00> : vector<2x32xf32>
    %598 = tpu.matmul %588, %41, %cst_125 {dimension_numbers = #tpu.dot_dimension_numbers<[1], [0], [0], [1], [0, 0, 1, 1], [], []>} : vector<2x32xf32>, vector<32x32xf32>, vector<2x32xf32> -> vector<2x32xf32>
    %599 = vector.broadcast %13 : vector<1x32xf32> to vector<2x32xf32>
    %600 = arith.addf %598, %599 : vector<2x32xf32>
    %cst_126 = arith.constant dense<0.000000e+00> : vector<2x32xf32>
    %601 = tpu.matmul %559, %19, %cst_126 {dimension_numbers = #tpu.dot_dimension_numbers<[1], [0], [0], [1], [0, 0, 1, 1], [], []>} : vector<2x32xf32>, vector<32x32xf32>, vector<2x32xf32> -> vector<2x32xf32>
    %602 = arith.addf %172, %601 : vector<2x32xf32>
    %cst_127 = arith.constant dense<0.000000e+00> : vector<2x32xf32>
    %603 = tpu.matmul %559, %21, %cst_127 {dimension_numbers = #tpu.dot_dimension_numbers<[1], [0], [0], [1], [0, 0, 1, 1], [], []>} : vector<2x32xf32>, vector<32x32xf32>, vector<2x32xf32> -> vector<2x32xf32>
    %604 = arith.addf %178, %603 : vector<2x32xf32>
    %cst_128 = arith.constant dense<0.000000e+00> : vector<2x32xf32>
    %605 = tpu.matmul %559, %23, %cst_128 {dimension_numbers = #tpu.dot_dimension_numbers<[1], [0], [0], [1], [0, 0, 1, 1], [], []>} : vector<2x32xf32>, vector<32x32xf32>, vector<2x32xf32> -> vector<2x32xf32>
    %606 = arith.addf %184, %605 : vector<2x32xf32>
    %cst_129 = arith.constant dense<0.000000e+00> : vector<2x32xf32>
    %607 = tpu.matmul %559, %25, %cst_129 {dimension_numbers = #tpu.dot_dimension_numbers<[1], [0], [0], [1], [0, 0, 1, 1], [], []>} : vector<2x32xf32>, vector<32x32xf32>, vector<2x32xf32> -> vector<2x32xf32>
    %608 = arith.addf %190, %607 : vector<2x32xf32>
    %609 = arith.negf %602 : vector<2x32xf32>
    %610 = math.exp %609 : vector<2x32xf32>
    %cst_130 = arith.constant 1.000000e+00 : f32
    %611 = vector.broadcast %cst_130 : f32 to vector<2x32xf32>
    %612 = arith.addf %611, %610 : vector<2x32xf32>
    %613 = arith.divf %611, %612 : vector<2x32xf32>
    %614 = arith.negf %604 : vector<2x32xf32>
    %615 = math.exp %614 : vector<2x32xf32>
    %cst_131 = arith.constant 1.000000e+00 : f32
    %616 = vector.broadcast %cst_131 : f32 to vector<2x32xf32>
    %617 = arith.addf %616, %615 : vector<2x32xf32>
    %618 = arith.divf %616, %617 : vector<2x32xf32>
    %619 = math.tanh %606 : vector<2x32xf32>
    %620 = arith.negf %608 : vector<2x32xf32>
    %621 = math.exp %620 : vector<2x32xf32>
    %cst_132 = arith.constant 1.000000e+00 : f32
    %622 = vector.broadcast %cst_132 : f32 to vector<2x32xf32>
    %623 = arith.addf %622, %621 : vector<2x32xf32>
    %624 = arith.divf %622, %623 : vector<2x32xf32>
    %625 = arith.mulf %618, %557 : vector<2x32xf32>
    %626 = arith.mulf %613, %619 : vector<2x32xf32>
    %627 = arith.addf %625, %626 : vector<2x32xf32>
    %628 = math.tanh %627 : vector<2x32xf32>
    %629 = arith.mulf %624, %628 : vector<2x32xf32>
    %cst_133 = arith.constant dense<0.000000e+00> : vector<2x32xf32>
    %630 = tpu.matmul %629, %27, %cst_133 {dimension_numbers = #tpu.dot_dimension_numbers<[1], [0], [0], [1], [0, 0, 1, 1], [], []>} : vector<2x32xf32>, vector<32x32xf32>, vector<2x32xf32> -> vector<2x32xf32>
    %631 = arith.addf %591, %630 : vector<2x32xf32>
    %cst_134 = arith.constant dense<0.000000e+00> : vector<2x32xf32>
    %632 = tpu.matmul %629, %29, %cst_134 {dimension_numbers = #tpu.dot_dimension_numbers<[1], [0], [0], [1], [0, 0, 1, 1], [], []>} : vector<2x32xf32>, vector<32x32xf32>, vector<2x32xf32> -> vector<2x32xf32>
    %633 = arith.addf %594, %632 : vector<2x32xf32>
    %cst_135 = arith.constant dense<0.000000e+00> : vector<2x32xf32>
    %634 = tpu.matmul %629, %31, %cst_135 {dimension_numbers = #tpu.dot_dimension_numbers<[1], [0], [0], [1], [0, 0, 1, 1], [], []>} : vector<2x32xf32>, vector<32x32xf32>, vector<2x32xf32> -> vector<2x32xf32>
    %635 = arith.addf %597, %634 : vector<2x32xf32>
    %cst_136 = arith.constant dense<0.000000e+00> : vector<2x32xf32>
    %636 = tpu.matmul %629, %33, %cst_136 {dimension_numbers = #tpu.dot_dimension_numbers<[1], [0], [0], [1], [0, 0, 1, 1], [], []>} : vector<2x32xf32>, vector<32x32xf32>, vector<2x32xf32> -> vector<2x32xf32>
    %637 = arith.addf %600, %636 : vector<2x32xf32>
    %638 = arith.negf %631 : vector<2x32xf32>
    %639 = math.exp %638 : vector<2x32xf32>
    %cst_137 = arith.constant 1.000000e+00 : f32
    %640 = vector.broadcast %cst_137 : f32 to vector<2x32xf32>
    %641 = arith.addf %640, %639 : vector<2x32xf32>
    %642 = arith.divf %640, %641 : vector<2x32xf32>
    %643 = arith.negf %633 : vector<2x32xf32>
    %644 = math.exp %643 : vector<2x32xf32>
    %cst_138 = arith.constant 1.000000e+00 : f32
    %645 = vector.broadcast %cst_138 : f32 to vector<2x32xf32>
    %646 = arith.addf %645, %644 : vector<2x32xf32>
    %647 = arith.divf %645, %646 : vector<2x32xf32>
    %648 = math.tanh %635 : vector<2x32xf32>
    %649 = arith.negf %637 : vector<2x32xf32>
    %650 = math.exp %649 : vector<2x32xf32>
    %cst_139 = arith.constant 1.000000e+00 : f32
    %651 = vector.broadcast %cst_139 : f32 to vector<2x32xf32>
    %652 = arith.addf %651, %650 : vector<2x32xf32>
    %653 = arith.divf %651, %652 : vector<2x32xf32>
    %654 = arith.mulf %647, %586 : vector<2x32xf32>
    %655 = arith.mulf %642, %648 : vector<2x32xf32>
    %656 = arith.addf %654, %655 : vector<2x32xf32>
    %657 = math.tanh %656 : vector<2x32xf32>
    %658 = arith.mulf %653, %657 : vector<2x32xf32>
    %cst_140 = arith.constant dense<0.000000e+00> : vector<2x32xf32>
    %659 = tpu.matmul %658, %35, %cst_140 {dimension_numbers = #tpu.dot_dimension_numbers<[1], [0], [0], [1], [0, 0, 1, 1], [], []>} : vector<2x32xf32>, vector<32x32xf32>, vector<2x32xf32> -> vector<2x32xf32>
    %660 = vector.broadcast %10 : vector<1x32xf32> to vector<2x32xf32>
    %661 = arith.addf %659, %660 : vector<2x32xf32>
    %cst_141 = arith.constant dense<0.000000e+00> : vector<2x32xf32>
    %662 = tpu.matmul %658, %37, %cst_141 {dimension_numbers = #tpu.dot_dimension_numbers<[1], [0], [0], [1], [0, 0, 1, 1], [], []>} : vector<2x32xf32>, vector<32x32xf32>, vector<2x32xf32> -> vector<2x32xf32>
    %663 = vector.broadcast %11 : vector<1x32xf32> to vector<2x32xf32>
    %664 = arith.addf %662, %663 : vector<2x32xf32>
    %cst_142 = arith.constant dense<0.000000e+00> : vector<2x32xf32>
    %665 = tpu.matmul %658, %39, %cst_142 {dimension_numbers = #tpu.dot_dimension_numbers<[1], [0], [0], [1], [0, 0, 1, 1], [], []>} : vector<2x32xf32>, vector<32x32xf32>, vector<2x32xf32> -> vector<2x32xf32>
    %666 = vector.broadcast %12 : vector<1x32xf32> to vector<2x32xf32>
    %667 = arith.addf %665, %666 : vector<2x32xf32>
    %cst_143 = arith.constant dense<0.000000e+00> : vector<2x32xf32>
    %668 = tpu.matmul %658, %41, %cst_143 {dimension_numbers = #tpu.dot_dimension_numbers<[1], [0], [0], [1], [0, 0, 1, 1], [], []>} : vector<2x32xf32>, vector<32x32xf32>, vector<2x32xf32> -> vector<2x32xf32>
    %669 = vector.broadcast %13 : vector<1x32xf32> to vector<2x32xf32>
    %670 = arith.addf %668, %669 : vector<2x32xf32>
    %cst_144 = arith.constant dense<0.000000e+00> : vector<2x32xf32>
    %671 = tpu.matmul %629, %19, %cst_144 {dimension_numbers = #tpu.dot_dimension_numbers<[1], [0], [0], [1], [0, 0, 1, 1], [], []>} : vector<2x32xf32>, vector<32x32xf32>, vector<2x32xf32> -> vector<2x32xf32>
    %672 = arith.addf %196, %671 : vector<2x32xf32>
    %cst_145 = arith.constant dense<0.000000e+00> : vector<2x32xf32>
    %673 = tpu.matmul %629, %21, %cst_145 {dimension_numbers = #tpu.dot_dimension_numbers<[1], [0], [0], [1], [0, 0, 1, 1], [], []>} : vector<2x32xf32>, vector<32x32xf32>, vector<2x32xf32> -> vector<2x32xf32>
    %674 = arith.addf %202, %673 : vector<2x32xf32>
    %cst_146 = arith.constant dense<0.000000e+00> : vector<2x32xf32>
    %675 = tpu.matmul %629, %23, %cst_146 {dimension_numbers = #tpu.dot_dimension_numbers<[1], [0], [0], [1], [0, 0, 1, 1], [], []>} : vector<2x32xf32>, vector<32x32xf32>, vector<2x32xf32> -> vector<2x32xf32>
    %676 = arith.addf %208, %675 : vector<2x32xf32>
    %cst_147 = arith.constant dense<0.000000e+00> : vector<2x32xf32>
    %677 = tpu.matmul %629, %25, %cst_147 {dimension_numbers = #tpu.dot_dimension_numbers<[1], [0], [0], [1], [0, 0, 1, 1], [], []>} : vector<2x32xf32>, vector<32x32xf32>, vector<2x32xf32> -> vector<2x32xf32>
    %678 = arith.addf %214, %677 : vector<2x32xf32>
    %679 = arith.negf %672 : vector<2x32xf32>
    %680 = math.exp %679 : vector<2x32xf32>
    %cst_148 = arith.constant 1.000000e+00 : f32
    %681 = vector.broadcast %cst_148 : f32 to vector<2x32xf32>
    %682 = arith.addf %681, %680 : vector<2x32xf32>
    %683 = arith.divf %681, %682 : vector<2x32xf32>
    %684 = arith.negf %674 : vector<2x32xf32>
    %685 = math.exp %684 : vector<2x32xf32>
    %cst_149 = arith.constant 1.000000e+00 : f32
    %686 = vector.broadcast %cst_149 : f32 to vector<2x32xf32>
    %687 = arith.addf %686, %685 : vector<2x32xf32>
    %688 = arith.divf %686, %687 : vector<2x32xf32>
    %689 = math.tanh %676 : vector<2x32xf32>
    %690 = arith.negf %678 : vector<2x32xf32>
    %691 = math.exp %690 : vector<2x32xf32>
    %cst_150 = arith.constant 1.000000e+00 : f32
    %692 = vector.broadcast %cst_150 : f32 to vector<2x32xf32>
    %693 = arith.addf %692, %691 : vector<2x32xf32>
    %694 = arith.divf %692, %693 : vector<2x32xf32>
    %695 = arith.mulf %688, %627 : vector<2x32xf32>
    %696 = arith.mulf %683, %689 : vector<2x32xf32>
    %697 = arith.addf %695, %696 : vector<2x32xf32>
    %698 = math.tanh %697 : vector<2x32xf32>
    %699 = arith.mulf %694, %698 : vector<2x32xf32>
    %cst_151 = arith.constant dense<0.000000e+00> : vector<2x32xf32>
    %700 = tpu.matmul %699, %27, %cst_151 {dimension_numbers = #tpu.dot_dimension_numbers<[1], [0], [0], [1], [0, 0, 1, 1], [], []>} : vector<2x32xf32>, vector<32x32xf32>, vector<2x32xf32> -> vector<2x32xf32>
    %701 = arith.addf %661, %700 : vector<2x32xf32>
    %cst_152 = arith.constant dense<0.000000e+00> : vector<2x32xf32>
    %702 = tpu.matmul %699, %29, %cst_152 {dimension_numbers = #tpu.dot_dimension_numbers<[1], [0], [0], [1], [0, 0, 1, 1], [], []>} : vector<2x32xf32>, vector<32x32xf32>, vector<2x32xf32> -> vector<2x32xf32>
    %703 = arith.addf %664, %702 : vector<2x32xf32>
    %cst_153 = arith.constant dense<0.000000e+00> : vector<2x32xf32>
    %704 = tpu.matmul %699, %31, %cst_153 {dimension_numbers = #tpu.dot_dimension_numbers<[1], [0], [0], [1], [0, 0, 1, 1], [], []>} : vector<2x32xf32>, vector<32x32xf32>, vector<2x32xf32> -> vector<2x32xf32>
    %705 = arith.addf %667, %704 : vector<2x32xf32>
    %cst_154 = arith.constant dense<0.000000e+00> : vector<2x32xf32>
    %706 = tpu.matmul %699, %33, %cst_154 {dimension_numbers = #tpu.dot_dimension_numbers<[1], [0], [0], [1], [0, 0, 1, 1], [], []>} : vector<2x32xf32>, vector<32x32xf32>, vector<2x32xf32> -> vector<2x32xf32>
    %707 = arith.addf %670, %706 : vector<2x32xf32>
    %708 = arith.negf %701 : vector<2x32xf32>
    %709 = math.exp %708 : vector<2x32xf32>
    %cst_155 = arith.constant 1.000000e+00 : f32
    %710 = vector.broadcast %cst_155 : f32 to vector<2x32xf32>
    %711 = arith.addf %710, %709 : vector<2x32xf32>
    %712 = arith.divf %710, %711 : vector<2x32xf32>
    %713 = arith.negf %703 : vector<2x32xf32>
    %714 = math.exp %713 : vector<2x32xf32>
    %cst_156 = arith.constant 1.000000e+00 : f32
    %715 = vector.broadcast %cst_156 : f32 to vector<2x32xf32>
    %716 = arith.addf %715, %714 : vector<2x32xf32>
    %717 = arith.divf %715, %716 : vector<2x32xf32>
    %718 = math.tanh %705 : vector<2x32xf32>
    %719 = arith.negf %707 : vector<2x32xf32>
    %720 = math.exp %719 : vector<2x32xf32>
    %cst_157 = arith.constant 1.000000e+00 : f32
    %721 = vector.broadcast %cst_157 : f32 to vector<2x32xf32>
    %722 = arith.addf %721, %720 : vector<2x32xf32>
    %723 = arith.divf %721, %722 : vector<2x32xf32>
    %724 = arith.mulf %717, %656 : vector<2x32xf32>
    %725 = arith.mulf %712, %718 : vector<2x32xf32>
    %726 = arith.addf %724, %725 : vector<2x32xf32>
    %727 = math.tanh %726 : vector<2x32xf32>
    %728 = arith.mulf %723, %727 : vector<2x32xf32>
    %cst_158 = arith.constant dense<0.000000e+00> : vector<2x32xf32>
    %729 = tpu.matmul %728, %35, %cst_158 {dimension_numbers = #tpu.dot_dimension_numbers<[1], [0], [0], [1], [0, 0, 1, 1], [], []>} : vector<2x32xf32>, vector<32x32xf32>, vector<2x32xf32> -> vector<2x32xf32>
    %730 = vector.broadcast %10 : vector<1x32xf32> to vector<2x32xf32>
    %731 = arith.addf %729, %730 : vector<2x32xf32>
    %cst_159 = arith.constant dense<0.000000e+00> : vector<2x32xf32>
    %732 = tpu.matmul %728, %37, %cst_159 {dimension_numbers = #tpu.dot_dimension_numbers<[1], [0], [0], [1], [0, 0, 1, 1], [], []>} : vector<2x32xf32>, vector<32x32xf32>, vector<2x32xf32> -> vector<2x32xf32>
    %733 = vector.broadcast %11 : vector<1x32xf32> to vector<2x32xf32>
    %734 = arith.addf %732, %733 : vector<2x32xf32>
    %cst_160 = arith.constant dense<0.000000e+00> : vector<2x32xf32>
    %735 = tpu.matmul %728, %39, %cst_160 {dimension_numbers = #tpu.dot_dimension_numbers<[1], [0], [0], [1], [0, 0, 1, 1], [], []>} : vector<2x32xf32>, vector<32x32xf32>, vector<2x32xf32> -> vector<2x32xf32>
    %736 = vector.broadcast %12 : vector<1x32xf32> to vector<2x32xf32>
    %737 = arith.addf %735, %736 : vector<2x32xf32>
    %cst_161 = arith.constant dense<0.000000e+00> : vector<2x32xf32>
    %738 = tpu.matmul %728, %41, %cst_161 {dimension_numbers = #tpu.dot_dimension_numbers<[1], [0], [0], [1], [0, 0, 1, 1], [], []>} : vector<2x32xf32>, vector<32x32xf32>, vector<2x32xf32> -> vector<2x32xf32>
    %739 = vector.broadcast %13 : vector<1x32xf32> to vector<2x32xf32>
    %740 = arith.addf %738, %739 : vector<2x32xf32>
    %cst_162 = arith.constant dense<0.000000e+00> : vector<2x32xf32>
    %741 = tpu.matmul %699, %19, %cst_162 {dimension_numbers = #tpu.dot_dimension_numbers<[1], [0], [0], [1], [0, 0, 1, 1], [], []>} : vector<2x32xf32>, vector<32x32xf32>, vector<2x32xf32> -> vector<2x32xf32>
    %742 = arith.addf %220, %741 : vector<2x32xf32>
    %cst_163 = arith.constant dense<0.000000e+00> : vector<2x32xf32>
    %743 = tpu.matmul %699, %21, %cst_163 {dimension_numbers = #tpu.dot_dimension_numbers<[1], [0], [0], [1], [0, 0, 1, 1], [], []>} : vector<2x32xf32>, vector<32x32xf32>, vector<2x32xf32> -> vector<2x32xf32>
    %744 = arith.addf %226, %743 : vector<2x32xf32>
    %cst_164 = arith.constant dense<0.000000e+00> : vector<2x32xf32>
    %745 = tpu.matmul %699, %23, %cst_164 {dimension_numbers = #tpu.dot_dimension_numbers<[1], [0], [0], [1], [0, 0, 1, 1], [], []>} : vector<2x32xf32>, vector<32x32xf32>, vector<2x32xf32> -> vector<2x32xf32>
    %746 = arith.addf %232, %745 : vector<2x32xf32>
    %cst_165 = arith.constant dense<0.000000e+00> : vector<2x32xf32>
    %747 = tpu.matmul %699, %25, %cst_165 {dimension_numbers = #tpu.dot_dimension_numbers<[1], [0], [0], [1], [0, 0, 1, 1], [], []>} : vector<2x32xf32>, vector<32x32xf32>, vector<2x32xf32> -> vector<2x32xf32>
    %748 = arith.addf %238, %747 : vector<2x32xf32>
    %749 = arith.negf %742 : vector<2x32xf32>
    %750 = math.exp %749 : vector<2x32xf32>
    %cst_166 = arith.constant 1.000000e+00 : f32
    %751 = vector.broadcast %cst_166 : f32 to vector<2x32xf32>
    %752 = arith.addf %751, %750 : vector<2x32xf32>
    %753 = arith.divf %751, %752 : vector<2x32xf32>
    %754 = arith.negf %744 : vector<2x32xf32>
    %755 = math.exp %754 : vector<2x32xf32>
    %cst_167 = arith.constant 1.000000e+00 : f32
    %756 = vector.broadcast %cst_167 : f32 to vector<2x32xf32>
    %757 = arith.addf %756, %755 : vector<2x32xf32>
    %758 = arith.divf %756, %757 : vector<2x32xf32>
    %759 = math.tanh %746 : vector<2x32xf32>
    %760 = arith.negf %748 : vector<2x32xf32>
    %761 = math.exp %760 : vector<2x32xf32>
    %cst_168 = arith.constant 1.000000e+00 : f32
    %762 = vector.broadcast %cst_168 : f32 to vector<2x32xf32>
    %763 = arith.addf %762, %761 : vector<2x32xf32>
    %764 = arith.divf %762, %763 : vector<2x32xf32>
    %765 = arith.mulf %758, %697 : vector<2x32xf32>
    %766 = arith.mulf %753, %759 : vector<2x32xf32>
    %767 = arith.addf %765, %766 : vector<2x32xf32>
    %768 = math.tanh %767 : vector<2x32xf32>
    %769 = arith.mulf %764, %768 : vector<2x32xf32>
    %cst_169 = arith.constant dense<0.000000e+00> : vector<2x32xf32>
    %770 = tpu.matmul %769, %27, %cst_169 {dimension_numbers = #tpu.dot_dimension_numbers<[1], [0], [0], [1], [0, 0, 1, 1], [], []>} : vector<2x32xf32>, vector<32x32xf32>, vector<2x32xf32> -> vector<2x32xf32>
    %771 = arith.addf %731, %770 : vector<2x32xf32>
    %cst_170 = arith.constant dense<0.000000e+00> : vector<2x32xf32>
    %772 = tpu.matmul %769, %29, %cst_170 {dimension_numbers = #tpu.dot_dimension_numbers<[1], [0], [0], [1], [0, 0, 1, 1], [], []>} : vector<2x32xf32>, vector<32x32xf32>, vector<2x32xf32> -> vector<2x32xf32>
    %773 = arith.addf %734, %772 : vector<2x32xf32>
    %cst_171 = arith.constant dense<0.000000e+00> : vector<2x32xf32>
    %774 = tpu.matmul %769, %31, %cst_171 {dimension_numbers = #tpu.dot_dimension_numbers<[1], [0], [0], [1], [0, 0, 1, 1], [], []>} : vector<2x32xf32>, vector<32x32xf32>, vector<2x32xf32> -> vector<2x32xf32>
    %775 = arith.addf %737, %774 : vector<2x32xf32>
    %cst_172 = arith.constant dense<0.000000e+00> : vector<2x32xf32>
    %776 = tpu.matmul %769, %33, %cst_172 {dimension_numbers = #tpu.dot_dimension_numbers<[1], [0], [0], [1], [0, 0, 1, 1], [], []>} : vector<2x32xf32>, vector<32x32xf32>, vector<2x32xf32> -> vector<2x32xf32>
    %777 = arith.addf %740, %776 : vector<2x32xf32>
    %778 = arith.negf %771 : vector<2x32xf32>
    %779 = math.exp %778 : vector<2x32xf32>
    %cst_173 = arith.constant 1.000000e+00 : f32
    %780 = vector.broadcast %cst_173 : f32 to vector<2x32xf32>
    %781 = arith.addf %780, %779 : vector<2x32xf32>
    %782 = arith.divf %780, %781 : vector<2x32xf32>
    %783 = arith.negf %773 : vector<2x32xf32>
    %784 = math.exp %783 : vector<2x32xf32>
    %cst_174 = arith.constant 1.000000e+00 : f32
    %785 = vector.broadcast %cst_174 : f32 to vector<2x32xf32>
    %786 = arith.addf %785, %784 : vector<2x32xf32>
    %787 = arith.divf %785, %786 : vector<2x32xf32>
    %788 = math.tanh %775 : vector<2x32xf32>
    %789 = arith.negf %777 : vector<2x32xf32>
    %790 = math.exp %789 : vector<2x32xf32>
    %cst_175 = arith.constant 1.000000e+00 : f32
    %791 = vector.broadcast %cst_175 : f32 to vector<2x32xf32>
    %792 = arith.addf %791, %790 : vector<2x32xf32>
    %793 = arith.divf %791, %792 : vector<2x32xf32>
    %794 = arith.mulf %787, %726 : vector<2x32xf32>
    %795 = arith.mulf %782, %788 : vector<2x32xf32>
    %796 = arith.addf %794, %795 : vector<2x32xf32>
    %797 = math.tanh %796 : vector<2x32xf32>
    %798 = arith.mulf %793, %797 : vector<2x32xf32>
    %799 = tpu.concatenate %308, %378, %448, %518, %588, %658, %728, %798 in 0 : vector<2x32xf32>, vector<2x32xf32>, vector<2x32xf32>, vector<2x32xf32>, vector<2x32xf32>, vector<2x32xf32>, vector<2x32xf32>, vector<2x32xf32> -> vector<16x32xf32>
    %cst_176 = arith.constant dense<0.000000e+00> : vector<16x32xf32>
    %800 = tpu.matmul %799, %43, %cst_176 {dimension_numbers = #tpu.dot_dimension_numbers<[1], [0], [0], [1], [0, 0, 1, 1], [], []>} : vector<16x32xf32>, vector<32x32xf32>, vector<16x32xf32> -> vector<16x32xf32>
    %801 = vector.broadcast %14 : vector<1x32xf32> to vector<16x32xf32>
    %802 = arith.addf %800, %801 : vector<16x32xf32>
    %803 = math.tanh %802 : vector<16x32xf32>
    %cst_177 = arith.constant dense<0.000000e+00> : vector<16x32xf32>
    %804 = tpu.matmul %803, %45, %cst_177 {dimension_numbers = #tpu.dot_dimension_numbers<[1], [0], [0], [1], [0, 0, 1, 1], [], []>} : vector<16x32xf32>, vector<32x32xf32>, vector<16x32xf32> -> vector<16x32xf32>
    %805 = vector.broadcast %15 : vector<1x32xf32> to vector<16x32xf32>
    %806 = arith.addf %804, %805 : vector<16x32xf32>
    %cst_178 = arith.constant dense<0xFF800000> : vector<16xf32>
    %807 = vector.multi_reduction <maximumf>, %806, %cst_178 [1] : vector<16x32xf32> to vector<16xf32>
    %808 = vector.shape_cast %807 : vector<16xf32> to vector<16x1xf32>
    %809 = vector.broadcast %808 : vector<16x1xf32> to vector<16x32xf32>
    %810 = arith.subf %806, %809 : vector<16x32xf32>
    %811 = math.exp %810 : vector<16x32xf32>
    %812 = arith.mulf %811, %799 : vector<16x32xf32>
    %813 = vector.broadcast %16 : vector<1x32xf32> to vector<16x32xf32>
    %814 = arith.mulf %812, %813 : vector<16x32xf32>
    %cst_179 = arith.constant dense<0.000000e+00> : vector<16xf32>
    %815 = vector.multi_reduction <add>, %814, %cst_179 [1] : vector<16x32xf32> to vector<16xf32>
    %816 = vector.shape_cast %815 : vector<16xf32> to vector<16x1xf32>
    %cst_180 = arith.constant dense<0.000000e+00> : vector<16xf32>
    %817 = vector.multi_reduction <add>, %811, %cst_180 [1] : vector<16x32xf32> to vector<16xf32>
    %818 = vector.shape_cast %817 : vector<16xf32> to vector<16x1xf32>
    %819 = tpu.reciprocal %818 : vector<16x1xf32> -> vector<16x1xf32>
    %820 = arith.mulf %816, %819 : vector<16x1xf32>
    %821 = vector.broadcast %17 : vector<1x1xf32> to vector<16x1xf32>
    %822 = arith.addf %820, %821 : vector<16x1xf32>
    %823 = vector.extract_strided_slice %822 {offsets = [0, 0], sizes = [2, 1], strides = [1, 1]} : vector<16x1xf32> to vector<2x1xf32>
    %824 = vector.extract_strided_slice %822 {offsets = [2, 0], sizes = [2, 1], strides = [1, 1]} : vector<16x1xf32> to vector<2x1xf32>
    %825 = vector.extract_strided_slice %822 {offsets = [4, 0], sizes = [2, 1], strides = [1, 1]} : vector<16x1xf32> to vector<2x1xf32>
    %826 = vector.extract_strided_slice %822 {offsets = [6, 0], sizes = [2, 1], strides = [1, 1]} : vector<16x1xf32> to vector<2x1xf32>
    %827 = vector.extract_strided_slice %822 {offsets = [8, 0], sizes = [2, 1], strides = [1, 1]} : vector<16x1xf32> to vector<2x1xf32>
    %828 = vector.extract_strided_slice %822 {offsets = [10, 0], sizes = [2, 1], strides = [1, 1]} : vector<16x1xf32> to vector<2x1xf32>
    %829 = vector.extract_strided_slice %822 {offsets = [12, 0], sizes = [2, 1], strides = [1, 1]} : vector<16x1xf32> to vector<2x1xf32>
    %830 = vector.extract_strided_slice %822 {offsets = [14, 0], sizes = [2, 1], strides = [1, 1]} : vector<16x1xf32> to vector<2x1xf32>
    %831 = vector.broadcast %830 : vector<2x1xf32> to vector<2x32xf32>
    %832 = vector.broadcast %2 : vector<1x32xf32> to vector<2x32xf32>
    %833 = arith.mulf %831, %832 : vector<2x32xf32>
    %834 = vector.broadcast %6 : vector<1x32xf32> to vector<2x32xf32>
    %835 = arith.addf %833, %834 : vector<2x32xf32>
    %836 = vector.broadcast %830 : vector<2x1xf32> to vector<2x32xf32>
    %837 = vector.broadcast %3 : vector<1x32xf32> to vector<2x32xf32>
    %838 = arith.mulf %836, %837 : vector<2x32xf32>
    %839 = vector.broadcast %7 : vector<1x32xf32> to vector<2x32xf32>
    %840 = arith.addf %838, %839 : vector<2x32xf32>
    %841 = vector.broadcast %830 : vector<2x1xf32> to vector<2x32xf32>
    %842 = vector.broadcast %4 : vector<1x32xf32> to vector<2x32xf32>
    %843 = arith.mulf %841, %842 : vector<2x32xf32>
    %844 = vector.broadcast %8 : vector<1x32xf32> to vector<2x32xf32>
    %845 = arith.addf %843, %844 : vector<2x32xf32>
    %846 = vector.broadcast %830 : vector<2x1xf32> to vector<2x32xf32>
    %847 = vector.broadcast %5 : vector<1x32xf32> to vector<2x32xf32>
    %848 = arith.mulf %846, %847 : vector<2x32xf32>
    %849 = vector.broadcast %9 : vector<1x32xf32> to vector<2x32xf32>
    %850 = arith.addf %848, %849 : vector<2x32xf32>
    %cst_181 = arith.constant dense<0.000000e+00> : vector<2x32xf32>
    %851 = tpu.matmul %798, %35, %cst_181 {dimension_numbers = #tpu.dot_dimension_numbers<[1], [0], [0], [1], [0, 0, 1, 1], [], []>} : vector<2x32xf32>, vector<32x32xf32>, vector<2x32xf32> -> vector<2x32xf32>
    %852 = vector.broadcast %10 : vector<1x32xf32> to vector<2x32xf32>
    %853 = arith.addf %851, %852 : vector<2x32xf32>
    %cst_182 = arith.constant dense<0.000000e+00> : vector<2x32xf32>
    %854 = tpu.matmul %798, %37, %cst_182 {dimension_numbers = #tpu.dot_dimension_numbers<[1], [0], [0], [1], [0, 0, 1, 1], [], []>} : vector<2x32xf32>, vector<32x32xf32>, vector<2x32xf32> -> vector<2x32xf32>
    %855 = vector.broadcast %11 : vector<1x32xf32> to vector<2x32xf32>
    %856 = arith.addf %854, %855 : vector<2x32xf32>
    %cst_183 = arith.constant dense<0.000000e+00> : vector<2x32xf32>
    %857 = tpu.matmul %798, %39, %cst_183 {dimension_numbers = #tpu.dot_dimension_numbers<[1], [0], [0], [1], [0, 0, 1, 1], [], []>} : vector<2x32xf32>, vector<32x32xf32>, vector<2x32xf32> -> vector<2x32xf32>
    %858 = vector.broadcast %12 : vector<1x32xf32> to vector<2x32xf32>
    %859 = arith.addf %857, %858 : vector<2x32xf32>
    %cst_184 = arith.constant dense<0.000000e+00> : vector<2x32xf32>
    %860 = tpu.matmul %798, %41, %cst_184 {dimension_numbers = #tpu.dot_dimension_numbers<[1], [0], [0], [1], [0, 0, 1, 1], [], []>} : vector<2x32xf32>, vector<32x32xf32>, vector<2x32xf32> -> vector<2x32xf32>
    %861 = vector.broadcast %13 : vector<1x32xf32> to vector<2x32xf32>
    %862 = arith.addf %860, %861 : vector<2x32xf32>
    %cst_185 = arith.constant dense<0.000000e+00> : vector<2x32xf32>
    %863 = tpu.matmul %769, %19, %cst_185 {dimension_numbers = #tpu.dot_dimension_numbers<[1], [0], [0], [1], [0, 0, 1, 1], [], []>} : vector<2x32xf32>, vector<32x32xf32>, vector<2x32xf32> -> vector<2x32xf32>
    %864 = arith.addf %835, %863 : vector<2x32xf32>
    %cst_186 = arith.constant dense<0.000000e+00> : vector<2x32xf32>
    %865 = tpu.matmul %769, %21, %cst_186 {dimension_numbers = #tpu.dot_dimension_numbers<[1], [0], [0], [1], [0, 0, 1, 1], [], []>} : vector<2x32xf32>, vector<32x32xf32>, vector<2x32xf32> -> vector<2x32xf32>
    %866 = arith.addf %840, %865 : vector<2x32xf32>
    %cst_187 = arith.constant dense<0.000000e+00> : vector<2x32xf32>
    %867 = tpu.matmul %769, %23, %cst_187 {dimension_numbers = #tpu.dot_dimension_numbers<[1], [0], [0], [1], [0, 0, 1, 1], [], []>} : vector<2x32xf32>, vector<32x32xf32>, vector<2x32xf32> -> vector<2x32xf32>
    %868 = arith.addf %845, %867 : vector<2x32xf32>
    %cst_188 = arith.constant dense<0.000000e+00> : vector<2x32xf32>
    %869 = tpu.matmul %769, %25, %cst_188 {dimension_numbers = #tpu.dot_dimension_numbers<[1], [0], [0], [1], [0, 0, 1, 1], [], []>} : vector<2x32xf32>, vector<32x32xf32>, vector<2x32xf32> -> vector<2x32xf32>
    %870 = arith.addf %850, %869 : vector<2x32xf32>
    %871 = arith.negf %864 : vector<2x32xf32>
    %872 = math.exp %871 : vector<2x32xf32>
    %cst_189 = arith.constant 1.000000e+00 : f32
    %873 = vector.broadcast %cst_189 : f32 to vector<2x32xf32>
    %874 = arith.addf %873, %872 : vector<2x32xf32>
    %875 = arith.divf %873, %874 : vector<2x32xf32>
    %876 = arith.negf %866 : vector<2x32xf32>
    %877 = math.exp %876 : vector<2x32xf32>
    %cst_190 = arith.constant 1.000000e+00 : f32
    %878 = vector.broadcast %cst_190 : f32 to vector<2x32xf32>
    %879 = arith.addf %878, %877 : vector<2x32xf32>
    %880 = arith.divf %878, %879 : vector<2x32xf32>
    %881 = math.tanh %868 : vector<2x32xf32>
    %882 = arith.negf %870 : vector<2x32xf32>
    %883 = math.exp %882 : vector<2x32xf32>
    %cst_191 = arith.constant 1.000000e+00 : f32
    %884 = vector.broadcast %cst_191 : f32 to vector<2x32xf32>
    %885 = arith.addf %884, %883 : vector<2x32xf32>
    %886 = arith.divf %884, %885 : vector<2x32xf32>
    %887 = arith.mulf %880, %767 : vector<2x32xf32>
    %888 = arith.mulf %875, %881 : vector<2x32xf32>
    %889 = arith.addf %887, %888 : vector<2x32xf32>
    %890 = math.tanh %889 : vector<2x32xf32>
    %891 = arith.mulf %886, %890 : vector<2x32xf32>
    %cst_192 = arith.constant dense<0.000000e+00> : vector<2x32xf32>
    %892 = tpu.matmul %891, %27, %cst_192 {dimension_numbers = #tpu.dot_dimension_numbers<[1], [0], [0], [1], [0, 0, 1, 1], [], []>} : vector<2x32xf32>, vector<32x32xf32>, vector<2x32xf32> -> vector<2x32xf32>
    %893 = arith.addf %853, %892 : vector<2x32xf32>
    %cst_193 = arith.constant dense<0.000000e+00> : vector<2x32xf32>
    %894 = tpu.matmul %891, %29, %cst_193 {dimension_numbers = #tpu.dot_dimension_numbers<[1], [0], [0], [1], [0, 0, 1, 1], [], []>} : vector<2x32xf32>, vector<32x32xf32>, vector<2x32xf32> -> vector<2x32xf32>
    %895 = arith.addf %856, %894 : vector<2x32xf32>
    %cst_194 = arith.constant dense<0.000000e+00> : vector<2x32xf32>
    %896 = tpu.matmul %891, %31, %cst_194 {dimension_numbers = #tpu.dot_dimension_numbers<[1], [0], [0], [1], [0, 0, 1, 1], [], []>} : vector<2x32xf32>, vector<32x32xf32>, vector<2x32xf32> -> vector<2x32xf32>
    %897 = arith.addf %859, %896 : vector<2x32xf32>
    %cst_195 = arith.constant dense<0.000000e+00> : vector<2x32xf32>
    %898 = tpu.matmul %891, %33, %cst_195 {dimension_numbers = #tpu.dot_dimension_numbers<[1], [0], [0], [1], [0, 0, 1, 1], [], []>} : vector<2x32xf32>, vector<32x32xf32>, vector<2x32xf32> -> vector<2x32xf32>
    %899 = arith.addf %862, %898 : vector<2x32xf32>
    %900 = arith.negf %893 : vector<2x32xf32>
    %901 = math.exp %900 : vector<2x32xf32>
    %cst_196 = arith.constant 1.000000e+00 : f32
    %902 = vector.broadcast %cst_196 : f32 to vector<2x32xf32>
    %903 = arith.addf %902, %901 : vector<2x32xf32>
    %904 = arith.divf %902, %903 : vector<2x32xf32>
    %905 = arith.negf %895 : vector<2x32xf32>
    %906 = math.exp %905 : vector<2x32xf32>
    %cst_197 = arith.constant 1.000000e+00 : f32
    %907 = vector.broadcast %cst_197 : f32 to vector<2x32xf32>
    %908 = arith.addf %907, %906 : vector<2x32xf32>
    %909 = arith.divf %907, %908 : vector<2x32xf32>
    %910 = math.tanh %897 : vector<2x32xf32>
    %911 = arith.negf %899 : vector<2x32xf32>
    %912 = math.exp %911 : vector<2x32xf32>
    %cst_198 = arith.constant 1.000000e+00 : f32
    %913 = vector.broadcast %cst_198 : f32 to vector<2x32xf32>
    %914 = arith.addf %913, %912 : vector<2x32xf32>
    %915 = arith.divf %913, %914 : vector<2x32xf32>
    %916 = arith.mulf %909, %796 : vector<2x32xf32>
    %917 = arith.mulf %904, %910 : vector<2x32xf32>
    %918 = arith.addf %916, %917 : vector<2x32xf32>
    %919 = math.tanh %918 : vector<2x32xf32>
    %920 = arith.mulf %915, %919 : vector<2x32xf32>
    %cst_199 = arith.constant dense<0.000000e+00> : vector<2x32xf32>
    %921 = tpu.matmul %920, %43, %cst_199 {dimension_numbers = #tpu.dot_dimension_numbers<[1], [0], [0], [1], [0, 0, 1, 1], [], []>} : vector<2x32xf32>, vector<32x32xf32>, vector<2x32xf32> -> vector<2x32xf32>
    %922 = vector.broadcast %14 : vector<1x32xf32> to vector<2x32xf32>
    %923 = arith.addf %921, %922 : vector<2x32xf32>
    %924 = math.tanh %923 : vector<2x32xf32>
    %cst_200 = arith.constant dense<0.000000e+00> : vector<2x32xf32>
    %925 = tpu.matmul %924, %45, %cst_200 {dimension_numbers = #tpu.dot_dimension_numbers<[1], [0], [0], [1], [0, 0, 1, 1], [], []>} : vector<2x32xf32>, vector<32x32xf32>, vector<2x32xf32> -> vector<2x32xf32>
    %926 = vector.broadcast %15 : vector<1x32xf32> to vector<2x32xf32>
    %927 = arith.addf %925, %926 : vector<2x32xf32>
    %cst_201 = arith.constant dense<0xFF800000> : vector<2xf32>
    %928 = vector.multi_reduction <maximumf>, %927, %cst_201 [1] : vector<2x32xf32> to vector<2xf32>
    %929 = vector.shape_cast %928 : vector<2xf32> to vector<2x1xf32>
    %930 = vector.broadcast %929 : vector<2x1xf32> to vector<2x32xf32>
    %931 = arith.subf %927, %930 : vector<2x32xf32>
    %932 = math.exp %931 : vector<2x32xf32>
    %933 = arith.mulf %932, %920 : vector<2x32xf32>
    %934 = vector.broadcast %16 : vector<1x32xf32> to vector<2x32xf32>
    %935 = arith.mulf %933, %934 : vector<2x32xf32>
    %cst_202 = arith.constant dense<0.000000e+00> : vector<2xf32>
    %936 = vector.multi_reduction <add>, %935, %cst_202 [1] : vector<2x32xf32> to vector<2xf32>
    %937 = vector.shape_cast %936 : vector<2xf32> to vector<2x1xf32>
    %cst_203 = arith.constant dense<0.000000e+00> : vector<2xf32>
    %938 = vector.multi_reduction <add>, %932, %cst_203 [1] : vector<2x32xf32> to vector<2xf32>
    %939 = vector.shape_cast %938 : vector<2xf32> to vector<2x1xf32>
    %940 = tpu.reciprocal %939 : vector<2x1xf32> -> vector<2x1xf32>
    %941 = arith.mulf %937, %940 : vector<2x1xf32>
    %942 = vector.broadcast %17 : vector<1x1xf32> to vector<2x1xf32>
    %943 = arith.addf %941, %942 : vector<2x1xf32>
    %944 = vector.broadcast %943 : vector<2x1xf32> to vector<2x32xf32>
    %945 = vector.broadcast %2 : vector<1x32xf32> to vector<2x32xf32>
    %946 = arith.mulf %944, %945 : vector<2x32xf32>
    %947 = vector.broadcast %6 : vector<1x32xf32> to vector<2x32xf32>
    %948 = arith.addf %946, %947 : vector<2x32xf32>
    %949 = vector.broadcast %943 : vector<2x1xf32> to vector<2x32xf32>
    %950 = vector.broadcast %3 : vector<1x32xf32> to vector<2x32xf32>
    %951 = arith.mulf %949, %950 : vector<2x32xf32>
    %952 = vector.broadcast %7 : vector<1x32xf32> to vector<2x32xf32>
    %953 = arith.addf %951, %952 : vector<2x32xf32>
    %954 = vector.broadcast %943 : vector<2x1xf32> to vector<2x32xf32>
    %955 = vector.broadcast %4 : vector<1x32xf32> to vector<2x32xf32>
    %956 = arith.mulf %954, %955 : vector<2x32xf32>
    %957 = vector.broadcast %8 : vector<1x32xf32> to vector<2x32xf32>
    %958 = arith.addf %956, %957 : vector<2x32xf32>
    %959 = vector.broadcast %943 : vector<2x1xf32> to vector<2x32xf32>
    %960 = vector.broadcast %5 : vector<1x32xf32> to vector<2x32xf32>
    %961 = arith.mulf %959, %960 : vector<2x32xf32>
    %962 = vector.broadcast %9 : vector<1x32xf32> to vector<2x32xf32>
    %963 = arith.addf %961, %962 : vector<2x32xf32>
    %cst_204 = arith.constant dense<0.000000e+00> : vector<2x32xf32>
    %964 = tpu.matmul %920, %35, %cst_204 {dimension_numbers = #tpu.dot_dimension_numbers<[1], [0], [0], [1], [0, 0, 1, 1], [], []>} : vector<2x32xf32>, vector<32x32xf32>, vector<2x32xf32> -> vector<2x32xf32>
    %965 = vector.broadcast %10 : vector<1x32xf32> to vector<2x32xf32>
    %966 = arith.addf %964, %965 : vector<2x32xf32>
    %cst_205 = arith.constant dense<0.000000e+00> : vector<2x32xf32>
    %967 = tpu.matmul %920, %37, %cst_205 {dimension_numbers = #tpu.dot_dimension_numbers<[1], [0], [0], [1], [0, 0, 1, 1], [], []>} : vector<2x32xf32>, vector<32x32xf32>, vector<2x32xf32> -> vector<2x32xf32>
    %968 = vector.broadcast %11 : vector<1x32xf32> to vector<2x32xf32>
    %969 = arith.addf %967, %968 : vector<2x32xf32>
    %cst_206 = arith.constant dense<0.000000e+00> : vector<2x32xf32>
    %970 = tpu.matmul %920, %39, %cst_206 {dimension_numbers = #tpu.dot_dimension_numbers<[1], [0], [0], [1], [0, 0, 1, 1], [], []>} : vector<2x32xf32>, vector<32x32xf32>, vector<2x32xf32> -> vector<2x32xf32>
    %971 = vector.broadcast %12 : vector<1x32xf32> to vector<2x32xf32>
    %972 = arith.addf %970, %971 : vector<2x32xf32>
    %cst_207 = arith.constant dense<0.000000e+00> : vector<2x32xf32>
    %973 = tpu.matmul %920, %41, %cst_207 {dimension_numbers = #tpu.dot_dimension_numbers<[1], [0], [0], [1], [0, 0, 1, 1], [], []>} : vector<2x32xf32>, vector<32x32xf32>, vector<2x32xf32> -> vector<2x32xf32>
    %974 = vector.broadcast %13 : vector<1x32xf32> to vector<2x32xf32>
    %975 = arith.addf %973, %974 : vector<2x32xf32>
    %cst_208 = arith.constant dense<0.000000e+00> : vector<2x32xf32>
    %976 = tpu.matmul %891, %19, %cst_208 {dimension_numbers = #tpu.dot_dimension_numbers<[1], [0], [0], [1], [0, 0, 1, 1], [], []>} : vector<2x32xf32>, vector<32x32xf32>, vector<2x32xf32> -> vector<2x32xf32>
    %977 = arith.addf %948, %976 : vector<2x32xf32>
    %cst_209 = arith.constant dense<0.000000e+00> : vector<2x32xf32>
    %978 = tpu.matmul %891, %21, %cst_209 {dimension_numbers = #tpu.dot_dimension_numbers<[1], [0], [0], [1], [0, 0, 1, 1], [], []>} : vector<2x32xf32>, vector<32x32xf32>, vector<2x32xf32> -> vector<2x32xf32>
    %979 = arith.addf %953, %978 : vector<2x32xf32>
    %cst_210 = arith.constant dense<0.000000e+00> : vector<2x32xf32>
    %980 = tpu.matmul %891, %23, %cst_210 {dimension_numbers = #tpu.dot_dimension_numbers<[1], [0], [0], [1], [0, 0, 1, 1], [], []>} : vector<2x32xf32>, vector<32x32xf32>, vector<2x32xf32> -> vector<2x32xf32>
    %981 = arith.addf %958, %980 : vector<2x32xf32>
    %cst_211 = arith.constant dense<0.000000e+00> : vector<2x32xf32>
    %982 = tpu.matmul %891, %25, %cst_211 {dimension_numbers = #tpu.dot_dimension_numbers<[1], [0], [0], [1], [0, 0, 1, 1], [], []>} : vector<2x32xf32>, vector<32x32xf32>, vector<2x32xf32> -> vector<2x32xf32>
    %983 = arith.addf %963, %982 : vector<2x32xf32>
    %984 = arith.negf %977 : vector<2x32xf32>
    %985 = math.exp %984 : vector<2x32xf32>
    %cst_212 = arith.constant 1.000000e+00 : f32
    %986 = vector.broadcast %cst_212 : f32 to vector<2x32xf32>
    %987 = arith.addf %986, %985 : vector<2x32xf32>
    %988 = arith.divf %986, %987 : vector<2x32xf32>
    %989 = arith.negf %979 : vector<2x32xf32>
    %990 = math.exp %989 : vector<2x32xf32>
    %cst_213 = arith.constant 1.000000e+00 : f32
    %991 = vector.broadcast %cst_213 : f32 to vector<2x32xf32>
    %992 = arith.addf %991, %990 : vector<2x32xf32>
    %993 = arith.divf %991, %992 : vector<2x32xf32>
    %994 = math.tanh %981 : vector<2x32xf32>
    %995 = arith.negf %983 : vector<2x32xf32>
    %996 = math.exp %995 : vector<2x32xf32>
    %cst_214 = arith.constant 1.000000e+00 : f32
    %997 = vector.broadcast %cst_214 : f32 to vector<2x32xf32>
    %998 = arith.addf %997, %996 : vector<2x32xf32>
    %999 = arith.divf %997, %998 : vector<2x32xf32>
    %1000 = arith.mulf %993, %889 : vector<2x32xf32>
    %1001 = arith.mulf %988, %994 : vector<2x32xf32>
    %1002 = arith.addf %1000, %1001 : vector<2x32xf32>
    %1003 = math.tanh %1002 : vector<2x32xf32>
    %1004 = arith.mulf %999, %1003 : vector<2x32xf32>
    %cst_215 = arith.constant dense<0.000000e+00> : vector<2x32xf32>
    %1005 = tpu.matmul %1004, %27, %cst_215 {dimension_numbers = #tpu.dot_dimension_numbers<[1], [0], [0], [1], [0, 0, 1, 1], [], []>} : vector<2x32xf32>, vector<32x32xf32>, vector<2x32xf32> -> vector<2x32xf32>
    %1006 = arith.addf %966, %1005 : vector<2x32xf32>
    %cst_216 = arith.constant dense<0.000000e+00> : vector<2x32xf32>
    %1007 = tpu.matmul %1004, %29, %cst_216 {dimension_numbers = #tpu.dot_dimension_numbers<[1], [0], [0], [1], [0, 0, 1, 1], [], []>} : vector<2x32xf32>, vector<32x32xf32>, vector<2x32xf32> -> vector<2x32xf32>
    %1008 = arith.addf %969, %1007 : vector<2x32xf32>
    %cst_217 = arith.constant dense<0.000000e+00> : vector<2x32xf32>
    %1009 = tpu.matmul %1004, %31, %cst_217 {dimension_numbers = #tpu.dot_dimension_numbers<[1], [0], [0], [1], [0, 0, 1, 1], [], []>} : vector<2x32xf32>, vector<32x32xf32>, vector<2x32xf32> -> vector<2x32xf32>
    %1010 = arith.addf %972, %1009 : vector<2x32xf32>
    %cst_218 = arith.constant dense<0.000000e+00> : vector<2x32xf32>
    %1011 = tpu.matmul %1004, %33, %cst_218 {dimension_numbers = #tpu.dot_dimension_numbers<[1], [0], [0], [1], [0, 0, 1, 1], [], []>} : vector<2x32xf32>, vector<32x32xf32>, vector<2x32xf32> -> vector<2x32xf32>
    %1012 = arith.addf %975, %1011 : vector<2x32xf32>
    %1013 = arith.negf %1006 : vector<2x32xf32>
    %1014 = math.exp %1013 : vector<2x32xf32>
    %cst_219 = arith.constant 1.000000e+00 : f32
    %1015 = vector.broadcast %cst_219 : f32 to vector<2x32xf32>
    %1016 = arith.addf %1015, %1014 : vector<2x32xf32>
    %1017 = arith.divf %1015, %1016 : vector<2x32xf32>
    %1018 = arith.negf %1008 : vector<2x32xf32>
    %1019 = math.exp %1018 : vector<2x32xf32>
    %cst_220 = arith.constant 1.000000e+00 : f32
    %1020 = vector.broadcast %cst_220 : f32 to vector<2x32xf32>
    %1021 = arith.addf %1020, %1019 : vector<2x32xf32>
    %1022 = arith.divf %1020, %1021 : vector<2x32xf32>
    %1023 = math.tanh %1010 : vector<2x32xf32>
    %1024 = arith.negf %1012 : vector<2x32xf32>
    %1025 = math.exp %1024 : vector<2x32xf32>
    %cst_221 = arith.constant 1.000000e+00 : f32
    %1026 = vector.broadcast %cst_221 : f32 to vector<2x32xf32>
    %1027 = arith.addf %1026, %1025 : vector<2x32xf32>
    %1028 = arith.divf %1026, %1027 : vector<2x32xf32>
    %1029 = arith.mulf %1022, %918 : vector<2x32xf32>
    %1030 = arith.mulf %1017, %1023 : vector<2x32xf32>
    %1031 = arith.addf %1029, %1030 : vector<2x32xf32>
    %1032 = math.tanh %1031 : vector<2x32xf32>
    %1033 = arith.mulf %1028, %1032 : vector<2x32xf32>
    %cst_222 = arith.constant dense<0.000000e+00> : vector<2x32xf32>
    %1034 = tpu.matmul %1033, %43, %cst_222 {dimension_numbers = #tpu.dot_dimension_numbers<[1], [0], [0], [1], [0, 0, 1, 1], [], []>} : vector<2x32xf32>, vector<32x32xf32>, vector<2x32xf32> -> vector<2x32xf32>
    %1035 = vector.broadcast %14 : vector<1x32xf32> to vector<2x32xf32>
    %1036 = arith.addf %1034, %1035 : vector<2x32xf32>
    %1037 = math.tanh %1036 : vector<2x32xf32>
    %cst_223 = arith.constant dense<0.000000e+00> : vector<2x32xf32>
    %1038 = tpu.matmul %1037, %45, %cst_223 {dimension_numbers = #tpu.dot_dimension_numbers<[1], [0], [0], [1], [0, 0, 1, 1], [], []>} : vector<2x32xf32>, vector<32x32xf32>, vector<2x32xf32> -> vector<2x32xf32>
    %1039 = vector.broadcast %15 : vector<1x32xf32> to vector<2x32xf32>
    %1040 = arith.addf %1038, %1039 : vector<2x32xf32>
    %cst_224 = arith.constant dense<0xFF800000> : vector<2xf32>
    %1041 = vector.multi_reduction <maximumf>, %1040, %cst_224 [1] : vector<2x32xf32> to vector<2xf32>
    %1042 = vector.shape_cast %1041 : vector<2xf32> to vector<2x1xf32>
    %1043 = vector.broadcast %1042 : vector<2x1xf32> to vector<2x32xf32>
    %1044 = arith.subf %1040, %1043 : vector<2x32xf32>
    %1045 = math.exp %1044 : vector<2x32xf32>
    %1046 = arith.mulf %1045, %1033 : vector<2x32xf32>
    %1047 = vector.broadcast %16 : vector<1x32xf32> to vector<2x32xf32>
    %1048 = arith.mulf %1046, %1047 : vector<2x32xf32>
    %cst_225 = arith.constant dense<0.000000e+00> : vector<2xf32>
    %1049 = vector.multi_reduction <add>, %1048, %cst_225 [1] : vector<2x32xf32> to vector<2xf32>
    %1050 = vector.shape_cast %1049 : vector<2xf32> to vector<2x1xf32>
    %cst_226 = arith.constant dense<0.000000e+00> : vector<2xf32>
    %1051 = vector.multi_reduction <add>, %1045, %cst_226 [1] : vector<2x32xf32> to vector<2xf32>
    %1052 = vector.shape_cast %1051 : vector<2xf32> to vector<2x1xf32>
    %1053 = tpu.reciprocal %1052 : vector<2x1xf32> -> vector<2x1xf32>
    %1054 = arith.mulf %1050, %1053 : vector<2x1xf32>
    %1055 = vector.broadcast %17 : vector<1x1xf32> to vector<2x1xf32>
    %1056 = arith.addf %1054, %1055 : vector<2x1xf32>
    %1057 = vector.broadcast %1056 : vector<2x1xf32> to vector<2x32xf32>
    %1058 = vector.broadcast %2 : vector<1x32xf32> to vector<2x32xf32>
    %1059 = arith.mulf %1057, %1058 : vector<2x32xf32>
    %1060 = vector.broadcast %6 : vector<1x32xf32> to vector<2x32xf32>
    %1061 = arith.addf %1059, %1060 : vector<2x32xf32>
    %1062 = vector.broadcast %1056 : vector<2x1xf32> to vector<2x32xf32>
    %1063 = vector.broadcast %3 : vector<1x32xf32> to vector<2x32xf32>
    %1064 = arith.mulf %1062, %1063 : vector<2x32xf32>
    %1065 = vector.broadcast %7 : vector<1x32xf32> to vector<2x32xf32>
    %1066 = arith.addf %1064, %1065 : vector<2x32xf32>
    %1067 = vector.broadcast %1056 : vector<2x1xf32> to vector<2x32xf32>
    %1068 = vector.broadcast %4 : vector<1x32xf32> to vector<2x32xf32>
    %1069 = arith.mulf %1067, %1068 : vector<2x32xf32>
    %1070 = vector.broadcast %8 : vector<1x32xf32> to vector<2x32xf32>
    %1071 = arith.addf %1069, %1070 : vector<2x32xf32>
    %1072 = vector.broadcast %1056 : vector<2x1xf32> to vector<2x32xf32>
    %1073 = vector.broadcast %5 : vector<1x32xf32> to vector<2x32xf32>
    %1074 = arith.mulf %1072, %1073 : vector<2x32xf32>
    %1075 = vector.broadcast %9 : vector<1x32xf32> to vector<2x32xf32>
    %1076 = arith.addf %1074, %1075 : vector<2x32xf32>
    %cst_227 = arith.constant dense<0.000000e+00> : vector<2x32xf32>
    %1077 = tpu.matmul %1033, %35, %cst_227 {dimension_numbers = #tpu.dot_dimension_numbers<[1], [0], [0], [1], [0, 0, 1, 1], [], []>} : vector<2x32xf32>, vector<32x32xf32>, vector<2x32xf32> -> vector<2x32xf32>
    %1078 = vector.broadcast %10 : vector<1x32xf32> to vector<2x32xf32>
    %1079 = arith.addf %1077, %1078 : vector<2x32xf32>
    %cst_228 = arith.constant dense<0.000000e+00> : vector<2x32xf32>
    %1080 = tpu.matmul %1033, %37, %cst_228 {dimension_numbers = #tpu.dot_dimension_numbers<[1], [0], [0], [1], [0, 0, 1, 1], [], []>} : vector<2x32xf32>, vector<32x32xf32>, vector<2x32xf32> -> vector<2x32xf32>
    %1081 = vector.broadcast %11 : vector<1x32xf32> to vector<2x32xf32>
    %1082 = arith.addf %1080, %1081 : vector<2x32xf32>
    %cst_229 = arith.constant dense<0.000000e+00> : vector<2x32xf32>
    %1083 = tpu.matmul %1033, %39, %cst_229 {dimension_numbers = #tpu.dot_dimension_numbers<[1], [0], [0], [1], [0, 0, 1, 1], [], []>} : vector<2x32xf32>, vector<32x32xf32>, vector<2x32xf32> -> vector<2x32xf32>
    %1084 = vector.broadcast %12 : vector<1x32xf32> to vector<2x32xf32>
    %1085 = arith.addf %1083, %1084 : vector<2x32xf32>
    %cst_230 = arith.constant dense<0.000000e+00> : vector<2x32xf32>
    %1086 = tpu.matmul %1033, %41, %cst_230 {dimension_numbers = #tpu.dot_dimension_numbers<[1], [0], [0], [1], [0, 0, 1, 1], [], []>} : vector<2x32xf32>, vector<32x32xf32>, vector<2x32xf32> -> vector<2x32xf32>
    %1087 = vector.broadcast %13 : vector<1x32xf32> to vector<2x32xf32>
    %1088 = arith.addf %1086, %1087 : vector<2x32xf32>
    %cst_231 = arith.constant dense<0.000000e+00> : vector<2x32xf32>
    %1089 = tpu.matmul %1004, %19, %cst_231 {dimension_numbers = #tpu.dot_dimension_numbers<[1], [0], [0], [1], [0, 0, 1, 1], [], []>} : vector<2x32xf32>, vector<32x32xf32>, vector<2x32xf32> -> vector<2x32xf32>
    %1090 = arith.addf %1061, %1089 : vector<2x32xf32>
    %cst_232 = arith.constant dense<0.000000e+00> : vector<2x32xf32>
    %1091 = tpu.matmul %1004, %21, %cst_232 {dimension_numbers = #tpu.dot_dimension_numbers<[1], [0], [0], [1], [0, 0, 1, 1], [], []>} : vector<2x32xf32>, vector<32x32xf32>, vector<2x32xf32> -> vector<2x32xf32>
    %1092 = arith.addf %1066, %1091 : vector<2x32xf32>
    %cst_233 = arith.constant dense<0.000000e+00> : vector<2x32xf32>
    %1093 = tpu.matmul %1004, %23, %cst_233 {dimension_numbers = #tpu.dot_dimension_numbers<[1], [0], [0], [1], [0, 0, 1, 1], [], []>} : vector<2x32xf32>, vector<32x32xf32>, vector<2x32xf32> -> vector<2x32xf32>
    %1094 = arith.addf %1071, %1093 : vector<2x32xf32>
    %cst_234 = arith.constant dense<0.000000e+00> : vector<2x32xf32>
    %1095 = tpu.matmul %1004, %25, %cst_234 {dimension_numbers = #tpu.dot_dimension_numbers<[1], [0], [0], [1], [0, 0, 1, 1], [], []>} : vector<2x32xf32>, vector<32x32xf32>, vector<2x32xf32> -> vector<2x32xf32>
    %1096 = arith.addf %1076, %1095 : vector<2x32xf32>
    %1097 = arith.negf %1090 : vector<2x32xf32>
    %1098 = math.exp %1097 : vector<2x32xf32>
    %cst_235 = arith.constant 1.000000e+00 : f32
    %1099 = vector.broadcast %cst_235 : f32 to vector<2x32xf32>
    %1100 = arith.addf %1099, %1098 : vector<2x32xf32>
    %1101 = arith.divf %1099, %1100 : vector<2x32xf32>
    %1102 = arith.negf %1092 : vector<2x32xf32>
    %1103 = math.exp %1102 : vector<2x32xf32>
    %cst_236 = arith.constant 1.000000e+00 : f32
    %1104 = vector.broadcast %cst_236 : f32 to vector<2x32xf32>
    %1105 = arith.addf %1104, %1103 : vector<2x32xf32>
    %1106 = arith.divf %1104, %1105 : vector<2x32xf32>
    %1107 = math.tanh %1094 : vector<2x32xf32>
    %1108 = arith.negf %1096 : vector<2x32xf32>
    %1109 = math.exp %1108 : vector<2x32xf32>
    %cst_237 = arith.constant 1.000000e+00 : f32
    %1110 = vector.broadcast %cst_237 : f32 to vector<2x32xf32>
    %1111 = arith.addf %1110, %1109 : vector<2x32xf32>
    %1112 = arith.divf %1110, %1111 : vector<2x32xf32>
    %1113 = arith.mulf %1106, %1002 : vector<2x32xf32>
    %1114 = arith.mulf %1101, %1107 : vector<2x32xf32>
    %1115 = arith.addf %1113, %1114 : vector<2x32xf32>
    %1116 = math.tanh %1115 : vector<2x32xf32>
    %1117 = arith.mulf %1112, %1116 : vector<2x32xf32>
    %cst_238 = arith.constant dense<0.000000e+00> : vector<2x32xf32>
    %1118 = tpu.matmul %1117, %27, %cst_238 {dimension_numbers = #tpu.dot_dimension_numbers<[1], [0], [0], [1], [0, 0, 1, 1], [], []>} : vector<2x32xf32>, vector<32x32xf32>, vector<2x32xf32> -> vector<2x32xf32>
    %1119 = arith.addf %1079, %1118 : vector<2x32xf32>
    %cst_239 = arith.constant dense<0.000000e+00> : vector<2x32xf32>
    %1120 = tpu.matmul %1117, %29, %cst_239 {dimension_numbers = #tpu.dot_dimension_numbers<[1], [0], [0], [1], [0, 0, 1, 1], [], []>} : vector<2x32xf32>, vector<32x32xf32>, vector<2x32xf32> -> vector<2x32xf32>
    %1121 = arith.addf %1082, %1120 : vector<2x32xf32>
    %cst_240 = arith.constant dense<0.000000e+00> : vector<2x32xf32>
    %1122 = tpu.matmul %1117, %31, %cst_240 {dimension_numbers = #tpu.dot_dimension_numbers<[1], [0], [0], [1], [0, 0, 1, 1], [], []>} : vector<2x32xf32>, vector<32x32xf32>, vector<2x32xf32> -> vector<2x32xf32>
    %1123 = arith.addf %1085, %1122 : vector<2x32xf32>
    %cst_241 = arith.constant dense<0.000000e+00> : vector<2x32xf32>
    %1124 = tpu.matmul %1117, %33, %cst_241 {dimension_numbers = #tpu.dot_dimension_numbers<[1], [0], [0], [1], [0, 0, 1, 1], [], []>} : vector<2x32xf32>, vector<32x32xf32>, vector<2x32xf32> -> vector<2x32xf32>
    %1125 = arith.addf %1088, %1124 : vector<2x32xf32>
    %1126 = arith.negf %1119 : vector<2x32xf32>
    %1127 = math.exp %1126 : vector<2x32xf32>
    %cst_242 = arith.constant 1.000000e+00 : f32
    %1128 = vector.broadcast %cst_242 : f32 to vector<2x32xf32>
    %1129 = arith.addf %1128, %1127 : vector<2x32xf32>
    %1130 = arith.divf %1128, %1129 : vector<2x32xf32>
    %1131 = arith.negf %1121 : vector<2x32xf32>
    %1132 = math.exp %1131 : vector<2x32xf32>
    %cst_243 = arith.constant 1.000000e+00 : f32
    %1133 = vector.broadcast %cst_243 : f32 to vector<2x32xf32>
    %1134 = arith.addf %1133, %1132 : vector<2x32xf32>
    %1135 = arith.divf %1133, %1134 : vector<2x32xf32>
    %1136 = math.tanh %1123 : vector<2x32xf32>
    %1137 = arith.negf %1125 : vector<2x32xf32>
    %1138 = math.exp %1137 : vector<2x32xf32>
    %cst_244 = arith.constant 1.000000e+00 : f32
    %1139 = vector.broadcast %cst_244 : f32 to vector<2x32xf32>
    %1140 = arith.addf %1139, %1138 : vector<2x32xf32>
    %1141 = arith.divf %1139, %1140 : vector<2x32xf32>
    %1142 = arith.mulf %1135, %1031 : vector<2x32xf32>
    %1143 = arith.mulf %1130, %1136 : vector<2x32xf32>
    %1144 = arith.addf %1142, %1143 : vector<2x32xf32>
    %1145 = math.tanh %1144 : vector<2x32xf32>
    %1146 = arith.mulf %1141, %1145 : vector<2x32xf32>
    %cst_245 = arith.constant dense<0.000000e+00> : vector<2x32xf32>
    %1147 = tpu.matmul %1146, %43, %cst_245 {dimension_numbers = #tpu.dot_dimension_numbers<[1], [0], [0], [1], [0, 0, 1, 1], [], []>} : vector<2x32xf32>, vector<32x32xf32>, vector<2x32xf32> -> vector<2x32xf32>
    %1148 = vector.broadcast %14 : vector<1x32xf32> to vector<2x32xf32>
    %1149 = arith.addf %1147, %1148 : vector<2x32xf32>
    %1150 = math.tanh %1149 : vector<2x32xf32>
    %cst_246 = arith.constant dense<0.000000e+00> : vector<2x32xf32>
    %1151 = tpu.matmul %1150, %45, %cst_246 {dimension_numbers = #tpu.dot_dimension_numbers<[1], [0], [0], [1], [0, 0, 1, 1], [], []>} : vector<2x32xf32>, vector<32x32xf32>, vector<2x32xf32> -> vector<2x32xf32>
    %1152 = vector.broadcast %15 : vector<1x32xf32> to vector<2x32xf32>
    %1153 = arith.addf %1151, %1152 : vector<2x32xf32>
    %cst_247 = arith.constant dense<0xFF800000> : vector<2xf32>
    %1154 = vector.multi_reduction <maximumf>, %1153, %cst_247 [1] : vector<2x32xf32> to vector<2xf32>
    %1155 = vector.shape_cast %1154 : vector<2xf32> to vector<2x1xf32>
    %1156 = vector.broadcast %1155 : vector<2x1xf32> to vector<2x32xf32>
    %1157 = arith.subf %1153, %1156 : vector<2x32xf32>
    %1158 = math.exp %1157 : vector<2x32xf32>
    %1159 = arith.mulf %1158, %1146 : vector<2x32xf32>
    %1160 = vector.broadcast %16 : vector<1x32xf32> to vector<2x32xf32>
    %1161 = arith.mulf %1159, %1160 : vector<2x32xf32>
    %cst_248 = arith.constant dense<0.000000e+00> : vector<2xf32>
    %1162 = vector.multi_reduction <add>, %1161, %cst_248 [1] : vector<2x32xf32> to vector<2xf32>
    %1163 = vector.shape_cast %1162 : vector<2xf32> to vector<2x1xf32>
    %cst_249 = arith.constant dense<0.000000e+00> : vector<2xf32>
    %1164 = vector.multi_reduction <add>, %1158, %cst_249 [1] : vector<2x32xf32> to vector<2xf32>
    %1165 = vector.shape_cast %1164 : vector<2xf32> to vector<2x1xf32>
    %1166 = tpu.reciprocal %1165 : vector<2x1xf32> -> vector<2x1xf32>
    %1167 = arith.mulf %1163, %1166 : vector<2x1xf32>
    %1168 = vector.broadcast %17 : vector<1x1xf32> to vector<2x1xf32>
    %1169 = arith.addf %1167, %1168 : vector<2x1xf32>
    %1170 = vector.broadcast %1169 : vector<2x1xf32> to vector<2x32xf32>
    %1171 = vector.broadcast %2 : vector<1x32xf32> to vector<2x32xf32>
    %1172 = arith.mulf %1170, %1171 : vector<2x32xf32>
    %1173 = vector.broadcast %6 : vector<1x32xf32> to vector<2x32xf32>
    %1174 = arith.addf %1172, %1173 : vector<2x32xf32>
    %1175 = vector.broadcast %1169 : vector<2x1xf32> to vector<2x32xf32>
    %1176 = vector.broadcast %3 : vector<1x32xf32> to vector<2x32xf32>
    %1177 = arith.mulf %1175, %1176 : vector<2x32xf32>
    %1178 = vector.broadcast %7 : vector<1x32xf32> to vector<2x32xf32>
    %1179 = arith.addf %1177, %1178 : vector<2x32xf32>
    %1180 = vector.broadcast %1169 : vector<2x1xf32> to vector<2x32xf32>
    %1181 = vector.broadcast %4 : vector<1x32xf32> to vector<2x32xf32>
    %1182 = arith.mulf %1180, %1181 : vector<2x32xf32>
    %1183 = vector.broadcast %8 : vector<1x32xf32> to vector<2x32xf32>
    %1184 = arith.addf %1182, %1183 : vector<2x32xf32>
    %1185 = vector.broadcast %1169 : vector<2x1xf32> to vector<2x32xf32>
    %1186 = vector.broadcast %5 : vector<1x32xf32> to vector<2x32xf32>
    %1187 = arith.mulf %1185, %1186 : vector<2x32xf32>
    %1188 = vector.broadcast %9 : vector<1x32xf32> to vector<2x32xf32>
    %1189 = arith.addf %1187, %1188 : vector<2x32xf32>
    %cst_250 = arith.constant dense<0.000000e+00> : vector<2x32xf32>
    %1190 = tpu.matmul %1146, %35, %cst_250 {dimension_numbers = #tpu.dot_dimension_numbers<[1], [0], [0], [1], [0, 0, 1, 1], [], []>} : vector<2x32xf32>, vector<32x32xf32>, vector<2x32xf32> -> vector<2x32xf32>
    %1191 = vector.broadcast %10 : vector<1x32xf32> to vector<2x32xf32>
    %1192 = arith.addf %1190, %1191 : vector<2x32xf32>
    %cst_251 = arith.constant dense<0.000000e+00> : vector<2x32xf32>
    %1193 = tpu.matmul %1146, %37, %cst_251 {dimension_numbers = #tpu.dot_dimension_numbers<[1], [0], [0], [1], [0, 0, 1, 1], [], []>} : vector<2x32xf32>, vector<32x32xf32>, vector<2x32xf32> -> vector<2x32xf32>
    %1194 = vector.broadcast %11 : vector<1x32xf32> to vector<2x32xf32>
    %1195 = arith.addf %1193, %1194 : vector<2x32xf32>
    %cst_252 = arith.constant dense<0.000000e+00> : vector<2x32xf32>
    %1196 = tpu.matmul %1146, %39, %cst_252 {dimension_numbers = #tpu.dot_dimension_numbers<[1], [0], [0], [1], [0, 0, 1, 1], [], []>} : vector<2x32xf32>, vector<32x32xf32>, vector<2x32xf32> -> vector<2x32xf32>
    %1197 = vector.broadcast %12 : vector<1x32xf32> to vector<2x32xf32>
    %1198 = arith.addf %1196, %1197 : vector<2x32xf32>
    %cst_253 = arith.constant dense<0.000000e+00> : vector<2x32xf32>
    %1199 = tpu.matmul %1146, %41, %cst_253 {dimension_numbers = #tpu.dot_dimension_numbers<[1], [0], [0], [1], [0, 0, 1, 1], [], []>} : vector<2x32xf32>, vector<32x32xf32>, vector<2x32xf32> -> vector<2x32xf32>
    %1200 = vector.broadcast %13 : vector<1x32xf32> to vector<2x32xf32>
    %1201 = arith.addf %1199, %1200 : vector<2x32xf32>
    %cst_254 = arith.constant dense<0.000000e+00> : vector<2x32xf32>
    %1202 = tpu.matmul %1117, %19, %cst_254 {dimension_numbers = #tpu.dot_dimension_numbers<[1], [0], [0], [1], [0, 0, 1, 1], [], []>} : vector<2x32xf32>, vector<32x32xf32>, vector<2x32xf32> -> vector<2x32xf32>
    %1203 = arith.addf %1174, %1202 : vector<2x32xf32>
    %cst_255 = arith.constant dense<0.000000e+00> : vector<2x32xf32>
    %1204 = tpu.matmul %1117, %21, %cst_255 {dimension_numbers = #tpu.dot_dimension_numbers<[1], [0], [0], [1], [0, 0, 1, 1], [], []>} : vector<2x32xf32>, vector<32x32xf32>, vector<2x32xf32> -> vector<2x32xf32>
    %1205 = arith.addf %1179, %1204 : vector<2x32xf32>
    %cst_256 = arith.constant dense<0.000000e+00> : vector<2x32xf32>
    %1206 = tpu.matmul %1117, %23, %cst_256 {dimension_numbers = #tpu.dot_dimension_numbers<[1], [0], [0], [1], [0, 0, 1, 1], [], []>} : vector<2x32xf32>, vector<32x32xf32>, vector<2x32xf32> -> vector<2x32xf32>
    %1207 = arith.addf %1184, %1206 : vector<2x32xf32>
    %cst_257 = arith.constant dense<0.000000e+00> : vector<2x32xf32>
    %1208 = tpu.matmul %1117, %25, %cst_257 {dimension_numbers = #tpu.dot_dimension_numbers<[1], [0], [0], [1], [0, 0, 1, 1], [], []>} : vector<2x32xf32>, vector<32x32xf32>, vector<2x32xf32> -> vector<2x32xf32>
    %1209 = arith.addf %1189, %1208 : vector<2x32xf32>
    %1210 = arith.negf %1203 : vector<2x32xf32>
    %1211 = math.exp %1210 : vector<2x32xf32>
    %cst_258 = arith.constant 1.000000e+00 : f32
    %1212 = vector.broadcast %cst_258 : f32 to vector<2x32xf32>
    %1213 = arith.addf %1212, %1211 : vector<2x32xf32>
    %1214 = arith.divf %1212, %1213 : vector<2x32xf32>
    %1215 = arith.negf %1205 : vector<2x32xf32>
    %1216 = math.exp %1215 : vector<2x32xf32>
    %cst_259 = arith.constant 1.000000e+00 : f32
    %1217 = vector.broadcast %cst_259 : f32 to vector<2x32xf32>
    %1218 = arith.addf %1217, %1216 : vector<2x32xf32>
    %1219 = arith.divf %1217, %1218 : vector<2x32xf32>
    %1220 = math.tanh %1207 : vector<2x32xf32>
    %1221 = arith.negf %1209 : vector<2x32xf32>
    %1222 = math.exp %1221 : vector<2x32xf32>
    %cst_260 = arith.constant 1.000000e+00 : f32
    %1223 = vector.broadcast %cst_260 : f32 to vector<2x32xf32>
    %1224 = arith.addf %1223, %1222 : vector<2x32xf32>
    %1225 = arith.divf %1223, %1224 : vector<2x32xf32>
    %1226 = arith.mulf %1219, %1115 : vector<2x32xf32>
    %1227 = arith.mulf %1214, %1220 : vector<2x32xf32>
    %1228 = arith.addf %1226, %1227 : vector<2x32xf32>
    %1229 = math.tanh %1228 : vector<2x32xf32>
    %1230 = arith.mulf %1225, %1229 : vector<2x32xf32>
    %cst_261 = arith.constant dense<0.000000e+00> : vector<2x32xf32>
    %1231 = tpu.matmul %1230, %27, %cst_261 {dimension_numbers = #tpu.dot_dimension_numbers<[1], [0], [0], [1], [0, 0, 1, 1], [], []>} : vector<2x32xf32>, vector<32x32xf32>, vector<2x32xf32> -> vector<2x32xf32>
    %1232 = arith.addf %1192, %1231 : vector<2x32xf32>
    %cst_262 = arith.constant dense<0.000000e+00> : vector<2x32xf32>
    %1233 = tpu.matmul %1230, %29, %cst_262 {dimension_numbers = #tpu.dot_dimension_numbers<[1], [0], [0], [1], [0, 0, 1, 1], [], []>} : vector<2x32xf32>, vector<32x32xf32>, vector<2x32xf32> -> vector<2x32xf32>
    %1234 = arith.addf %1195, %1233 : vector<2x32xf32>
    %cst_263 = arith.constant dense<0.000000e+00> : vector<2x32xf32>
    %1235 = tpu.matmul %1230, %31, %cst_263 {dimension_numbers = #tpu.dot_dimension_numbers<[1], [0], [0], [1], [0, 0, 1, 1], [], []>} : vector<2x32xf32>, vector<32x32xf32>, vector<2x32xf32> -> vector<2x32xf32>
    %1236 = arith.addf %1198, %1235 : vector<2x32xf32>
    %cst_264 = arith.constant dense<0.000000e+00> : vector<2x32xf32>
    %1237 = tpu.matmul %1230, %33, %cst_264 {dimension_numbers = #tpu.dot_dimension_numbers<[1], [0], [0], [1], [0, 0, 1, 1], [], []>} : vector<2x32xf32>, vector<32x32xf32>, vector<2x32xf32> -> vector<2x32xf32>
    %1238 = arith.addf %1201, %1237 : vector<2x32xf32>
    %1239 = arith.negf %1232 : vector<2x32xf32>
    %1240 = math.exp %1239 : vector<2x32xf32>
    %cst_265 = arith.constant 1.000000e+00 : f32
    %1241 = vector.broadcast %cst_265 : f32 to vector<2x32xf32>
    %1242 = arith.addf %1241, %1240 : vector<2x32xf32>
    %1243 = arith.divf %1241, %1242 : vector<2x32xf32>
    %1244 = arith.negf %1234 : vector<2x32xf32>
    %1245 = math.exp %1244 : vector<2x32xf32>
    %cst_266 = arith.constant 1.000000e+00 : f32
    %1246 = vector.broadcast %cst_266 : f32 to vector<2x32xf32>
    %1247 = arith.addf %1246, %1245 : vector<2x32xf32>
    %1248 = arith.divf %1246, %1247 : vector<2x32xf32>
    %1249 = math.tanh %1236 : vector<2x32xf32>
    %1250 = arith.negf %1238 : vector<2x32xf32>
    %1251 = math.exp %1250 : vector<2x32xf32>
    %cst_267 = arith.constant 1.000000e+00 : f32
    %1252 = vector.broadcast %cst_267 : f32 to vector<2x32xf32>
    %1253 = arith.addf %1252, %1251 : vector<2x32xf32>
    %1254 = arith.divf %1252, %1253 : vector<2x32xf32>
    %1255 = arith.mulf %1248, %1144 : vector<2x32xf32>
    %1256 = arith.mulf %1243, %1249 : vector<2x32xf32>
    %1257 = arith.addf %1255, %1256 : vector<2x32xf32>
    %1258 = math.tanh %1257 : vector<2x32xf32>
    %1259 = arith.mulf %1254, %1258 : vector<2x32xf32>
    %cst_268 = arith.constant dense<0.000000e+00> : vector<2x32xf32>
    %1260 = tpu.matmul %1259, %43, %cst_268 {dimension_numbers = #tpu.dot_dimension_numbers<[1], [0], [0], [1], [0, 0, 1, 1], [], []>} : vector<2x32xf32>, vector<32x32xf32>, vector<2x32xf32> -> vector<2x32xf32>
    %1261 = vector.broadcast %14 : vector<1x32xf32> to vector<2x32xf32>
    %1262 = arith.addf %1260, %1261 : vector<2x32xf32>
    %1263 = math.tanh %1262 : vector<2x32xf32>
    %cst_269 = arith.constant dense<0.000000e+00> : vector<2x32xf32>
    %1264 = tpu.matmul %1263, %45, %cst_269 {dimension_numbers = #tpu.dot_dimension_numbers<[1], [0], [0], [1], [0, 0, 1, 1], [], []>} : vector<2x32xf32>, vector<32x32xf32>, vector<2x32xf32> -> vector<2x32xf32>
    %1265 = vector.broadcast %15 : vector<1x32xf32> to vector<2x32xf32>
    %1266 = arith.addf %1264, %1265 : vector<2x32xf32>
    %cst_270 = arith.constant dense<0xFF800000> : vector<2xf32>
    %1267 = vector.multi_reduction <maximumf>, %1266, %cst_270 [1] : vector<2x32xf32> to vector<2xf32>
    %1268 = vector.shape_cast %1267 : vector<2xf32> to vector<2x1xf32>
    %1269 = vector.broadcast %1268 : vector<2x1xf32> to vector<2x32xf32>
    %1270 = arith.subf %1266, %1269 : vector<2x32xf32>
    %1271 = math.exp %1270 : vector<2x32xf32>
    %1272 = arith.mulf %1271, %1259 : vector<2x32xf32>
    %1273 = vector.broadcast %16 : vector<1x32xf32> to vector<2x32xf32>
    %1274 = arith.mulf %1272, %1273 : vector<2x32xf32>
    %cst_271 = arith.constant dense<0.000000e+00> : vector<2xf32>
    %1275 = vector.multi_reduction <add>, %1274, %cst_271 [1] : vector<2x32xf32> to vector<2xf32>
    %1276 = vector.shape_cast %1275 : vector<2xf32> to vector<2x1xf32>
    %cst_272 = arith.constant dense<0.000000e+00> : vector<2xf32>
    %1277 = vector.multi_reduction <add>, %1271, %cst_272 [1] : vector<2x32xf32> to vector<2xf32>
    %1278 = vector.shape_cast %1277 : vector<2xf32> to vector<2x1xf32>
    %1279 = tpu.reciprocal %1278 : vector<2x1xf32> -> vector<2x1xf32>
    %1280 = arith.mulf %1276, %1279 : vector<2x1xf32>
    %1281 = vector.broadcast %17 : vector<1x1xf32> to vector<2x1xf32>
    %1282 = arith.addf %1280, %1281 : vector<2x1xf32>
    %1283 = tpu.concatenate %823, %824, %825, %826, %827, %828, %829, %830, %943, %1056, %1169, %1282 in 1 : vector<2x1xf32>, vector<2x1xf32>, vector<2x1xf32>, vector<2x1xf32>, vector<2x1xf32>, vector<2x1xf32>, vector<2x1xf32>, vector<2x1xf32>, vector<2x1xf32>, vector<2x1xf32>, vector<2x1xf32>, vector<2x1xf32> -> vector<2x12xf32>
    %c0_273 = arith.constant 0 : index
    %c0_274 = arith.constant 0 : index
    %1284 = vector.load %arg3[%c0_273, %c0_274] : memref<2x12xf32, #tpu.memory_space<vmem>>, vector<2x12xf32>
    tpu.vector_store %arg3[%c0_273, %c0_274], %1283 {strides = array<i32>} : memref<2x12xf32, #tpu.memory_space<vmem>>, vector<2x12xf32>,
    return
  }
}

</mosaic_0001>

<bundles_post_ra>
// kernel: pendulum_rnn_sa.1
= control target key start
LH: loop header
LB: loop body
LE: loop exit
PB: predicated region body
PF: predicated region fallthrough
CT: control target
= control target key end

     0   :  { %8 = vsyncpa [#allocation3], 0  ;;  %s18265_s0 = inlined_call_operand.hbm [shape: f32[2,8], index: 0, kind: input, shape index: {}]   ;;  %s18266_s1 = inlined_call_operand.hbm [shape: f32[16,32], index: 1, kind: input, shape index: {}]   ;;  %s18267_s2 = inlined_call_operand.hbm [shape: f32[14,32,32], index: 2, kind: input, shape index: {}]   ;;  %s18268_s3 = inlined_call_operand.hbm [shape: f32[2,12], index: 3, kind: output, shape index: {}]  }
   0x1   :  { %9 = vsyncpa [#allocation6], 0 }
   0x2   :  { %10 = vsyncpa [#allocation4], 0  ;;  %s16443_s12 = smov [#allocation5]   ;;  %s16349_s16 = scalar_lea.hbm %s18266_s1, 256 }
   0x3   :  { %s26_s13 = sshll.u32 %s16443_s12, 4  ;;  %p16350_p0 = scmp.ne.s32.totalorder %s18266_s1, %s16349_s16  ;;  %s27_s13 = int_to_ptr.vmem [resolvable:$true] %s26_s13 }
   0x4   :  { %p16353_p1 = scmp.lt.u32.totalorder %s16349_s16, %s18266_s1 }
   0x6   :  { %p16355_p2 = pnand %p16353_p1, %p16350_p0 }
   0x8   :  { %16358 = shalt.err (!%p16355_p2)
}
   0x9   :  { %s16359_s21 = scalar_lea.vmem %s27_s13, 256  ;;  %p16364_p4 = scmp.lt.s32.totalorder %s27_s13, %s27_s13 }
   0xa   :  { %p16360_p3 = scmp.ne.s32.totalorder %s27_s13, %s16359_s21  ;;  %p16365_p5 = scmp.lt.s32.totalorder %s16359_s21, %s16359_s21 }
   0xc   :  { %p16366_p6 = por %p16365_p5, %p16364_p4 }
   0xe   :  { %p16367_p7 = pnand %p16366_p6, %p16360_p3 }
  0x10   :  { %16370 = shalt.err (!%p16367_p7)
}
  0x11   :  { %s16444_s22 = smov 128   ;;  %s16445_s23 = smov 8  }
  0x12   :  { %32 = dma.hbm_to_vmem [thread:$0]  %s18266_s1, 256, %s27_s13, [#allocation6], %s16444_s22, %s16444_s22, %s16445_s23  }
  0x13   :  { %s16446_s26 = smov [#allocation2]   ;;  %s16447_s28 = smov [#allocation7]  }
  0x14   :  { %s17_s27 = sshll.u32 %s16446_s26, 4  ;;  %s38_s29 = sshll.u32 %s16447_s28, 4  ;;  %s18_s27 = int_to_ptr.vmem [resolvable:$true] %s17_s27  ;;  %s39_s29 = int_to_ptr.vmem [resolvable:$true] %s38_s29 }
  0x15   :  { %s16371_s5 = scalar_lea.hbm %s18265_s0, 32 }
  0x16   :  { %p16372_p8 = scmp.ne.s32.totalorder %s18265_s0, %s16371_s5  ;;  %p16375_p9 = scmp.lt.u32.totalorder %s16371_s5, %s18265_s0 }
  0x18   :  { %p16377_p10 = pnand %p16375_p9, %p16372_p8 }
  0x1a   :  { %16380 = shalt.err (!%p16377_p10)
}
  0x1b   :  { %s16381_s1 = scalar_lea.vmem %s18_s27, 32  ;;  %p16386_p12 = scmp.lt.s32.totalorder %s18_s27, %s18_s27 }
  0x1c   :  { %p16382_p11 = scmp.ne.s32.totalorder %s18_s27, %s16381_s1  ;;  %p16387_p13 = scmp.lt.s32.totalorder %s16381_s1, %s16381_s1 }
  0x1e   :  { %p16388_p0 = por %p16387_p13, %p16386_p12 }
  0x20   :  { %p16389_p1 = pnand %p16388_p0, %p16382_p11 }
  0x22   :  { %16392 = shalt.err (!%p16389_p1)
}
  0x23   :  { %20 = dma.hbm_to_vmem [thread:$0]  %s18265_s0, 32, %s18_s27, [#allocation3]  }
  0x24   :  { %s16393_s14 = scalar_lea.hbm %s18267_s2, 7168 }
  0x25   :  { %p16394_p2 = scmp.ne.s32.totalorder %s18267_s2, %s16393_s14  ;;  %p16397_p3 = scmp.lt.u32.totalorder %s16393_s14, %s18267_s2 }
  0x27   :  { %p16399_p4 = pnand %p16397_p3, %p16394_p2 }
  0x29   :  { %16402 = shalt.err (!%p16399_p4)
}
  0x2a   :  { %s16403_s19 = scalar_lea.vmem %s39_s29, 7168  ;;  %p16408_p6 = scmp.lt.s32.totalorder %s39_s29, %s39_s29 }
  0x2b   :  { %p16404_p5 = scmp.ne.s32.totalorder %s39_s29, %s16403_s19  ;;  %p16409_p7 = scmp.lt.s32.totalorder %s16403_s19, %s16403_s19 }
  0x2d   :  { %p16410_p8 = por %p16409_p7, %p16408_p6 }
  0x2f   :  { %p16411_p9 = pnand %p16410_p8, %p16404_p5 }
  0x31   :  { %16414 = shalt.err (!%p16411_p9)
}
  0x32   :  { %44 = dma.hbm_to_vmem [thread:$0]  %s18267_s2, 7168, %s39_s29, [#allocation6], %s16444_s22, %s16444_s22, %s16445_s23  }
  0x33   :  { %16437 = dma.done.wait [#allocation3], 32  }
  0x34   :  { %16438 = vsyncadd [#allocation3], 4294967264 }
  0x35   :  { %16439 = dma.done.wait [#allocation6], 7424  }
  0x36   :  { %16440 = vsyncadd [#allocation6], 4294959872  ;;  %v18275_v0 = vmov 0.0|0.0   ;;  %vm16449_vm0 = vmmov 0   ;;  %v18273_v1 = vmov 0.0   ;;  %v16451_v2 = vmov 0  }
  0x37   :  { %14817 = vmatprep.subr.bf16.mxu0 %v18275_v0  ;;  %14823 = vmatprep.subr.bf16.mxu1 %v18275_v0  ;;  %v97_v3 = vld [vmem:[#allocation7 + $0x100] sm:$0xff]  ;;  %v98_v4 = vld [vmem:[#allocation7 + $0x108] sm:$0xff]  ;;  %v99_v8 = vld [vmem:[#allocation7 + $0x110] sm:$0xff]  ;;  %vm259_vm1 = vcmask 261120   ;;  %vm7501_vm2 = vcmask 1041408   ;;  %vm7503_vm3 = vcmask 1043456  }
  0x38   :  { %13131 = vmatprep.mubr.msk.f32.mxu0 %vm16449_vm0, %v18273_v1  ;;  %13142 = vmatprep.mubr.msk.f32.mxu1 %vm16449_vm0, %v18273_v1  ;;  %v102_v5 = vld [vmem:[#allocation7 + $0x120] sm:$0xff]  ;;  %v16539_v6 = vpack.c.bf16 %v98_v4, %v97_v3  ;;  %v103_v7 = vld [vmem:[#allocation7 + $0x128] sm:$0xff]  ;;  %v100_v9 = vld [vmem:[#allocation7 + $0x118] sm:$0xff]  ;;  %v131_v3 = vlaneseq  ;;  %vm7505_vm4 = vcmask 1045504   ;;  %vm8801_vm5 = vcmask 254976   ;;  %s16459_s2 = smov 2  }
  0x39   :  { %15916 = vset.pattern.permute.xlu0 %v16451_v2  ;;  %v16541_v10 = vpack.c.bf16 %v103_v7, %v102_v5  ;;  %v104_v11 = vld [vmem:[#allocation7 + $0x130] sm:$0xff]  ;;  %v105_v12 = vld [vmem:[#allocation7 + $0x138] sm:$0xff]  ;;  %v16544_v13 = vpack.c.bf16 %v100_v9, %v99_v8  ;;  %v107_v15 = vld [vmem:[#allocation7 + $0x140] sm:$0xff]  ;;  %s16460_s21 = smov 5   ;;  %s16461_s22 = smov 7   ;;  %vm12091_vm6 = vcmask 7168  }
  0x3a   :  { %14819 = vmatpush3.bf16.msra.mxu0 %v16539_v6  ;;  %v16548_v14 = vpack.c.bf16 %v105_v12, %v104_v11  ;;  %v108_v16 = vld [vmem:[#allocation7 + $0x148] sm:$0xff]  ;;  %v112_v17 = vld [vmem:[#allocation7 + $0x160] sm:$0xff]  ;;  %v109_v21 = vld [vmem:[#allocation7 + $0x150] sm:$0xff]  ;;  %v16646_v4 = vshrl.u32 %v131_v3, 7  ;;  %s16462_s24 = smov 9   ;;  %s16463_s25 = smov 1  }
  0x3b   :  { %14825 = vmatpush3.bf16.msra.mxu1 %v16541_v10  ;;  %14820 = vmatprep.subr.bf16.mxu0 %v18275_v0  ;;  %v113_v18 = vld [vmem:[#allocation7 + $0x168] sm:$0xff]  ;;  %v16552_v19 = vpack.c.bf16 %v108_v16, %v107_v15  ;;  %v110_v22 = vld [vmem:[#allocation7 + $0x158] sm:$0xff]  ;;  %v114_v23 = vld [vmem:[#allocation7 + $0x170] sm:$0xff]  ;;  %s16464_s26 = smov 3   ;;  %s16465_s27 = smov 4   ;;  %vm12093_vm7 = vcmask 15360  }
  0x3c   :  { %14826 = vmatprep.subr.bf16.mxu1 %v18275_v0  ;;  %v16556_v20 = vpack.c.bf16 %v113_v18, %v112_v17  ;;  %v115_v24 = vld [vmem:[#allocation7 + $0x178] sm:$0xff]  ;;  %v16562_v25 = vpack.c.bf16 %v110_v22, %v109_v21  ;;  %v16564_v26 = vld [vmem:[#allocation2] sm:$0x3]  ;;  %v57_v28 = vld [vmem:[#allocation7] sm:$0xff]  ;;  %v133_v5 = vsub.s32 0, %v16646_v4  ;;  %v143_v8 = vsub.s32 1, %v16646_v4 }
  0x3d   :  { %v16568_v27 = vpack.c.bf16 %v115_v24, %v114_v23  ;;  %v58_v29 = vld [vmem:[#allocation7 + $0x8] sm:$0xff]  ;;  %v62_v30 = vld [vmem:[#allocation7 + $0x20] sm:$0xff]  ;;  %128 = vperm.xlu0 %15916, %v16564_v26   ;;  %v59_v34 = vld [vmem:[#allocation7 + $0x10] sm:$0xff]  ;;  %v18272_v11 = vsub.s32 4, %v16646_v4  ;;  %v18271_v16 = vsub.s32 5, %v16646_v4  ;;  %v163_v23 = vsub.s32 3, %v16646_v4 }
  0x3e   :  { %14822 = vmatpush3.bf16.msra.mxu0 %v16544_v13  ;;  %v63_v31 = vld [vmem:[#allocation7 + $0x28] sm:$0xff]  ;;  %v16577_v32 = vpack.c.bf16 %v58_v29, %v57_v28  ;;  %v60_v35 = vld [vmem:[#allocation7 + $0x18] sm:$0xff]  ;;  %v64_v36 = vld [vmem:[#allocation7 + $0x30] sm:$0xff]  ;;  %v153_v29 = vsub.s32 2, %v16646_v4  ;;  %s16466_s28 = smov 6   ;;  %s16467_s29 = smov 10  }
  0x3f   :  { %14828 = vmatpush3.bf16.msra.mxu1 %v16548_v14  ;;  %14829 = vmatprep.subr.bf16.mxu0 %v18275_v0  ;;  %v16581_v33 = vpack.c.bf16 %v63_v31, %v62_v30  ;;  %v65_v37 = vld [vmem:[#allocation7 + $0x38] sm:$0xff]  ;;  %v16587_v38 = vpack.c.bf16 %v60_v35, %v59_v34  ;;  %v67_v40 = vld [vmem:[#allocation7 + $0x40] sm:$0xff]  ;;  %v68_v41 = vld [vmem:[#allocation7 + $0x48] sm:$0xff]  ;;  %v18269_v34 = vsub.s32 7, %v16646_v4  ;;  %s16468_s30 = smov 11   ;;  %vm12095_vm8 = vcmask 23552  }
  0x40   :  { %14835 = vmatprep.subr.bf16.mxu1 %v18275_v0  ;;  %v16591_v39 = vpack.c.bf16 %v65_v37, %v64_v36  ;;  %v72_v42 = vld [vmem:[#allocation7 + $0x60] sm:$0xff]  ;;  %v73_v43 = vld [vmem:[#allocation7 + $0x68] sm:$0xff]  ;;  %v16599_v44 = vpack.c.bf16 %v68_v41, %v67_v40  ;;  %v69_v46 = vld [vmem:[#allocation7 + $0x50] sm:$0xff]  ;;  %vm12097_vm9 = vcmask 31744   ;;  %vm12099_vm10 = vcmask 39936  }
  0x41   :  { %13132 = vmatmul.mubr.f32.vlgmr.msra.gmra.mrb[0].mxu0 %v18273_v1  ;;  %v16603_v45 = vpack.c.bf16 %v73_v43, %v72_v42  ;;  %v70_v47 = vld [vmem:[#allocation7 + $0x58] sm:$0xff]  ;;  %v74_v48 = vld [vmem:[#allocation7 + $0x70] sm:$0xff]  ;;  %v77_v52 = vld [vmem:[#allocation7 + $0x80] sm:$0xff]  ;;  %vm12101_vm11 = vcmask 48128   ;;  %vm12103_vm12 = vcmask 56320   ;;  %vm12105_vm13 = vcmask 64512  }
  0x42   :  { %13143 = vmatmul.mubr.f32.vlgmr.msra.gmra.mrb[0].mxu1 %v18273_v1  ;;  %14831 = vmatpush3.bf16.msra.mxu0 %v16552_v19  ;;  %v75_v49 = vld [vmem:[#allocation7 + $0x78] sm:$0xff]  ;;  %v16609_v50 = vpack.c.bf16 %v70_v47, %v69_v46  ;;  %v78_v53 = vld [vmem:[#allocation7 + $0x88] sm:$0xff]  ;;  %v82_v54 = vld [vmem:[#allocation7 + $0xa0] sm:$0xff]  ;;  %v18270_v46 = vsub.s32 6, %v16646_v4  ;;  %vm12107_vm14 = vcmask 72704   ;;  %vm12109_vm15 = vcmask 80896  }
  0x43   :  { %14837 = vmatpush3.bf16.msra.mxu1 %v16556_v20  ;;  %14832 = vmatprep.subr.bf16.mxu0 %v18275_v0  ;;  %v16613_v51 = vpack.c.bf16 %v75_v49, %v74_v48  ;;  %v16630_v55 = vpack.c.bf16 %v78_v53, %v77_v52  ;;  %v83_v56 = vld [vmem:[#allocation7 + $0xa8] sm:$0xff]  ;;  %v79_v58 = vld [vmem:[#allocation7 + $0x90] sm:$0xff]  ;;  %v80_v59 = vld [vmem:[#allocation7 + $0x98] sm:$0xff] }
  0x44   :  { %14838 = vmatprep.subr.bf16.mxu1 %v18275_v0  ;;  %13153 = vmatprep.mubr.msk.f32.mxu0 %vm16449_vm0, %v18273_v1  ;;  %v16632_v57 = vpack.c.bf16 %v83_v56, %v82_v54  ;;  %v84_v60 = vld [vmem:[#allocation7 + $0xb0] sm:$0xff]  ;;  %v16638_v61 = vpack.c.bf16 %v80_v59, %v79_v58  ;;  %v85_v62 = vld [vmem:[#allocation7 + $0xb8] sm:$0xff] }
  0x45   :  { %13164 = vmatprep.mubr.msk.f32.mxu1 %vm16449_vm0, %v18273_v1  ;;  %v16640_v63 = vpack.c.bf16 %v85_v62, %v84_v60  ;;  %v55_v7 = vld [vmem:[#allocation5] sm:$0xff] }
  0x46   :  { %14834 = vmatpush3.bf16.msra.mxu0 %v16562_v25  ;;  %v16652_v9 = vrot.slane %v55_v7, %v133_v5  ;;  %v16657_v15 = vrot.slane %v55_v7, %v143_v8  ;;  %v16663_v18 = vrot.slane %v55_v7, %v18272_v11  ;;  %v16668_v22 = vrot.slane %v55_v7, %v18271_v16 }
  0x47   :  { %14840 = vmatpush3.bf16.msra.mxu1 %v16568_v27  ;;  %14841 = vmatprep.subr.bf16.mxu0 %v18275_v0  ;;  %v16676_v31 = vrot.slane %v55_v7, %v163_v23  ;;  %v16681_v43 = vrot.slane %v55_v7, %v153_v29  ;;  %v16687_v49 = vrot.slane %v55_v7, %v18269_v34 }
  0x48   :  { %14847 = vmatprep.subr.bf16.mxu1 %v18275_v0  ;;  %18299 = vst [vmem:[#allocation12_spill] sm:$0xff] %v16652_v9  ;;  %18300 = vst [vmem:[#allocation13_spill] sm:$0xff] %v16657_v15  ;;  %v16692_v53 = vrot.slane %v55_v7, %v18270_v46 }
  0x49   :  { %13154 = vmatmul.mubr.f32.vlgmr.msra.gmra.mrb[2].mxu0 %v18273_v1  ;;  %18301 = vst [vmem:[#allocation14_spill] sm:$0xff] %v16663_v18  ;;  %18302 = vst [vmem:[#allocation15_spill] sm:$0xff] %v16668_v22 }
  0x4a   :  { %13165 = vmatmul.mubr.f32.vlgmr.msra.gmra.mrb[2].mxu1 %v18273_v1  ;;  %14843 = vmatpush3.bf16.msra.mxu0 %v16577_v32  ;;  %18303 = vst [vmem:[#allocation16_spill] sm:$0xff] %v16676_v31 }
  0x4b   :  { %14849 = vmatpush3.bf16.msra.mxu1 %v16581_v33  ;;  %14844 = vmatprep.subr.bf16.mxu0 %v18275_v0 }
  0x4c   :  { %14850 = vmatprep.subr.bf16.mxu1 %v18275_v0  ;;  %13175 = vmatprep.mubr.msk.f32.mxu0 %vm16449_vm0, %v18273_v1 }
  0x4d   :  { %13186 = vmatprep.mubr.msk.f32.mxu1 %vm16449_vm0, %v18273_v1 }
  0x4e   :  { %14846 = vmatpush3.bf16.msra.mxu0 %v16587_v38 }
  0x4f   :  { %14852 = vmatpush3.bf16.msra.mxu1 %v16591_v39  ;;  %14853 = vmatprep.subr.bf16.mxu0 %v18275_v0 }
  0x50   :  { %14859 = vmatprep.subr.bf16.mxu1 %v18275_v0 }
  0x51   :  { %13176 = vmatmul.mubr.f32.vlgmr.msra.gmra.mrb[4].mxu0 %v18273_v1 }
  0x52   :  { %13187 = vmatmul.mubr.f32.vlgmr.msra.gmra.mrb[4].mxu1 %v18273_v1  ;;  %14855 = vmatpush3.bf16.msra.mxu0 %v16599_v44 }
  0x53   :  { %14861 = vmatpush3.bf16.msra.mxu1 %v16603_v45  ;;  %14856 = vmatprep.subr.bf16.mxu0 %v18275_v0 }
  0x54   :  { %14862 = vmatprep.subr.bf16.mxu1 %v18275_v0  ;;  %13197 = vmatprep.mubr.msk.f32.mxu0 %vm16449_vm0, %v18273_v1 }
  0x55   :  { %13208 = vmatprep.mubr.msk.f32.mxu1 %vm16449_vm0, %v18273_v1 }
  0x56   :  { %14858 = vmatpush3.bf16.msra.mxu0 %v16609_v50 }
  0x57   :  { %14864 = vmatpush3.bf16.msra.mxu1 %v16613_v51  ;;  %14865 = vmatprep.subr.bf16.mxu0 %v18275_v0 }
  0x58   :  { %14871 = vmatprep.subr.bf16.mxu1 %v18275_v0 }
  0x59   :  { %13198 = vmatmul.mubr.f32.vlgmr.msra.gmra.mrb[6].mxu0 %v18273_v1 }
  0x5a   :  { %13209 = vmatmul.mubr.f32.vlgmr.msra.gmra.mrb[6].mxu1 %v18273_v1  ;;  %13219 = vmatprep.mubr.msk.f32.mxu0 %vm16449_vm0, %v18273_v1 }
  0x5b   :  { %13230 = vmatprep.mubr.msk.f32.mxu1 %vm16449_vm0, %v18273_v1  ;;  %14867 = vmatpush3.bf16.msra.mxu0 %v16630_v55 }
  0x5c   :  { %14873 = vmatpush3.bf16.msra.mxu1 %v16632_v57  ;;  %14868 = vmatprep.subr.bf16.mxu0 %v18275_v0 }
  0x5d   :  { %14874 = vmatprep.subr.bf16.mxu1 %v18275_v0 }
  0x5f   :  { %14870 = vmatpush3.bf16.msra.mxu0 %v16638_v61 }
  0x60   :  { %14876 = vmatpush3.bf16.msra.mxu1 %v16640_v63  ;;  %14877 = vmatprep.subr.bf16.mxu0 %v18275_v0 }
  0x61   :  { %14883 = vmatprep.subr.bf16.mxu1 %v18275_v0 }
  0xbc   :  { %v129_v12 = vpop.permute.xlu0 %128 }
  0xbd   :  { %v135_v17 = vmul.f32 %v16652_v9, %v129_v12  ;;  %v145_v21 = vmul.f32 %v16657_v15, %v129_v12  ;;  %v165_v48 = vmul.f32 %v16676_v31, %v129_v12  ;;  %v155_v52 = vmul.f32 %v16681_v43, %v129_v12 }
  0xbf   :  { %v140_v24 = vadd.f32 %v16663_v18, %v135_v17  ;;  %v150_v28 = vadd.f32 %v16668_v22, %v145_v21  ;;  %v170_v56 = vadd.f32 %v16687_v49, %v165_v48  ;;  %v160_v3 = vadd.f32 %v16692_v53, %v155_v52  ;;  %v87_v48 = vld [vmem:[#allocation7 + $0xc0] sm:$0xff]  ;;  %v88_v52 = vld [vmem:[#allocation7 + $0xc8] sm:$0xff] }
 0x124   :  { %v621_v30 = vpop.f32.mrb[4].mxu0 }
 0x125   :  { %v625_v35 = vadd.f32 %v621_v30, %v140_v24  ;;  %v692_v36 = vpop.f32.mrb[4].mxu1  ;;  %v13177_v37 = vpop.f32.mrb[5].mxu0 }
 0x126   :  { %v696_v40 = vadd.f32 %v692_v36, %v150_v28  ;;  %v13188_v41 = vpop.f32.mrb[5].mxu1 }
 0x127   :  { %v12131_v42 = vmul.f32 -1.442695, %v625_v35 }
 0x128   :  { %v12132_v47 = vmul.f32 -1.442695, %v696_v40 }
 0x129   :  { %15926 = vpow2.f32 %v12131_v42 }
 0x12a   :  { %15928 = vpow2.f32 %v12132_v47 }
 0x12c   :  { %v763_v54 = vpop.f32.mrb[6].mxu0 }
 0x12d   :  { %v834_v58 = vpop.f32.mrb[6].mxu1  ;;  %v13199_v59 = vpop.f32.mrb[7].mxu0  ;;  %v767_v21 = vadd.f32 %v763_v54, %v160_v3  ;;  %v92_v54 = vld [vmem:[#allocation7 + $0xe0] sm:$0xff]  ;;  %v89_v3 = vld [vmem:[#allocation7 + $0xd0] sm:$0xff] }
 0x12e   :  { %v838_v60 = vadd.f32 %v834_v58, %v170_v56  ;;  %v13210_v62 = vpop.f32.mrb[7].mxu1  ;;  %v93_v56 = vld [vmem:[#allocation7 + $0xe8] sm:$0xff] }
 0x12f   :  { %v16701_v62 = vpack.c.bf16 %v93_v56, %v92_v54 }
 0x130   :  { %v12133_v17 = vmul.f32 -1.442695, %v838_v60  ;;  %v16699_v60 = vpack.c.bf16 %v88_v52, %v87_v48 }
 0x132   :  { %15930 = vpow2.f32 %v12133_v17 }
 0x133   :  { %v15927_v24 = vpop.eup %15926  ;;  %15932 = vtanh.f32 %v767_v21  ;;  %v90_v21 = vld [vmem:[#allocation7 + $0xd8] sm:$0xff] }
 0x134   :  { %v15929_v28 = vpop.eup %15928  ;;  %v842_v30 = vadd.f32 1.0, %v15927_v24  ;;  %v94_v24 = vld [vmem:[#allocation7 + $0xf0] sm:$0xff] }
 0x135   :  { %v848_v12 = vadd.f32 1.0, %v15929_v28  ;;  %v95_v28 = vld [vmem:[#allocation7 + $0xf8] sm:$0xff] }
 0x136   :  { %15934 = vrcp.f32 %v842_v30  ;;  %v16711_v30 = vpack.c.bf16 %v90_v21, %v89_v3 }
 0x137   :  { %15936 = vrcp.f32 %v848_v12  ;;  %v16713_v12 = vpack.c.bf16 %v95_v28, %v94_v24 }
 0x13c   :  { %v15931_v7 = vpop.eup %15930 }
 0x13d   :  { %v15933_v35 = vpop.eup %15932  ;;  %v855_v41 = vadd.f32 1.0, %v15931_v7  ;;  %v16452_v7 = vmov 1  }
 0x13e   :  { %15917 = vset.pattern.permute.xlu0 %v16452_v7 }
 0x13f   :  { %15938 = vrcp.f32 %v855_v41  ;;  %172 = vperm.xlu0 %15917, %v16564_v26  }
 0x140   :  { %v15935_v36 = vpop.eup %15934 }
 0x141   :  { %v15937_v37 = vpop.eup %15936  ;;  %v859_v40 = vmul.f32 %v15935_v36, %v15933_v35  ;;  %v56_v35 = vld [vmem:[#allocation5 + $0x8] sm:$0xff] }
 0x142   :  { %v858_v42 = vmul.f32 0.0, %v15937_v37  ;;  %v16744_v36 = vrot.slane %v56_v35, %v133_v5  ;;  %v16748_v37 = vrot.slane %v56_v35, %v143_v8  ;;  %v16758_v8 = vrot.slane %v56_v35, %v153_v29 }
 0x144   :  { %v16696_v47 = vadd.f32 %v859_v40, %v858_v42 }
 0x146   :  { %15940 = vtanh.f32 %v16696_v47 }
 0x149   :  { %v15939_v58 = vpop.eup %15938 }
 0x150   :  { %v15941_v59 = vpop.eup %15940 }
 0x151   :  { %v16703_v17 = vmul.f32 %v15941_v59, %v15939_v58  ;;  %v16754_v59 = vrot.slane %v56_v35, %v163_v23 }
 0x153   :  { %13220 = vmatmul.mubr.msk.f32.vlgmr.msra.gmra.mrb[0].mxu0 %vm259_vm1, %v16703_v17  ;;  %13231 = vmatmul.mubr.msk.f32.vlgmr.msra.gmra.mrb[0].mxu1 %vm259_vm1, %v16703_v17 }
 0x154   :  { %14879 = vmatpush3.bf16.msra.mxu0 %v16699_v60  ;;  %14885 = vmatpush3.bf16.msra.mxu1 %v16701_v62 }
 0x155   :  { %14880 = vmatprep.subr.bf16.mxu0 %v18275_v0  ;;  %14886 = vmatprep.subr.bf16.mxu1 %v18275_v0 }
 0x156   :  { %13241 = vmatprep.mubr.msk.f32.mxu0 %vm16449_vm0, %v18273_v1  ;;  %13252 = vmatprep.mubr.msk.f32.mxu1 %vm16449_vm0, %v18273_v1 }
 0x158   :  { %14882 = vmatpush3.bf16.msra.mxu0 %v16711_v30  ;;  %14888 = vmatpush3.bf16.msra.mxu1 %v16713_v12 }
 0x159   :  { %14889 = vmatprep.subr.bf16.mxu0 %v18275_v0  ;;  %14895 = vmatprep.subr.bf16.mxu1 %v18275_v0 }
 0x15b   :  { %13242 = vmatmul.mubr.msk.f32.vlgmr.msra.gmra.mrb[2].mxu0 %vm259_vm1, %v16703_v17  ;;  %13253 = vmatmul.mubr.msk.f32.vlgmr.msra.gmra.mrb[2].mxu1 %vm259_vm1, %v16703_v17 }
 0x15c   :  { %14891 = vmatpush3.bf16.msra.mxu0 %v16539_v6  ;;  %14897 = vmatpush3.bf16.msra.mxu1 %v16541_v10 }
 0x15d   :  { %14892 = vmatprep.subr.bf16.mxu0 %v18275_v0  ;;  %14898 = vmatprep.subr.bf16.mxu1 %v18275_v0 }
 0x15e   :  { %13263 = vmatprep.mubr.msk.f32.mxu0 %vm16449_vm0, %v18273_v1  ;;  %13274 = vmatprep.mubr.msk.f32.mxu1 %vm16449_vm0, %v18273_v1 }
 0x160   :  { %14894 = vmatpush3.bf16.msra.mxu0 %v16544_v13  ;;  %14900 = vmatpush3.bf16.msra.mxu1 %v16548_v14 }
 0x161   :  { %14901 = vmatprep.subr.bf16.mxu0 %v18275_v0  ;;  %14907 = vmatprep.subr.bf16.mxu1 %v18275_v0 }
 0x226   :  { %v932_v40 = vpop.f32.mrb[0].mxu0  ;;  %v1003_v41 = vpop.f32.mrb[0].mxu1 }
 0x227   :  { %v15745_v42 = vadd.f32 %v932_v40, %v16744_v36  ;;  %v15746_v48 = vadd.f32 %v1003_v41, %v16748_v37  ;;  %v13221_v52 = vpop.f32.mrb[1].mxu0  ;;  %v13232_v54 = vpop.f32.mrb[1].mxu1 }
 0x229   :  { %v12138_v56 = vmul.f32 -1.442695, %v15745_v42  ;;  %v12139_v58 = vmul.f32 -1.442695, %v15746_v48 }
 0x22b   :  { %15942 = vpow2.f32 %v12138_v56 }
 0x22c   :  { %15944 = vpow2.f32 %v12139_v58 }
 0x22e   :  { %v1074_v5 = vpop.f32.mrb[2].mxu0  ;;  %v1145_v3 = vpop.f32.mrb[2].mxu1 }
 0x22f   :  { %v15748_v21 = vadd.f32 %v1145_v3, %v16754_v59  ;;  %v13243_v24 = vpop.f32.mrb[3].mxu0  ;;  %v13254_v28 = vpop.f32.mrb[3].mxu1  ;;  %v15747_v40 = vadd.f32 %v1074_v5, %v16758_v8 }
 0x231   :  { %v12140_v7 = vmul.f32 -1.442695, %v15748_v21 }
 0x233   :  { %15946 = vpow2.f32 %v12140_v7 }
 0x234   :  { %15948 = vtanh.f32 %v15747_v40 }
 0x235   :  { %v15943_v41 = vpop.eup %15942 }
 0x236   :  { %v15945_v42 = vpop.eup %15944  ;;  %v1153_v48 = vadd.f32 1.0, %v15943_v41 }
 0x237   :  { %v1159_v23 = vadd.f32 1.0, %v15945_v42 }
 0x238   :  { %15950 = vrcp.f32 %v1153_v48 }
 0x239   :  { %15952 = vrcp.f32 %v1159_v23 }
 0x23d   :  { %v15947_v52 = vpop.eup %15946 }
 0x23e   :  { %v15949_v54 = vpop.eup %15948  ;;  %v1166_v58 = vadd.f32 1.0, %v15947_v52 }
 0x240   :  { %15954 = vrcp.f32 %v1166_v58 }
 0x242   :  { %v15951_v56 = vpop.eup %15950 }
 0x243   :  { %v15953_v29 = vpop.eup %15952  ;;  %v1170_v35 = vmul.f32 %v15951_v56, %v15949_v54 }
 0x244   :  { %v1169_v3 = vmul.f32 0.0, %v15953_v29 }
 0x246   :  { %v16762_v24 = vadd.f32 %v1170_v35, %v1169_v3 }
 0x248   :  { %15956 = vtanh.f32 %v16762_v24 }
 0x24a   :  { %v15955_v5 = vpop.eup %15954 }
 0x252   :  { %v15957_v21 = vpop.eup %15956 }
 0x253   :  { %v16765_v28 = vmul.f32 %v15957_v21, %v15955_v5 }
 0x255   :  { %13264 = vmatmul.mubr.msk.f32.vlgmr.msra.gmra.mrb[8].mxu0 %vm259_vm1, %v16765_v28  ;;  %13275 = vmatmul.mubr.msk.f32.vlgmr.msra.gmra.mrb[8].mxu1 %vm259_vm1, %v16765_v28 }
 0x256   :  { %14903 = vmatpush3.bf16.msra.mxu0 %v16552_v19  ;;  %14909 = vmatpush3.bf16.msra.mxu1 %v16556_v20 }
 0x257   :  { %14904 = vmatprep.subr.bf16.mxu0 %v18275_v0  ;;  %14910 = vmatprep.subr.bf16.mxu1 %v18275_v0 }
 0x258   :  { %13285 = vmatprep.mubr.msk.f32.mxu0 %vm16449_vm0, %v18273_v1  ;;  %13296 = vmatprep.mubr.msk.f32.mxu1 %vm16449_vm0, %v18273_v1 }
 0x25a   :  { %14906 = vmatpush3.bf16.msra.mxu0 %v16562_v25  ;;  %14912 = vmatpush3.bf16.msra.mxu1 %v16568_v27 }
 0x25b   :  { %14913 = vmatprep.subr.bf16.mxu0 %v18275_v0  ;;  %14919 = vmatprep.subr.bf16.mxu1 %v18275_v0 }
 0x25d   :  { %13286 = vmatmul.mubr.msk.f32.vlgmr.msra.gmra.mrb[10].mxu0 %vm259_vm1, %v16765_v28  ;;  %13297 = vmatmul.mubr.msk.f32.vlgmr.msra.gmra.mrb[10].mxu1 %vm259_vm1, %v16765_v28 }
 0x25e   :  { %14915 = vmatpush3.bf16.msra.mxu0 %v16577_v32  ;;  %14921 = vmatpush3.bf16.msra.mxu1 %v16581_v33 }
 0x25f   :  { %14916 = vmatprep.subr.bf16.mxu0 %v18275_v0  ;;  %14922 = vmatprep.subr.bf16.mxu1 %v18275_v0 }
 0x260   :  { %13307 = vmatprep.mubr.msk.f32.mxu0 %vm16449_vm0, %v18273_v1  ;;  %13318 = vmatprep.mubr.msk.f32.mxu1 %vm16449_vm0, %v18273_v1 }
 0x262   :  { %14918 = vmatpush3.bf16.msra.mxu0 %v16587_v38  ;;  %14924 = vmatpush3.bf16.msra.mxu1 %v16591_v39 }
 0x263   :  { %14925 = vmatprep.subr.bf16.mxu0 %v18275_v0  ;;  %14931 = vmatprep.subr.bf16.mxu1 %v18275_v0 }
 0x265   :  { %13308 = vmatmul.mubr.msk.f32.vlgmr.msra.gmra.mrb[12].mxu0 %vm259_vm1, %v16703_v17  ;;  %13319 = vmatmul.mubr.msk.f32.vlgmr.msra.gmra.mrb[12].mxu1 %vm259_vm1, %v16703_v17 }
 0x266   :  { %14927 = vmatpush3.bf16.msra.mxu0 %v16599_v44  ;;  %14933 = vmatpush3.bf16.msra.mxu1 %v16603_v45 }
 0x267   :  { %14928 = vmatprep.subr.bf16.mxu0 %v18275_v0  ;;  %14934 = vmatprep.subr.bf16.mxu1 %v18275_v0 }
 0x268   :  { %13329 = vmatprep.mubr.msk.f32.mxu0 %vm16449_vm0, %v18273_v1  ;;  %13340 = vmatprep.mubr.msk.f32.mxu1 %vm16449_vm0, %v18273_v1 }
 0x26a   :  { %14930 = vmatpush3.bf16.msra.mxu0 %v16609_v50  ;;  %14936 = vmatpush3.bf16.msra.mxu1 %v16613_v51 }
 0x26b   :  { %14937 = vmatprep.subr.bf16.mxu0 %v18275_v0  ;;  %14943 = vmatprep.subr.bf16.mxu1 %v18275_v0 }
 0x26d   :  { %13330 = vmatmul.mubr.msk.f32.vlgmr.msra.gmra.mrb[14].mxu0 %vm259_vm1, %v16703_v17  ;;  %13341 = vmatmul.mubr.msk.f32.vlgmr.msra.gmra.mrb[14].mxu1 %vm259_vm1, %v16703_v17  ;;  %v173_v17 = vpop.permute.xlu0 %172 }
 0x26e   :  { %14939 = vmatpush3.bf16.msra.mxu0 %v16630_v55  ;;  %14945 = vmatpush3.bf16.msra.mxu1 %v16632_v57  ;;  %v175_v7 = vmul.f32 %v173_v17, %v16652_v9  ;;  %v177_v40 = vmul.f32 %v173_v17, %v16657_v15  ;;  %v181_v3 = vmul.f32 %v173_v17, %v16676_v31 }
 0x26f   :  { %14940 = vmatprep.subr.bf16.mxu0 %v18275_v0  ;;  %14946 = vmatprep.subr.bf16.mxu1 %v18275_v0  ;;  %v179_v5 = vmul.f32 %v173_v17, %v16681_v43 }
 0x270   :  { %13351 = vmatprep.mubr.msk.f32.mxu0 %vm16449_vm0, %v18273_v1  ;;  %13362 = vmatprep.mubr.msk.f32.mxu1 %vm16449_vm0, %v18273_v1  ;;  %v176_v41 = vadd.f32 %v175_v7, %v16663_v18  ;;  %v178_v42 = vadd.f32 %v177_v40, %v16668_v22  ;;  %v182_v21 = vadd.f32 %v181_v3, %v16687_v49 }
 0x272   :  { %14942 = vmatpush3.bf16.msra.mxu0 %v16638_v61  ;;  %14948 = vmatpush3.bf16.msra.mxu1 %v16640_v63 }
 0x273   :  { %14949 = vmatprep.subr.bf16.mxu0 %v18275_v0  ;;  %14955 = vmatprep.subr.bf16.mxu1 %v18275_v0 }
 0x338   :  { %v1523_v48 = vpop.f32.mrb[12].mxu0  ;;  %v1594_v23 = vpop.f32.mrb[12].mxu1 }
 0x339   :  { %v1527_v52 = vadd.f32 %v1523_v48, %v176_v41  ;;  %v1598_v54 = vadd.f32 %v1594_v23, %v178_v42  ;;  %v13309_v56 = vpop.f32.mrb[13].mxu0  ;;  %v13320_v29 = vpop.f32.mrb[13].mxu1  ;;  %v180_v41 = vadd.f32 %v179_v5, %v16692_v53 }
 0x33b   :  { %v12149_v35 = vmul.f32 -1.442695, %v1527_v52  ;;  %v12150_v58 = vmul.f32 -1.442695, %v1598_v54 }
 0x33d   :  { %15958 = vpow2.f32 %v12149_v35 }
 0x33e   :  { %15960 = vpow2.f32 %v12150_v58 }
 0x340   :  { %v1665_v34 = vpop.f32.mrb[14].mxu0  ;;  %v1736_v7 = vpop.f32.mrb[14].mxu1 }
 0x341   :  { %v1740_v46 = vadd.f32 %v1736_v7, %v182_v21  ;;  %v13331_v40 = vpop.f32.mrb[15].mxu0  ;;  %v13342_v16 = vpop.f32.mrb[15].mxu1  ;;  %v1669_v48 = vadd.f32 %v1665_v34, %v180_v41 }
 0x343   :  { %v12151_v42 = vmul.f32 -1.442695, %v1740_v46 }
 0x345   :  { %15962 = vpow2.f32 %v12151_v42 }
 0x346   :  { %15964 = vtanh.f32 %v1669_v48 }
 0x347   :  { %v15959_v23 = vpop.eup %15958 }
 0x348   :  { %v15961_v52 = vpop.eup %15960  ;;  %v1744_v54 = vadd.f32 1.0, %v15959_v23 }
 0x349   :  { %v1750_v56 = vadd.f32 1.0, %v15961_v52 }
 0x34a   :  { %15966 = vrcp.f32 %v1744_v54 }
 0x34b   :  { %15968 = vrcp.f32 %v1750_v56 }
 0x34f   :  { %v15963_v17 = vpop.eup %15962 }
 0x350   :  { %v15965_v29 = vpop.eup %15964  ;;  %v1757_v21 = vadd.f32 1.0, %v15963_v17 }
 0x352   :  { %15970 = vrcp.f32 %v1757_v21 }
 0x354   :  { %v15967_v35 = vpop.eup %15966 }
 0x355   :  { %v15969_v58 = vpop.eup %15968  ;;  %v1761_v3 = vmul.f32 %v15967_v35, %v15965_v29 }
 0x356   :  { %v1760_v16 = vmul.f32 %v15969_v58, %v16696_v47  ;;  %v16453_v47 = vmov 2  }
 0x357   :  { %15918 = vset.pattern.permute.xlu1 %v16453_v47 }
 0x358   :  { %v16840_v7 = vadd.f32 %v1761_v3, %v1760_v16  ;;  %184 = vperm.xlu1 %15918, %v16564_v26  }
 0x35a   :  { %15972 = vtanh.f32 %v16840_v7 }
 0x35c   :  { %v15971_v34 = vpop.eup %15970 }
 0x364   :  { %v15973_v46 = vpop.eup %15972 }
 0x365   :  { %v16843_v5 = vmul.f32 %v15973_v46, %v15971_v34 }
 0x367   :  { %13352 = vmatmul.mubr.msk.f32.vlgmr.msra.gmra.mrb[8].mxu0 %vm259_vm1, %v16843_v5  ;;  %13363 = vmatmul.mubr.msk.f32.vlgmr.msra.gmra.mrb[8].mxu1 %vm259_vm1, %v16843_v5 }
 0x368   :  { %14951 = vmatpush3.bf16.msra.mxu0 %v16699_v60  ;;  %14957 = vmatpush3.bf16.msra.mxu1 %v16701_v62 }
 0x369   :  { %14952 = vmatprep.subr.bf16.mxu0 %v18275_v0  ;;  %14958 = vmatprep.subr.bf16.mxu1 %v18275_v0 }
 0x36a   :  { %13373 = vmatprep.mubr.msk.f32.mxu0 %vm16449_vm0, %v18273_v1  ;;  %13384 = vmatprep.mubr.msk.f32.mxu1 %vm16449_vm0, %v18273_v1 }
 0x36c   :  { %14954 = vmatpush3.bf16.msra.mxu0 %v16711_v30  ;;  %14960 = vmatpush3.bf16.msra.mxu1 %v16713_v12 }
 0x36d   :  { %14961 = vmatprep.subr.bf16.mxu0 %v18275_v0  ;;  %14967 = vmatprep.subr.bf16.mxu1 %v18275_v0 }
 0x36f   :  { %13374 = vmatmul.mubr.msk.f32.vlgmr.msra.gmra.mrb[10].mxu0 %vm259_vm1, %v16843_v5  ;;  %13385 = vmatmul.mubr.msk.f32.vlgmr.msra.gmra.mrb[10].mxu1 %vm259_vm1, %v16843_v5 }
 0x370   :  { %14963 = vmatpush3.bf16.msra.mxu0 %v16539_v6  ;;  %14969 = vmatpush3.bf16.msra.mxu1 %v16541_v10 }
 0x371   :  { %14964 = vmatprep.subr.bf16.mxu0 %v18275_v0  ;;  %14970 = vmatprep.subr.bf16.mxu1 %v18275_v0 }
 0x372   :  { %13395 = vmatprep.mubr.msk.f32.mxu0 %vm16449_vm0, %v18273_v1  ;;  %13406 = vmatprep.mubr.msk.f32.mxu1 %vm16449_vm0, %v18273_v1 }
 0x374   :  { %14966 = vmatpush3.bf16.msra.mxu0 %v16544_v13  ;;  %14972 = vmatpush3.bf16.msra.mxu1 %v16548_v14 }
 0x375   :  { %14973 = vmatprep.subr.bf16.mxu0 %v18275_v0  ;;  %14979 = vmatprep.subr.bf16.mxu1 %v18275_v0 }
 0x43a   :  { %v1834_v40 = vpop.f32.mrb[8].mxu0  ;;  %v1905_v41 = vpop.f32.mrb[8].mxu1 }
 0x43b   :  { %v15749_v42 = vadd.f32 %v1834_v40, %v16744_v36  ;;  %v15750_v48 = vadd.f32 %v1905_v41, %v16748_v37  ;;  %v13353_v23 = vpop.f32.mrb[9].mxu0  ;;  %v13364_v52 = vpop.f32.mrb[9].mxu1 }
 0x43d   :  { %v12156_v54 = vmul.f32 -1.442695, %v15749_v42  ;;  %v12157_v56 = vmul.f32 -1.442695, %v15750_v48 }
 0x43f   :  { %15974 = vpow2.f32 %v12156_v54 }
 0x440   :  { %15976 = vpow2.f32 %v12157_v56 }
 0x442   :  { %v1976_v17 = vpop.f32.mrb[10].mxu0  ;;  %v2047_v29 = vpop.f32.mrb[10].mxu1 }
 0x443   :  { %v15752_v35 = vadd.f32 %v2047_v29, %v16754_v59  ;;  %v13375_v58 = vpop.f32.mrb[11].mxu0  ;;  %v13386_v3 = vpop.f32.mrb[11].mxu1  ;;  %v15751_v26 = vadd.f32 %v1976_v17, %v16758_v8 }
 0x445   :  { %v12158_v21 = vmul.f32 -1.442695, %v15752_v35 }
 0x447   :  { %15978 = vpow2.f32 %v12158_v21 }
 0x448   :  { %15980 = vtanh.f32 %v15751_v26 }
 0x449   :  { %v15975_v16 = vpop.eup %15974 }
 0x44a   :  { %v15977_v34 = vpop.eup %15976  ;;  %v2055_v46 = vadd.f32 1.0, %v15975_v16 }
 0x44b   :  { %v2061_v47 = vadd.f32 1.0, %v15977_v34 }
 0x44c   :  { %15982 = vrcp.f32 %v2055_v46 }
 0x44d   :  { %15984 = vrcp.f32 %v2061_v47 }
 0x451   :  { %v15979_v40 = vpop.eup %15978 }
 0x452   :  { %v15981_v41 = vpop.eup %15980  ;;  %v2068_v52 = vadd.f32 1.0, %v15979_v40 }
 0x454   :  { %15986 = vrcp.f32 %v2068_v52 }
 0x456   :  { %v15983_v42 = vpop.eup %15982 }
 0x457   :  { %v15985_v48 = vpop.eup %15984  ;;  %v2072_v23 = vmul.f32 %v15983_v42, %v15981_v41 }
 0x458   :  { %v2071_v54 = vmul.f32 %v15985_v48, %v16762_v24  ;;  %v185_v24 = vpop.permute.xlu1 %184 }
 0x459   :  { %v189_v58 = vmul.f32 %v185_v24, %v16657_v15  ;;  %v193_v48 = vmul.f32 %v185_v24, %v16676_v31 }
 0x45a   :  { %v16883_v56 = vadd.f32 %v2072_v23, %v2071_v54  ;;  %v191_v23 = vmul.f32 %v185_v24, %v16681_v43 }
 0x45b   :  { %v190_v21 = vadd.f32 %v189_v58, %v16668_v22  ;;  %v194_v52 = vadd.f32 %v193_v48, %v16687_v49 }
 0x45c   :  { %15988 = vtanh.f32 %v16883_v56 }
 0x45e   :  { %v15987_v17 = vpop.eup %15986 }
 0x466   :  { %v15989_v29 = vpop.eup %15988 }
 0x467   :  { %v16886_v35 = vmul.f32 %v15989_v29, %v15987_v17 }
 0x469   :  { %13396 = vmatmul.mubr.msk.f32.vlgmr.msra.gmra.mrb[16].mxu0 %vm259_vm1, %v16886_v35  ;;  %13407 = vmatmul.mubr.msk.f32.vlgmr.msra.gmra.mrb[16].mxu1 %vm259_vm1, %v16886_v35 }
 0x46a   :  { %14975 = vmatpush3.bf16.msra.mxu0 %v16552_v19  ;;  %14981 = vmatpush3.bf16.msra.mxu1 %v16556_v20 }
 0x46b   :  { %14976 = vmatprep.subr.bf16.mxu0 %v18275_v0  ;;  %14982 = vmatprep.subr.bf16.mxu1 %v18275_v0 }
 0x46c   :  { %13417 = vmatprep.mubr.msk.f32.mxu0 %vm16449_vm0, %v18273_v1  ;;  %13428 = vmatprep.mubr.msk.f32.mxu1 %vm16449_vm0, %v18273_v1 }
 0x46e   :  { %14978 = vmatpush3.bf16.msra.mxu0 %v16562_v25  ;;  %14984 = vmatpush3.bf16.msra.mxu1 %v16568_v27 }
 0x46f   :  { %14985 = vmatprep.subr.bf16.mxu0 %v18275_v0  ;;  %14991 = vmatprep.subr.bf16.mxu1 %v18275_v0 }
 0x471   :  { %13418 = vmatmul.mubr.msk.f32.vlgmr.msra.gmra.mrb[18].mxu0 %vm259_vm1, %v16886_v35  ;;  %13429 = vmatmul.mubr.msk.f32.vlgmr.msra.gmra.mrb[18].mxu1 %vm259_vm1, %v16886_v35 }
 0x472   :  { %14987 = vmatpush3.bf16.msra.mxu0 %v16577_v32  ;;  %14993 = vmatpush3.bf16.msra.mxu1 %v16581_v33 }
 0x473   :  { %14988 = vmatprep.subr.bf16.mxu0 %v18275_v0  ;;  %14994 = vmatprep.subr.bf16.mxu1 %v18275_v0 }
 0x474   :  { %13439 = vmatprep.mubr.msk.f32.mxu0 %vm16449_vm0, %v18273_v1  ;;  %13450 = vmatprep.mubr.msk.f32.mxu1 %vm16449_vm0, %v18273_v1 }
 0x476   :  { %14990 = vmatpush3.bf16.msra.mxu0 %v16587_v38  ;;  %14996 = vmatpush3.bf16.msra.mxu1 %v16591_v39 }
 0x477   :  { %14997 = vmatprep.subr.bf16.mxu0 %v18275_v0  ;;  %15003 = vmatprep.subr.bf16.mxu1 %v18275_v0 }
 0x479   :  { %13440 = vmatmul.mubr.msk.f32.vlgmr.msra.gmra.mrb[20].mxu0 %vm259_vm1, %v16843_v5  ;;  %13451 = vmatmul.mubr.msk.f32.vlgmr.msra.gmra.mrb[20].mxu1 %vm259_vm1, %v16843_v5 }
 0x47a   :  { %14999 = vmatpush3.bf16.msra.mxu0 %v16599_v44  ;;  %15005 = vmatpush3.bf16.msra.mxu1 %v16603_v45 }
 0x47b   :  { %15000 = vmatprep.subr.bf16.mxu0 %v18275_v0  ;;  %15006 = vmatprep.subr.bf16.mxu1 %v18275_v0 }
 0x47c   :  { %13461 = vmatprep.mubr.msk.f32.mxu0 %vm16449_vm0, %v18273_v1  ;;  %13472 = vmatprep.mubr.msk.f32.mxu1 %vm16449_vm0, %v18273_v1 }
 0x47e   :  { %15002 = vmatpush3.bf16.msra.mxu0 %v16609_v50  ;;  %15008 = vmatpush3.bf16.msra.mxu1 %v16613_v51 }
 0x47f   :  { %15009 = vmatprep.subr.bf16.mxu0 %v18275_v0  ;;  %15015 = vmatprep.subr.bf16.mxu1 %v18275_v0 }
 0x481   :  { %13462 = vmatmul.mubr.msk.f32.vlgmr.msra.gmra.mrb[22].mxu0 %vm259_vm1, %v16843_v5  ;;  %13473 = vmatmul.mubr.msk.f32.vlgmr.msra.gmra.mrb[22].mxu1 %vm259_vm1, %v16843_v5  ;;  %v187_v5 = vmul.f32 %v185_v24, %v16652_v9 }
 0x482   :  { %15011 = vmatpush3.bf16.msra.mxu0 %v16630_v55  ;;  %15017 = vmatpush3.bf16.msra.mxu1 %v16632_v57 }
 0x483   :  { %15012 = vmatprep.subr.bf16.mxu0 %v18275_v0  ;;  %15018 = vmatprep.subr.bf16.mxu1 %v18275_v0  ;;  %v188_v3 = vadd.f32 %v187_v5, %v16663_v18 }
 0x484   :  { %13483 = vmatprep.mubr.msk.f32.mxu0 %vm16449_vm0, %v18273_v1  ;;  %13494 = vmatprep.mubr.msk.f32.mxu1 %vm16449_vm0, %v18273_v1 }
 0x486   :  { %15014 = vmatpush3.bf16.msra.mxu0 %v16638_v61  ;;  %15020 = vmatpush3.bf16.msra.mxu1 %v16640_v63 }
 0x487   :  { %15021 = vmatprep.subr.bf16.mxu0 %v18275_v0  ;;  %15027 = vmatprep.subr.bf16.mxu1 %v18275_v0 }
 0x54c   :  { %v2425_v26 = vpop.f32.mrb[20].mxu0  ;;  %v2496_v16 = vpop.f32.mrb[20].mxu1 }
 0x54d   :  { %v2429_v34 = vadd.f32 %v2425_v26, %v188_v3  ;;  %v2500_v46 = vadd.f32 %v2496_v16, %v190_v21  ;;  %v13441_v47 = vpop.f32.mrb[21].mxu0  ;;  %v13452_v40 = vpop.f32.mrb[21].mxu1  ;;  %v192_v3 = vadd.f32 %v191_v23, %v16692_v53 }
 0x54f   :  { %v12167_v41 = vmul.f32 -1.442695, %v2429_v34  ;;  %v12168_v42 = vmul.f32 -1.442695, %v2500_v46 }
 0x551   :  { %15990 = vpow2.f32 %v12167_v41 }
 0x552   :  { %15992 = vpow2.f32 %v12168_v42 }
 0x554   :  { %v2567_v54 = vpop.f32.mrb[22].mxu0  ;;  %v2638_v17 = vpop.f32.mrb[22].mxu1 }
 0x555   :  { %v2642_v29 = vadd.f32 %v2638_v17, %v194_v52  ;;  %v13463_v5 = vpop.f32.mrb[23].mxu0  ;;  %v13474_v58 = vpop.f32.mrb[23].mxu1  ;;  %v2571_v26 = vadd.f32 %v2567_v54, %v192_v3 }
 0x556   :  { %v16998_v58 = vld [vmem:[#allocation2] sm:$0x3] }
 0x557   :  { %v12169_v21 = vmul.f32 -1.442695, %v2642_v29 }
 0x559   :  { %15994 = vpow2.f32 %v12169_v21 }
 0x55a   :  { %15996 = vtanh.f32 %v2571_v26 }
 0x55b   :  { %v15991_v16 = vpop.eup %15990 }
 0x55c   :  { %v15993_v34 = vpop.eup %15992  ;;  %v2646_v46 = vadd.f32 1.0, %v15991_v16 }
 0x55d   :  { %v2652_v47 = vadd.f32 1.0, %v15993_v34 }
 0x55e   :  { %15998 = vrcp.f32 %v2646_v46 }
 0x55f   :  { %16000 = vrcp.f32 %v2652_v47 }
 0x563   :  { %v15995_v24 = vpop.eup %15994 }
 0x564   :  { %v15997_v40 = vpop.eup %15996  ;;  %v2659_v52 = vadd.f32 1.0, %v15995_v24 }
 0x566   :  { %16002 = vrcp.f32 %v2659_v52 }
 0x568   :  { %v15999_v41 = vpop.eup %15998 }
 0x569   :  { %v16001_v42 = vpop.eup %16000  ;;  %v2663_v48 = vmul.f32 %v15999_v41, %v15997_v40 }
 0x56a   :  { %v2662_v17 = vmul.f32 %v16001_v42, %v16840_v7  ;;  %v16454_v7 = vmov 3  }
 0x56b   :  { %15919 = vset.pattern.permute.xlu1 %v16454_v7 }
 0x56c   :  { %v16961_v5 = vadd.f32 %v2663_v48, %v2662_v17  ;;  %196 = vperm.xlu1 %15919, %v16998_v58  }
 0x56e   :  { %16004 = vtanh.f32 %v16961_v5 }
 0x570   :  { %v16003_v23 = vpop.eup %16002 }
 0x578   :  { %v16005_v54 = vpop.eup %16004 }
 0x579   :  { %v16964_v29 = vmul.f32 %v16005_v54, %v16003_v23 }
 0x57b   :  { %13484 = vmatmul.mubr.msk.f32.vlgmr.msra.gmra.mrb[16].mxu0 %vm259_vm1, %v16964_v29  ;;  %13495 = vmatmul.mubr.msk.f32.vlgmr.msra.gmra.mrb[16].mxu1 %vm259_vm1, %v16964_v29 }
 0x57c   :  { %15023 = vmatpush3.bf16.msra.mxu0 %v16699_v60  ;;  %15029 = vmatpush3.bf16.msra.mxu1 %v16701_v62 }
 0x57d   :  { %15024 = vmatprep.subr.bf16.mxu0 %v18275_v0  ;;  %15030 = vmatprep.subr.bf16.mxu1 %v18275_v0 }
 0x57e   :  { %13505 = vmatprep.mubr.msk.f32.mxu0 %vm16449_vm0, %v18273_v1  ;;  %13516 = vmatprep.mubr.msk.f32.mxu1 %vm16449_vm0, %v18273_v1 }
 0x580   :  { %15026 = vmatpush3.bf16.msra.mxu0 %v16711_v30  ;;  %15032 = vmatpush3.bf16.msra.mxu1 %v16713_v12 }
 0x581   :  { %15033 = vmatprep.subr.bf16.mxu0 %v18275_v0  ;;  %15039 = vmatprep.subr.bf16.mxu1 %v18275_v0 }
 0x583   :  { %13506 = vmatmul.mubr.msk.f32.vlgmr.msra.gmra.mrb[18].mxu0 %vm259_vm1, %v16964_v29  ;;  %13517 = vmatmul.mubr.msk.f32.vlgmr.msra.gmra.mrb[18].mxu1 %vm259_vm1, %v16964_v29 }
 0x584   :  { %15035 = vmatpush3.bf16.msra.mxu0 %v16539_v6  ;;  %15041 = vmatpush3.bf16.msra.mxu1 %v16541_v10 }
 0x585   :  { %15036 = vmatprep.subr.bf16.mxu0 %v18275_v0  ;;  %15042 = vmatprep.subr.bf16.mxu1 %v18275_v0 }
 0x586   :  { %13527 = vmatprep.mubr.msk.f32.mxu0 %vm16449_vm0, %v18273_v1  ;;  %13538 = vmatprep.mubr.msk.f32.mxu1 %vm16449_vm0, %v18273_v1 }
 0x588   :  { %15038 = vmatpush3.bf16.msra.mxu0 %v16544_v13  ;;  %15044 = vmatpush3.bf16.msra.mxu1 %v16548_v14 }
 0x589   :  { %15045 = vmatprep.subr.bf16.mxu0 %v18275_v0  ;;  %15051 = vmatprep.subr.bf16.mxu1 %v18275_v0 }
 0x64e   :  { %v2736_v3 = vpop.f32.mrb[16].mxu0  ;;  %v2807_v21 = vpop.f32.mrb[16].mxu1 }
 0x64f   :  { %v15753_v26 = vadd.f32 %v2736_v3, %v16744_v36  ;;  %v15754_v16 = vadd.f32 %v2807_v21, %v16748_v37  ;;  %v13485_v34 = vpop.f32.mrb[17].mxu0  ;;  %v13496_v46 = vpop.f32.mrb[17].mxu1 }
 0x651   :  { %v12174_v47 = vmul.f32 -1.442695, %v15753_v26  ;;  %v12175_v24 = vmul.f32 -1.442695, %v15754_v16 }
 0x653   :  { %16006 = vpow2.f32 %v12174_v47 }
 0x654   :  { %16008 = vpow2.f32 %v12175_v24 }
 0x656   :  { %v2878_v40 = vpop.f32.mrb[18].mxu0  ;;  %v2949_v41 = vpop.f32.mrb[18].mxu1 }
 0x657   :  { %v15756_v42 = vadd.f32 %v2949_v41, %v16754_v59  ;;  %v13507_v48 = vpop.f32.mrb[19].mxu0  ;;  %v13518_v52 = vpop.f32.mrb[19].mxu1  ;;  %v15755_v23 = vadd.f32 %v2878_v40, %v16758_v8 }
 0x658   :  { %v7488_v52 = vrot.slane %v16886_v35, 6 }
 0x659   :  { %v12176_v17 = vmul.f32 -1.442695, %v15756_v42 }
 0x65b   :  { %16010 = vpow2.f32 %v12176_v17 }
 0x65c   :  { %16012 = vtanh.f32 %v15755_v23 }
 0x65d   :  { %v16007_v54 = vpop.eup %16006 }
 0x65e   :  { %v16009_v7 = vpop.eup %16008  ;;  %v2957_v3 = vadd.f32 1.0, %v16007_v54 }
 0x65f   :  { %v2963_v21 = vadd.f32 1.0, %v16009_v7 }
 0x660   :  { %16014 = vrcp.f32 %v2957_v3 }
 0x661   :  { %16016 = vrcp.f32 %v2963_v21 }
 0x665   :  { %v16011_v26 = vpop.eup %16010 }
 0x666   :  { %v16013_v16 = vpop.eup %16012  ;;  %v2970_v24 = vadd.f32 1.0, %v16011_v26 }
 0x668   :  { %16018 = vrcp.f32 %v2970_v24 }
 0x66a   :  { %v16015_v34 = vpop.eup %16014 }
 0x66b   :  { %v16017_v46 = vpop.eup %16016  ;;  %v2974_v47 = vmul.f32 %v16015_v34, %v16013_v16 }
 0x66c   :  { %v2973_v41 = vmul.f32 %v16017_v46, %v16883_v56  ;;  %v7502_v56 = vsel %vm7501_vm2, %v16765_v28, %v7488_v52  ;;  %v197_v28 = vpop.permute.xlu1 %196 }
 0x66d   :  { %v201_v54 = vmul.f32 %v197_v28, %v16657_v15 }
 0x66e   :  { %v17006_v48 = vadd.f32 %v2974_v47, %v2973_v41 }
 0x66f   :  { %v202_v3 = vadd.f32 %v201_v54, %v16668_v22 }
 0x670   :  { %16020 = vtanh.f32 %v17006_v48 }
 0x672   :  { %v16019_v40 = vpop.eup %16018 }
 0x67a   :  { %v16021_v42 = vpop.eup %16020 }
 0x67b   :  { %v2977_v17 = vmul.f32 %v16021_v42, %v16019_v40  ;;  %v205_v40 = vmul.f32 %v197_v28, %v16676_v31  ;;  %v203_v42 = vmul.f32 %v197_v28, %v16681_v43 }
 0x67d   :  { %13528 = vmatmul.mubr.msk.f32.vlgmr.msra.gmra.mrb[24].mxu0 %vm259_vm1, %v2977_v17  ;;  %13539 = vmatmul.mubr.msk.f32.vlgmr.msra.gmra.mrb[24].mxu1 %vm259_vm1, %v2977_v17  ;;  %v7490_v23 = vrot.slane %v2977_v17, 4  ;;  %v206_v52 = vadd.f32 %v205_v40, %v16687_v49 }
 0x67e   :  { %15047 = vmatpush3.bf16.msra.mxu0 %v16552_v19  ;;  %15053 = vmatpush3.bf16.msra.mxu1 %v16556_v20 }
 0x67f   :  { %15048 = vmatprep.subr.bf16.mxu0 %v18275_v0  ;;  %15054 = vmatprep.subr.bf16.mxu1 %v18275_v0  ;;  %v17019_v35 = vsel %vm7503_vm3, %v7502_v56, %v7490_v23 }
 0x680   :  { %13549 = vmatprep.mubr.msk.f32.mxu0 %vm16449_vm0, %v18273_v1  ;;  %13560 = vmatprep.mubr.msk.f32.mxu1 %vm16449_vm0, %v18273_v1 }
 0x682   :  { %15050 = vmatpush3.bf16.msra.mxu0 %v16562_v25  ;;  %15056 = vmatpush3.bf16.msra.mxu1 %v16568_v27 }
 0x683   :  { %15057 = vmatprep.subr.bf16.mxu0 %v18275_v0  ;;  %15063 = vmatprep.subr.bf16.mxu1 %v18275_v0 }
 0x685   :  { %13550 = vmatmul.mubr.msk.f32.vlgmr.msra.gmra.mrb[26].mxu0 %vm259_vm1, %v2977_v17  ;;  %13561 = vmatmul.mubr.msk.f32.vlgmr.msra.gmra.mrb[26].mxu1 %vm259_vm1, %v2977_v17 }
 0x686   :  { %15059 = vmatpush3.bf16.msra.mxu0 %v16577_v32  ;;  %15065 = vmatpush3.bf16.msra.mxu1 %v16581_v33 }
 0x687   :  { %15060 = vmatprep.subr.bf16.mxu0 %v18275_v0  ;;  %15066 = vmatprep.subr.bf16.mxu1 %v18275_v0 }
 0x688   :  { %13571 = vmatprep.mubr.msk.f32.mxu0 %vm16449_vm0, %v18273_v1  ;;  %13582 = vmatprep.mubr.msk.f32.mxu1 %vm16449_vm0, %v18273_v1 }
 0x68a   :  { %15062 = vmatpush3.bf16.msra.mxu0 %v16587_v38  ;;  %15068 = vmatpush3.bf16.msra.mxu1 %v16591_v39 }
 0x68b   :  { %15069 = vmatprep.subr.bf16.mxu0 %v18275_v0  ;;  %15075 = vmatprep.subr.bf16.mxu1 %v18275_v0 }
 0x68d   :  { %13572 = vmatmul.mubr.msk.f32.vlgmr.msra.gmra.mrb[28].mxu0 %vm259_vm1, %v16964_v29  ;;  %13583 = vmatmul.mubr.msk.f32.vlgmr.msra.gmra.mrb[28].mxu1 %vm259_vm1, %v16964_v29 }
 0x68e   :  { %15071 = vmatpush3.bf16.msra.mxu0 %v16599_v44  ;;  %15077 = vmatpush3.bf16.msra.mxu1 %v16603_v45 }
 0x68f   :  { %15072 = vmatprep.subr.bf16.mxu0 %v18275_v0  ;;  %15078 = vmatprep.subr.bf16.mxu1 %v18275_v0 }
 0x690   :  { %13593 = vmatprep.mubr.msk.f32.mxu0 %vm16449_vm0, %v18273_v1  ;;  %13604 = vmatprep.mubr.msk.f32.mxu1 %vm16449_vm0, %v18273_v1 }
 0x692   :  { %15074 = vmatpush3.bf16.msra.mxu0 %v16609_v50  ;;  %15080 = vmatpush3.bf16.msra.mxu1 %v16613_v51 }
 0x693   :  { %15081 = vmatprep.subr.bf16.mxu0 %v18275_v0  ;;  %15087 = vmatprep.subr.bf16.mxu1 %v18275_v0 }
 0x695   :  { %13594 = vmatmul.mubr.msk.f32.vlgmr.msra.gmra.mrb[30].mxu0 %vm259_vm1, %v16964_v29  ;;  %13605 = vmatmul.mubr.msk.f32.vlgmr.msra.gmra.mrb[30].mxu1 %vm259_vm1, %v16964_v29  ;;  %v199_v29 = vmul.f32 %v197_v28, %v16652_v9 }
 0x696   :  { %15083 = vmatpush3.bf16.msra.mxu0 %v16630_v55  ;;  %15089 = vmatpush3.bf16.msra.mxu1 %v16632_v57 }
 0x697   :  { %15084 = vmatprep.subr.bf16.mxu0 %v18275_v0  ;;  %15090 = vmatprep.subr.bf16.mxu1 %v18275_v0  ;;  %v200_v7 = vadd.f32 %v199_v29, %v16663_v18 }
 0x698   :  { %13615 = vmatprep.mubr.msk.f32.mxu0 %vm16449_vm0, %v18273_v1  ;;  %13626 = vmatprep.mubr.msk.f32.mxu1 %vm16449_vm0, %v18273_v1 }
 0x69a   :  { %15086 = vmatpush3.bf16.msra.mxu0 %v16638_v61  ;;  %15092 = vmatpush3.bf16.msra.mxu1 %v16640_v63 }
 0x69b   :  { %15093 = vmatprep.subr.bf16.mxu0 %v18275_v0  ;;  %15099 = vmatprep.subr.bf16.mxu1 %v18275_v0 }
 0x760   :  { %v3327_v21 = vpop.f32.mrb[28].mxu0  ;;  %v3398_v26 = vpop.f32.mrb[28].mxu1 }
 0x761   :  { %v3331_v16 = vadd.f32 %v3327_v21, %v200_v7  ;;  %v3402_v34 = vadd.f32 %v3398_v26, %v202_v3  ;;  %v13573_v46 = vpop.f32.mrb[29].mxu0  ;;  %v13584_v47 = vpop.f32.mrb[29].mxu1  ;;  %v204_v7 = vadd.f32 %v203_v42, %v16692_v53 }
 0x763   :  { %v12185_v24 = vmul.f32 -1.442695, %v3331_v16  ;;  %v12186_v41 = vmul.f32 -1.442695, %v3402_v34 }
 0x765   :  { %16022 = vpow2.f32 %v12185_v24 }
 0x766   :  { %16024 = vpow2.f32 %v12186_v41 }
 0x768   :  { %v3469_v17 = vpop.f32.mrb[30].mxu0  ;;  %v3540_v23 = vpop.f32.mrb[30].mxu1 }
 0x769   :  { %v3544_v56 = vadd.f32 %v3540_v23, %v206_v52  ;;  %v13595_v29 = vpop.f32.mrb[31].mxu0  ;;  %v13606_v54 = vpop.f32.mrb[31].mxu1  ;;  %v3473_v21 = vadd.f32 %v3469_v17, %v204_v7 }
 0x76b   :  { %v12187_v3 = vmul.f32 -1.442695, %v3544_v56 }
 0x76d   :  { %16026 = vpow2.f32 %v12187_v3 }
 0x76e   :  { %16028 = vtanh.f32 %v3473_v21 }
 0x76f   :  { %v16023_v26 = vpop.eup %16022 }
 0x770   :  { %v16025_v16 = vpop.eup %16024  ;;  %v3548_v34 = vadd.f32 1.0, %v16023_v26 }
 0x771   :  { %v3554_v46 = vadd.f32 1.0, %v16025_v16 }
 0x772   :  { %16030 = vrcp.f32 %v3548_v34 }
 0x773   :  { %16032 = vrcp.f32 %v3554_v46 }
 0x777   :  { %v16027_v28 = vpop.eup %16026 }
 0x778   :  { %v16029_v47 = vpop.eup %16028  ;;  %v3561_v52 = vadd.f32 1.0, %v16027_v28 }
 0x77a   :  { %16034 = vrcp.f32 %v3561_v52 }
 0x77c   :  { %v16031_v24 = vpop.eup %16030 }
 0x77d   :  { %v16033_v41 = vpop.eup %16032  ;;  %v3565_v40 = vmul.f32 %v16031_v24, %v16029_v47 }
 0x77e   :  { %v3564_v23 = vmul.f32 %v16033_v41, %v16961_v5  ;;  %v16455_v5 = vmov 4  }
 0x77f   :  { %15920 = vset.pattern.permute.xlu1 %v16455_v5 }
 0x780   :  { %v17084_v29 = vadd.f32 %v3565_v40, %v3564_v23  ;;  %208 = vperm.xlu1 %15920, %v16998_v58  }
 0x782   :  { %16036 = vtanh.f32 %v17084_v29 }
 0x784   :  { %v16035_v42 = vpop.eup %16034 }
 0x78c   :  { %v16037_v17 = vpop.eup %16036 }
 0x78d   :  { %v17087_v56 = vmul.f32 %v16037_v17, %v16035_v42 }
 0x78f   :  { %13616 = vmatmul.mubr.msk.f32.vlgmr.msra.gmra.mrb[24].mxu0 %vm259_vm1, %v17087_v56  ;;  %13627 = vmatmul.mubr.msk.f32.vlgmr.msra.gmra.mrb[24].mxu1 %vm259_vm1, %v17087_v56 }
 0x790   :  { %15095 = vmatpush3.bf16.msra.mxu0 %v16699_v60  ;;  %15101 = vmatpush3.bf16.msra.mxu1 %v16701_v62 }
 0x791   :  { %15096 = vmatprep.subr.bf16.mxu0 %v18275_v0  ;;  %15102 = vmatprep.subr.bf16.mxu1 %v18275_v0 }
 0x792   :  { %13637 = vmatprep.mubr.msk.f32.mxu0 %vm16449_vm0, %v18273_v1  ;;  %13648 = vmatprep.mubr.msk.f32.mxu1 %vm16449_vm0, %v18273_v1 }
 0x794   :  { %15098 = vmatpush3.bf16.msra.mxu0 %v16711_v30  ;;  %15104 = vmatpush3.bf16.msra.mxu1 %v16713_v12 }
 0x795   :  { %15105 = vmatprep.subr.bf16.mxu0 %v18275_v0  ;;  %15111 = vmatprep.subr.bf16.mxu1 %v18275_v0 }
 0x797   :  { %13638 = vmatmul.mubr.msk.f32.vlgmr.msra.gmra.mrb[26].mxu0 %vm259_vm1, %v17087_v56  ;;  %13649 = vmatmul.mubr.msk.f32.vlgmr.msra.gmra.mrb[26].mxu1 %vm259_vm1, %v17087_v56 }
 0x798   :  { %15107 = vmatpush3.bf16.msra.mxu0 %v16539_v6  ;;  %15113 = vmatpush3.bf16.msra.mxu1 %v16541_v10 }
 0x799   :  { %15108 = vmatprep.subr.bf16.mxu0 %v18275_v0  ;;  %15114 = vmatprep.subr.bf16.mxu1 %v18275_v0 }
 0x79a   :  { %13659 = vmatprep.mubr.msk.f32.mxu0 %vm16449_vm0, %v18273_v1  ;;  %13670 = vmatprep.mubr.msk.f32.mxu1 %vm16449_vm0, %v18273_v1 }
 0x79c   :  { %15110 = vmatpush3.bf16.msra.mxu0 %v16544_v13  ;;  %15116 = vmatpush3.bf16.msra.mxu1 %v16548_v14 }
 0x79d   :  { %15117 = vmatprep.subr.bf16.mxu0 %v18275_v0  ;;  %15123 = vmatprep.subr.bf16.mxu1 %v18275_v0 }
 0x862   :  { %v3638_v54 = vpop.f32.mrb[24].mxu0  ;;  %v3709_v7 = vpop.f32.mrb[24].mxu1 }
 0x863   :  { %v15757_v3 = vadd.f32 %v3638_v54, %v16744_v36  ;;  %v15758_v21 = vadd.f32 %v3709_v7, %v16748_v37  ;;  %v13617_v26 = vpop.f32.mrb[25].mxu0  ;;  %v13628_v16 = vpop.f32.mrb[25].mxu1 }
 0x865   :  { %v12192_v34 = vmul.f32 -1.442695, %v15757_v3  ;;  %v12193_v46 = vmul.f32 -1.442695, %v15758_v21 }
 0x867   :  { %16038 = vpow2.f32 %v12192_v34 }
 0x868   :  { %16040 = vpow2.f32 %v12193_v46 }
 0x86a   :  { %v3780_v28 = vpop.f32.mrb[26].mxu0  ;;  %v3851_v47 = vpop.f32.mrb[26].mxu1 }
 0x86b   :  { %v15760_v24 = vadd.f32 %v3851_v47, %v16754_v59  ;;  %v13639_v41 = vpop.f32.mrb[27].mxu0  ;;  %v13650_v40 = vpop.f32.mrb[27].mxu1  ;;  %v15759_v23 = vadd.f32 %v3780_v28, %v16758_v8 }
 0x86d   :  { %v12194_v52 = vmul.f32 -1.442695, %v15760_v24 }
 0x86f   :  { %16042 = vpow2.f32 %v12194_v52 }
 0x870   :  { %16044 = vtanh.f32 %v15759_v23 }
 0x871   :  { %v16039_v42 = vpop.eup %16038 }
 0x872   :  { %v16041_v17 = vpop.eup %16040  ;;  %v3859_v5 = vadd.f32 1.0, %v16039_v42 }
 0x873   :  { %v3865_v54 = vadd.f32 1.0, %v16041_v17 }
 0x874   :  { %16046 = vrcp.f32 %v3859_v5 }
 0x875   :  { %16048 = vrcp.f32 %v3865_v54 }
 0x879   :  { %v16043_v7 = vpop.eup %16042 }
 0x87a   :  { %v16045_v3 = vpop.eup %16044  ;;  %v3872_v34 = vadd.f32 1.0, %v16043_v7 }
 0x87c   :  { %16050 = vrcp.f32 %v3872_v34 }
 0x87e   :  { %v16047_v21 = vpop.eup %16046 }
 0x87f   :  { %v16049_v26 = vpop.eup %16048  ;;  %v3876_v16 = vmul.f32 %v16047_v21, %v16045_v3 }
 0x880   :  { %v3875_v46 = vmul.f32 %v16049_v26, %v17006_v48 }
 0x882   :  { %v17127_v47 = vadd.f32 %v3876_v16, %v3875_v46 }
 0x884   :  { %16052 = vtanh.f32 %v17127_v47 }
 0x886   :  { %v16051_v28 = vpop.eup %16050 }
 0x88e   :  { %v16053_v24 = vpop.eup %16052 }
 0x88f   :  { %v3879_v41 = vmul.f32 %v16053_v24, %v16051_v28 }
 0x891   :  { %13660 = vmatmul.mubr.msk.f32.vlgmr.msra.gmra.mrb[32].mxu0 %vm259_vm1, %v3879_v41  ;;  %13671 = vmatmul.mubr.msk.f32.vlgmr.msra.gmra.mrb[32].mxu1 %vm259_vm1, %v3879_v41  ;;  %v7492_v40 = vrot.slane %v3879_v41, 2 }
 0x892   :  { %15119 = vmatpush3.bf16.msra.mxu0 %v16552_v19  ;;  %15125 = vmatpush3.bf16.msra.mxu1 %v16556_v20 }
 0x893   :  { %15120 = vmatprep.subr.bf16.mxu0 %v18275_v0  ;;  %15126 = vmatprep.subr.bf16.mxu1 %v18275_v0  ;;  %v17138_v48 = vsel %vm7505_vm4, %v17019_v35, %v7492_v40  ;;  %v209_v35 = vpop.permute.xlu1 %208 }
 0x894   :  { %18304 = vst [vmem:[#allocation17_spill] sm:$0xff] %v17138_v48  ;;  %13681 = vmatprep.mubr.msk.f32.mxu0 %vm16449_vm0, %v18273_v1  ;;  %13692 = vmatprep.mubr.msk.f32.mxu1 %vm16449_vm0, %v18273_v1  ;;  %v213_v52 = vmul.f32 %v209_v35, %v16657_v15  ;;  %v217_v34 = vmul.f32 %v209_v35, %v16676_v31 }
 0x895   :  { %v215_v46 = vmul.f32 %v209_v35, %v16681_v43 }
 0x896   :  { %15122 = vmatpush3.bf16.msra.mxu0 %v16562_v25  ;;  %15128 = vmatpush3.bf16.msra.mxu1 %v16568_v27  ;;  %v214_v42 = vadd.f32 %v213_v52, %v16668_v22  ;;  %v218_v28 = vadd.f32 %v217_v34, %v16687_v49 }
 0x897   :  { %15129 = vmatprep.subr.bf16.mxu0 %v18275_v0  ;;  %15135 = vmatprep.subr.bf16.mxu1 %v18275_v0 }
 0x899   :  { %13682 = vmatmul.mubr.msk.f32.vlgmr.msra.gmra.mrb[34].mxu0 %vm259_vm1, %v3879_v41  ;;  %13693 = vmatmul.mubr.msk.f32.vlgmr.msra.gmra.mrb[34].mxu1 %vm259_vm1, %v3879_v41 }
 0x89a   :  { %15131 = vmatpush3.bf16.msra.mxu0 %v16577_v32  ;;  %15137 = vmatpush3.bf16.msra.mxu1 %v16581_v33 }
 0x89b   :  { %15132 = vmatprep.subr.bf16.mxu0 %v18275_v0  ;;  %15138 = vmatprep.subr.bf16.mxu1 %v18275_v0 }
 0x89c   :  { %13703 = vmatprep.mubr.msk.f32.mxu0 %vm16449_vm0, %v18273_v1  ;;  %13714 = vmatprep.mubr.msk.f32.mxu1 %vm16449_vm0, %v18273_v1 }
 0x89e   :  { %15134 = vmatpush3.bf16.msra.mxu0 %v16587_v38  ;;  %15140 = vmatpush3.bf16.msra.mxu1 %v16591_v39 }
 0x89f   :  { %15141 = vmatprep.subr.bf16.mxu0 %v18275_v0  ;;  %15147 = vmatprep.subr.bf16.mxu1 %v18275_v0 }
 0x8a1   :  { %13704 = vmatmul.mubr.msk.f32.vlgmr.msra.gmra.mrb[36].mxu0 %vm259_vm1, %v17087_v56  ;;  %13715 = vmatmul.mubr.msk.f32.vlgmr.msra.gmra.mrb[36].mxu1 %vm259_vm1, %v17087_v56 }
 0x8a2   :  { %15143 = vmatpush3.bf16.msra.mxu0 %v16599_v44  ;;  %15149 = vmatpush3.bf16.msra.mxu1 %v16603_v45 }
 0x8a3   :  { %15144 = vmatprep.subr.bf16.mxu0 %v18275_v0  ;;  %15150 = vmatprep.subr.bf16.mxu1 %v18275_v0 }
 0x8a4   :  { %13725 = vmatprep.mubr.msk.f32.mxu0 %vm16449_vm0, %v18273_v1  ;;  %13736 = vmatprep.mubr.msk.f32.mxu1 %vm16449_vm0, %v18273_v1 }
 0x8a6   :  { %15146 = vmatpush3.bf16.msra.mxu0 %v16609_v50  ;;  %15152 = vmatpush3.bf16.msra.mxu1 %v16613_v51 }
 0x8a7   :  { %15153 = vmatprep.subr.bf16.mxu0 %v18275_v0  ;;  %15159 = vmatprep.subr.bf16.mxu1 %v18275_v0 }
 0x8a9   :  { %13726 = vmatmul.mubr.msk.f32.vlgmr.msra.gmra.mrb[38].mxu0 %vm259_vm1, %v17087_v56  ;;  %13737 = vmatmul.mubr.msk.f32.vlgmr.msra.gmra.mrb[38].mxu1 %vm259_vm1, %v17087_v56  ;;  %v211_v56 = vmul.f32 %v209_v35, %v16652_v9 }
 0x8aa   :  { %15155 = vmatpush3.bf16.msra.mxu0 %v16630_v55  ;;  %15161 = vmatpush3.bf16.msra.mxu1 %v16632_v57 }
 0x8ab   :  { %15156 = vmatprep.subr.bf16.mxu0 %v18275_v0  ;;  %15162 = vmatprep.subr.bf16.mxu1 %v18275_v0  ;;  %v212_v23 = vadd.f32 %v211_v56, %v16663_v18 }
 0x8ac   :  { %13747 = vmatprep.mubr.msk.f32.mxu0 %vm16449_vm0, %v18273_v1  ;;  %13758 = vmatprep.mubr.msk.f32.mxu1 %vm16449_vm0, %v18273_v1 }
 0x8ae   :  { %15158 = vmatpush3.bf16.msra.mxu0 %v16638_v61  ;;  %15164 = vmatpush3.bf16.msra.mxu1 %v16640_v63 }
 0x8af   :  { %15165 = vmatprep.subr.bf16.mxu0 %v18275_v0  ;;  %15171 = vmatprep.subr.bf16.mxu1 %v18275_v0 }
 0x974   :  { %v4229_v17 = vpop.f32.mrb[36].mxu0  ;;  %v4300_v5 = vpop.f32.mrb[36].mxu1 }
 0x975   :  { %v4233_v54 = vadd.f32 %v4229_v17, %v212_v23  ;;  %v4304_v7 = vadd.f32 %v4300_v5, %v214_v42  ;;  %v13705_v3 = vpop.f32.mrb[37].mxu0  ;;  %v13716_v21 = vpop.f32.mrb[37].mxu1  ;;  %v216_v23 = vadd.f32 %v215_v46, %v16692_v53 }
 0x977   :  { %v12203_v26 = vmul.f32 -1.442695, %v4233_v54  ;;  %v12204_v16 = vmul.f32 -1.442695, %v4304_v7 }
 0x979   :  { %16054 = vpow2.f32 %v12203_v26 }
 0x97a   :  { %16056 = vpow2.f32 %v12204_v16 }
 0x97c   :  { %v4371_v24 = vpop.f32.mrb[38].mxu0  ;;  %v4442_v41 = vpop.f32.mrb[38].mxu1 }
 0x97d   :  { %v4446_v40 = vadd.f32 %v4442_v41, %v218_v28  ;;  %v13727_v56 = vpop.f32.mrb[39].mxu0  ;;  %v13738_v52 = vpop.f32.mrb[39].mxu1  ;;  %v4375_v17 = vadd.f32 %v4371_v24, %v216_v23 }
 0x97f   :  { %v12205_v42 = vmul.f32 -1.442695, %v4446_v40 }
 0x981   :  { %16058 = vpow2.f32 %v12205_v42 }
 0x982   :  { %16060 = vtanh.f32 %v4375_v17 }
 0x983   :  { %v16055_v5 = vpop.eup %16054 }
 0x984   :  { %v16057_v54 = vpop.eup %16056  ;;  %v4450_v7 = vadd.f32 1.0, %v16055_v5 }
 0x985   :  { %v4456_v3 = vadd.f32 1.0, %v16057_v54 }
 0x986   :  { %16062 = vrcp.f32 %v4450_v7 }
 0x987   :  { %16064 = vrcp.f32 %v4456_v3 }
 0x98b   :  { %v16059_v35 = vpop.eup %16058 }
 0x98c   :  { %v16061_v21 = vpop.eup %16060  ;;  %v4463_v28 = vadd.f32 1.0, %v16059_v35 }
 0x98e   :  { %16066 = vrcp.f32 %v4463_v28 }
 0x990   :  { %v16063_v26 = vpop.eup %16062 }
 0x991   :  { %v16065_v16 = vpop.eup %16064  ;;  %v4467_v34 = vmul.f32 %v16063_v26, %v16061_v21 }
 0x992   :  { %v4466_v41 = vmul.f32 %v16065_v16, %v17084_v29  ;;  %v16456_v29 = vmov 5  }
 0x993   :  { %15921 = vset.pattern.permute.xlu0 %v16456_v29 }
 0x994   :  { %v17203_v56 = vadd.f32 %v4467_v34, %v4466_v41  ;;  %220 = vperm.xlu0 %15921, %v16998_v58  }
 0x996   :  { %16068 = vtanh.f32 %v17203_v56 }
 0x998   :  { %v16067_v46 = vpop.eup %16066  ;;  %15924 = vset.pattern.permute.xlu0 %v16451_v2 }
 0x9a0   :  { %v16069_v24 = vpop.eup %16068 }
 0x9a1   :  { %v17206_v40 = vmul.f32 %v16069_v24, %v16067_v46 }
 0x9a3   :  { %13748 = vmatmul.mubr.msk.f32.vlgmr.msra.gmra.mrb[32].mxu0 %vm259_vm1, %v17206_v40  ;;  %13759 = vmatmul.mubr.msk.f32.vlgmr.msra.gmra.mrb[32].mxu1 %vm259_vm1, %v17206_v40 }
 0x9a4   :  { %15167 = vmatpush3.bf16.msra.mxu0 %v16699_v60  ;;  %15173 = vmatpush3.bf16.msra.mxu1 %v16701_v62 }
 0x9a5   :  { %15168 = vmatprep.subr.bf16.mxu0 %v18275_v0  ;;  %15174 = vmatprep.subr.bf16.mxu1 %v18275_v0 }
 0x9a6   :  { %13769 = vmatprep.mubr.msk.f32.mxu0 %vm16449_vm0, %v18273_v1  ;;  %13780 = vmatprep.mubr.msk.f32.mxu1 %vm16449_vm0, %v18273_v1 }
 0x9a8   :  { %15170 = vmatpush3.bf16.msra.mxu0 %v16711_v30  ;;  %15176 = vmatpush3.bf16.msra.mxu1 %v16713_v12 }
 0x9a9   :  { %15177 = vmatprep.subr.bf16.mxu0 %v18275_v0  ;;  %15183 = vmatprep.subr.bf16.mxu1 %v18275_v0 }
 0x9ab   :  { %13770 = vmatmul.mubr.msk.f32.vlgmr.msra.gmra.mrb[34].mxu0 %vm259_vm1, %v17206_v40  ;;  %13781 = vmatmul.mubr.msk.f32.vlgmr.msra.gmra.mrb[34].mxu1 %vm259_vm1, %v17206_v40 }
 0x9ac   :  { %15179 = vmatpush3.bf16.msra.mxu0 %v16539_v6  ;;  %15185 = vmatpush3.bf16.msra.mxu1 %v16541_v10 }
 0x9ad   :  { %15180 = vmatprep.subr.bf16.mxu0 %v18275_v0  ;;  %15186 = vmatprep.subr.bf16.mxu1 %v18275_v0 }
 0x9ae   :  { %13791 = vmatprep.mubr.msk.f32.mxu0 %vm16449_vm0, %v18273_v1  ;;  %13802 = vmatprep.mubr.msk.f32.mxu1 %vm16449_vm0, %v18273_v1 }
 0x9b0   :  { %15182 = vmatpush3.bf16.msra.mxu0 %v16544_v13  ;;  %15188 = vmatpush3.bf16.msra.mxu1 %v16548_v14 }
 0x9b1   :  { %15189 = vmatprep.subr.bf16.mxu0 %v18275_v0  ;;  %15195 = vmatprep.subr.bf16.mxu1 %v18275_v0 }
 0xa76   :  { %v4540_v52 = vpop.f32.mrb[32].mxu0  ;;  %v4611_v23 = vpop.f32.mrb[32].mxu1 }
 0xa77   :  { %v15761_v42 = vadd.f32 %v4540_v52, %v16744_v36  ;;  %v15762_v17 = vadd.f32 %v4611_v23, %v16748_v37  ;;  %v13749_v5 = vpop.f32.mrb[33].mxu0  ;;  %v13760_v54 = vpop.f32.mrb[33].mxu1 }
 0xa79   :  { %v12210_v7 = vmul.f32 -1.442695, %v15761_v42  ;;  %v12211_v3 = vmul.f32 -1.442695, %v15762_v17 }
 0xa7b   :  { %16070 = vpow2.f32 %v12210_v7 }
 0xa7c   :  { %16072 = vpow2.f32 %v12211_v3 }
 0xa7e   :  { %v4682_v35 = vpop.f32.mrb[34].mxu0  ;;  %v4753_v21 = vpop.f32.mrb[34].mxu1 }
 0xa7f   :  { %v15764_v26 = vadd.f32 %v4753_v21, %v16754_v59  ;;  %v13771_v16 = vpop.f32.mrb[35].mxu0  ;;  %v13782_v34 = vpop.f32.mrb[35].mxu1  ;;  %v15763_v41 = vadd.f32 %v4682_v35, %v16758_v8 }
 0xa81   :  { %v12212_v28 = vmul.f32 -1.442695, %v15764_v26 }
 0xa83   :  { %16074 = vpow2.f32 %v12212_v28 }
 0xa84   :  { %16076 = vtanh.f32 %v15763_v41 }
 0xa85   :  { %v16071_v46 = vpop.eup %16070 }
 0xa86   :  { %v16073_v24 = vpop.eup %16072  ;;  %v4761_v29 = vadd.f32 1.0, %v16071_v46 }
 0xa87   :  { %v4767_v52 = vadd.f32 1.0, %v16073_v24 }
 0xa88   :  { %16078 = vrcp.f32 %v4761_v29 }
 0xa89   :  { %16080 = vrcp.f32 %v4767_v52 }
 0xa8d   :  { %v16075_v23 = vpop.eup %16074 }
 0xa8e   :  { %v16077_v42 = vpop.eup %16076  ;;  %v4774_v7 = vadd.f32 1.0, %v16075_v23 }
 0xa90   :  { %16082 = vrcp.f32 %v4774_v7 }
 0xa92   :  { %v16079_v17 = vpop.eup %16078 }
 0xa93   :  { %v16081_v5 = vpop.eup %16080  ;;  %v4778_v54 = vmul.f32 %v16079_v17, %v16077_v42 }
 0xa94   :  { %v4777_v3 = vmul.f32 %v16081_v5, %v17127_v47  ;;  %v221_v47 = vpop.permute.xlu0 %220 }
 0xa95   :  { %v225_v34 = vmul.f32 %v221_v47, %v16657_v15  ;;  %v227_v7 = vmul.f32 %v221_v47, %v16681_v43 }
 0xa96   :  { %v17247_v21 = vadd.f32 %v4778_v54, %v4777_v3  ;;  %v229_v54 = vmul.f32 %v221_v47, %v16676_v31 }
 0xa97   :  { %v226_v41 = vadd.f32 %v225_v34, %v16668_v22 }
 0xa98   :  { %16084 = vtanh.f32 %v17247_v21  ;;  %v230_v3 = vadd.f32 %v229_v54, %v16687_v49 }
 0xa9a   :  { %v16083_v35 = vpop.eup %16082 }
 0xaa2   :  { %v16085_v26 = vpop.eup %16084 }
 0xaa3   :  { %v17250_v16 = vmul.f32 %v16085_v26, %v16083_v35 }
 0xaa5   :  { %13792 = vmatmul.mubr.msk.f32.vlgmr.msra.gmra.mrb[40].mxu0 %vm259_vm1, %v17250_v16  ;;  %13803 = vmatmul.mubr.msk.f32.vlgmr.msra.gmra.mrb[40].mxu1 %vm259_vm1, %v17250_v16 }
 0xaa6   :  { %15191 = vmatpush3.bf16.msra.mxu0 %v16552_v19  ;;  %15197 = vmatpush3.bf16.msra.mxu1 %v16556_v20 }
 0xaa7   :  { %15192 = vmatprep.subr.bf16.mxu0 %v18275_v0  ;;  %15198 = vmatprep.subr.bf16.mxu1 %v18275_v0 }
 0xaa8   :  { %13813 = vmatprep.mubr.msk.f32.mxu0 %vm16449_vm0, %v18273_v1  ;;  %13824 = vmatprep.mubr.msk.f32.mxu1 %vm16449_vm0, %v18273_v1 }
 0xaaa   :  { %15194 = vmatpush3.bf16.msra.mxu0 %v16562_v25  ;;  %15200 = vmatpush3.bf16.msra.mxu1 %v16568_v27 }
 0xaab   :  { %15201 = vmatprep.subr.bf16.mxu0 %v18275_v0  ;;  %15207 = vmatprep.subr.bf16.mxu1 %v18275_v0 }
 0xaad   :  { %13814 = vmatmul.mubr.msk.f32.vlgmr.msra.gmra.mrb[42].mxu0 %vm259_vm1, %v17250_v16  ;;  %13825 = vmatmul.mubr.msk.f32.vlgmr.msra.gmra.mrb[42].mxu1 %vm259_vm1, %v17250_v16 }
 0xaae   :  { %15203 = vmatpush3.bf16.msra.mxu0 %v16577_v32  ;;  %15209 = vmatpush3.bf16.msra.mxu1 %v16581_v33 }
 0xaaf   :  { %15204 = vmatprep.subr.bf16.mxu0 %v18275_v0  ;;  %15210 = vmatprep.subr.bf16.mxu1 %v18275_v0 }
 0xab0   :  { %13835 = vmatprep.mubr.msk.f32.mxu0 %vm16449_vm0, %v18273_v1  ;;  %13846 = vmatprep.mubr.msk.f32.mxu1 %vm16449_vm0, %v18273_v1 }
 0xab2   :  { %15206 = vmatpush3.bf16.msra.mxu0 %v16587_v38  ;;  %15212 = vmatpush3.bf16.msra.mxu1 %v16591_v39 }
 0xab3   :  { %15213 = vmatprep.subr.bf16.mxu0 %v18275_v0  ;;  %15219 = vmatprep.subr.bf16.mxu1 %v18275_v0 }
 0xab5   :  { %13836 = vmatmul.mubr.msk.f32.vlgmr.msra.gmra.mrb[44].mxu0 %vm259_vm1, %v17206_v40  ;;  %13847 = vmatmul.mubr.msk.f32.vlgmr.msra.gmra.mrb[44].mxu1 %vm259_vm1, %v17206_v40 }
 0xab6   :  { %15215 = vmatpush3.bf16.msra.mxu0 %v16599_v44  ;;  %15221 = vmatpush3.bf16.msra.mxu1 %v16603_v45 }
 0xab7   :  { %15216 = vmatprep.subr.bf16.mxu0 %v18275_v0  ;;  %15222 = vmatprep.subr.bf16.mxu1 %v18275_v0 }
 0xab8   :  { %13857 = vmatprep.mubr.msk.f32.mxu0 %vm16449_vm0, %v18273_v1  ;;  %13868 = vmatprep.mubr.msk.f32.mxu1 %vm16449_vm0, %v18273_v1 }
 0xaba   :  { %15218 = vmatpush3.bf16.msra.mxu0 %v16609_v50  ;;  %15224 = vmatpush3.bf16.msra.mxu1 %v16613_v51 }
 0xabb   :  { %15225 = vmatprep.subr.bf16.mxu0 %v18275_v0  ;;  %15231 = vmatprep.subr.bf16.mxu1 %v18275_v0 }
 0xabd   :  { %13858 = vmatmul.mubr.msk.f32.vlgmr.msra.gmra.mrb[46].mxu0 %vm259_vm1, %v17206_v40  ;;  %13869 = vmatmul.mubr.msk.f32.vlgmr.msra.gmra.mrb[46].mxu1 %vm259_vm1, %v17206_v40  ;;  %v223_v40 = vmul.f32 %v221_v47, %v16652_v9 }
 0xabe   :  { %15227 = vmatpush3.bf16.msra.mxu0 %v16630_v55  ;;  %15233 = vmatpush3.bf16.msra.mxu1 %v16632_v57 }
 0xabf   :  { %15228 = vmatprep.subr.bf16.mxu0 %v18275_v0  ;;  %15234 = vmatprep.subr.bf16.mxu1 %v18275_v0  ;;  %v224_v28 = vadd.f32 %v223_v40, %v16663_v18 }
 0xac0   :  { %13879 = vmatprep.mubr.msk.f32.mxu0 %vm16449_vm0, %v18273_v1  ;;  %13890 = vmatprep.mubr.msk.f32.mxu1 %vm16449_vm0, %v18273_v1 }
 0xac2   :  { %15230 = vmatpush3.bf16.msra.mxu0 %v16638_v61  ;;  %15236 = vmatpush3.bf16.msra.mxu1 %v16640_v63 }
 0xac3   :  { %15237 = vmatprep.subr.bf16.mxu0 %v18275_v0  ;;  %15243 = vmatprep.subr.bf16.mxu1 %v18275_v0 }
 0xb88   :  { %v5131_v46 = vpop.f32.mrb[44].mxu0  ;;  %v5202_v24 = vpop.f32.mrb[44].mxu1 }
 0xb89   :  { %v5135_v29 = vadd.f32 %v5131_v46, %v224_v28  ;;  %v5206_v52 = vadd.f32 %v5202_v24, %v226_v41  ;;  %v13837_v23 = vpop.f32.mrb[45].mxu0  ;;  %v13848_v42 = vpop.f32.mrb[45].mxu1  ;;  %v228_v28 = vadd.f32 %v227_v7, %v16692_v53 }
 0xb8b   :  { %v12221_v17 = vmul.f32 -1.442695, %v5135_v29  ;;  %v12222_v5 = vmul.f32 -1.442695, %v5206_v52 }
 0xb8d   :  { %16086 = vpow2.f32 %v12221_v17 }
 0xb8e   :  { %16088 = vpow2.f32 %v12222_v5 }
 0xb90   :  { %v5273_v35 = vpop.f32.mrb[46].mxu0  ;;  %v5344_v26 = vpop.f32.mrb[46].mxu1 }
 0xb91   :  { %v5348_v40 = vadd.f32 %v5344_v26, %v230_v3  ;;  %v13859_v34 = vpop.f32.mrb[47].mxu0  ;;  %v13870_v11 = vpop.f32.mrb[47].mxu1  ;;  %v5277_v46 = vadd.f32 %v5273_v35, %v228_v28 }
 0xb93   :  { %v12223_v41 = vmul.f32 -1.442695, %v5348_v40 }
 0xb95   :  { %16090 = vpow2.f32 %v12223_v41 }
 0xb96   :  { %16092 = vtanh.f32 %v5277_v46 }
 0xb97   :  { %v16087_v24 = vpop.eup %16086 }
 0xb98   :  { %v16089_v29 = vpop.eup %16088  ;;  %v5352_v52 = vadd.f32 1.0, %v16087_v24 }
 0xb99   :  { %v5358_v23 = vadd.f32 1.0, %v16089_v29 }
 0xb9a   :  { %16094 = vrcp.f32 %v5352_v52 }
 0xb9b   :  { %16096 = vrcp.f32 %v5358_v23 }
 0xb9f   :  { %v16091_v47 = vpop.eup %16090 }
 0xba0   :  { %v16093_v42 = vpop.eup %16092  ;;  %v5365_v3 = vadd.f32 1.0, %v16091_v47 }
 0xba2   :  { %16098 = vrcp.f32 %v5365_v3 }
 0xba4   :  { %v16095_v17 = vpop.eup %16094 }
 0xba5   :  { %v16097_v5 = vpop.eup %16096  ;;  %v5369_v54 = vmul.f32 %v16095_v17, %v16093_v42 }
 0xba6   :  { %v5368_v11 = vmul.f32 %v16097_v5, %v17203_v56  ;;  %v16457_v56 = vmov 6  }
 0xba7   :  { %15922 = vset.pattern.permute.xlu1 %v16457_v56 }
 0xba8   :  { %v17325_v26 = vadd.f32 %v5369_v54, %v5368_v11  ;;  %232 = vperm.xlu1 %15922, %v16998_v58  }
 0xbaa   :  { %16100 = vtanh.f32 %v17325_v26 }
 0xbac   :  { %v16099_v7 = vpop.eup %16098 }
 0xbb4   :  { %v16101_v35 = vpop.eup %16100 }
 0xbb5   :  { %v17328_v40 = vmul.f32 %v16101_v35, %v16099_v7 }
 0xbb7   :  { %13880 = vmatmul.mubr.msk.f32.vlgmr.msra.gmra.mrb[40].mxu0 %vm259_vm1, %v17328_v40  ;;  %13891 = vmatmul.mubr.msk.f32.vlgmr.msra.gmra.mrb[40].mxu1 %vm259_vm1, %v17328_v40 }
 0xbb8   :  { %15239 = vmatpush3.bf16.msra.mxu0 %v16699_v60  ;;  %15245 = vmatpush3.bf16.msra.mxu1 %v16701_v62 }
 0xbb9   :  { %15240 = vmatprep.subr.bf16.mxu0 %v18275_v0  ;;  %15246 = vmatprep.subr.bf16.mxu1 %v18275_v0 }
 0xbba   :  { %13901 = vmatprep.mubr.msk.f32.mxu0 %vm16449_vm0, %v18273_v1  ;;  %13912 = vmatprep.mubr.msk.f32.mxu1 %vm16449_vm0, %v18273_v1 }
 0xbbc   :  { %15242 = vmatpush3.bf16.msra.mxu0 %v16711_v30  ;;  %15248 = vmatpush3.bf16.msra.mxu1 %v16713_v12 }
 0xbbd   :  { %15249 = vmatprep.subr.bf16.mxu0 %v18275_v0  ;;  %15255 = vmatprep.subr.bf16.mxu1 %v18275_v0 }
 0xbbf   :  { %13902 = vmatmul.mubr.msk.f32.vlgmr.msra.gmra.mrb[42].mxu0 %vm259_vm1, %v17328_v40  ;;  %13913 = vmatmul.mubr.msk.f32.vlgmr.msra.gmra.mrb[42].mxu1 %vm259_vm1, %v17328_v40 }
 0xbc0   :  { %15251 = vmatpush3.bf16.msra.mxu0 %v16539_v6  ;;  %15257 = vmatpush3.bf16.msra.mxu1 %v16541_v10 }
 0xbc1   :  { %15252 = vmatprep.subr.bf16.mxu0 %v18275_v0  ;;  %15258 = vmatprep.subr.bf16.mxu1 %v18275_v0 }
 0xbc2   :  { %13923 = vmatprep.mubr.msk.f32.mxu0 %vm16449_vm0, %v18273_v1  ;;  %13934 = vmatprep.mubr.msk.f32.mxu1 %vm16449_vm0, %v18273_v1 }
 0xbc4   :  { %15254 = vmatpush3.bf16.msra.mxu0 %v16544_v13  ;;  %15260 = vmatpush3.bf16.msra.mxu1 %v16548_v14 }
 0xbc5   :  { %15261 = vmatprep.subr.bf16.mxu0 %v18275_v0  ;;  %15267 = vmatprep.subr.bf16.mxu1 %v18275_v0 }
 0xc8a   :  { %v5442_v34 = vpop.f32.mrb[40].mxu0  ;;  %v5513_v28 = vpop.f32.mrb[40].mxu1 }
 0xc8b   :  { %v15765_v41 = vadd.f32 %v5442_v34, %v16744_v36  ;;  %v15766_v46 = vadd.f32 %v5513_v28, %v16748_v37  ;;  %v13881_v24 = vpop.f32.mrb[41].mxu0  ;;  %v13892_v29 = vpop.f32.mrb[41].mxu1 }
 0xc8d   :  { %v12228_v52 = vmul.f32 -1.442695, %v15765_v41  ;;  %v12229_v23 = vmul.f32 -1.442695, %v15766_v46 }
 0xc8f   :  { %16102 = vpow2.f32 %v12228_v52 }
 0xc90   :  { %16104 = vpow2.f32 %v12229_v23 }
 0xc92   :  { %v5584_v47 = vpop.f32.mrb[42].mxu0  ;;  %v5655_v42 = vpop.f32.mrb[42].mxu1 }
 0xc93   :  { %v15768_v17 = vadd.f32 %v5655_v42, %v16754_v59  ;;  %v13903_v5 = vpop.f32.mrb[43].mxu0  ;;  %v13914_v54 = vpop.f32.mrb[43].mxu1  ;;  %v15767_v58 = vadd.f32 %v5584_v47, %v16758_v8 }
 0xc95   :  { %v12230_v3 = vmul.f32 -1.442695, %v15768_v17 }
 0xc97   :  { %16106 = vpow2.f32 %v12230_v3 }
 0xc98   :  { %16108 = vtanh.f32 %v15767_v58 }
 0xc99   :  { %v16103_v11 = vpop.eup %16102 }
 0xc9a   :  { %v16105_v7 = vpop.eup %16104  ;;  %v5663_v35 = vadd.f32 1.0, %v16103_v11 }
 0xc9b   :  { %v5669_v56 = vadd.f32 1.0, %v16105_v7 }
 0xc9c   :  { %16110 = vrcp.f32 %v5663_v35 }
 0xc9d   :  { %16112 = vrcp.f32 %v5669_v56 }
 0xca1   :  { %v16107_v34 = vpop.eup %16106 }
 0xca2   :  { %v16109_v28 = vpop.eup %16108  ;;  %v5676_v29 = vadd.f32 1.0, %v16107_v34 }
 0xca4   :  { %16114 = vrcp.f32 %v5676_v29 }
 0xca6   :  { %v16111_v41 = vpop.eup %16110 }
 0xca7   :  { %v16113_v46 = vpop.eup %16112  ;;  %v5680_v24 = vmul.f32 %v16111_v41, %v16109_v28 }
 0xca8   :  { %v5679_v52 = vmul.f32 %v16113_v46, %v17247_v21  ;;  %v233_v21 = vpop.permute.xlu1 %232 }
 0xca9   :  { %v237_v5 = vmul.f32 %v233_v21, %v16657_v15  ;;  %v241_v46 = vmul.f32 %v233_v21, %v16676_v31 }
 0xcaa   :  { %v17368_v23 = vadd.f32 %v5680_v24, %v5679_v52  ;;  %v239_v24 = vmul.f32 %v233_v21, %v16681_v43 }
 0xcab   :  { %v238_v3 = vadd.f32 %v237_v5, %v16668_v22  ;;  %v242_v29 = vadd.f32 %v241_v46, %v16687_v49 }
 0xcac   :  { %16116 = vtanh.f32 %v17368_v23 }
 0xcae   :  { %v16115_v47 = vpop.eup %16114 }
 0xcb6   :  { %v16117_v42 = vpop.eup %16116 }
 0xcb7   :  { %v17371_v17 = vmul.f32 %v16117_v42, %v16115_v47 }
 0xcb9   :  { %13924 = vmatmul.mubr.msk.f32.vlgmr.msra.gmra.mrb[48].mxu0 %vm259_vm1, %v17371_v17  ;;  %13935 = vmatmul.mubr.msk.f32.vlgmr.msra.gmra.mrb[48].mxu1 %vm259_vm1, %v17371_v17 }
 0xcba   :  { %15263 = vmatpush3.bf16.msra.mxu0 %v16552_v19  ;;  %15269 = vmatpush3.bf16.msra.mxu1 %v16556_v20 }
 0xcbb   :  { %15264 = vmatprep.subr.bf16.mxu0 %v18275_v0  ;;  %15270 = vmatprep.subr.bf16.mxu1 %v18275_v0 }
 0xcbc   :  { %13945 = vmatprep.mubr.msk.f32.mxu0 %vm16449_vm0, %v18273_v1  ;;  %13956 = vmatprep.mubr.msk.f32.mxu1 %vm16449_vm0, %v18273_v1 }
 0xcbe   :  { %15266 = vmatpush3.bf16.msra.mxu0 %v16562_v25  ;;  %15272 = vmatpush3.bf16.msra.mxu1 %v16568_v27 }
 0xcbf   :  { %15273 = vmatprep.subr.bf16.mxu0 %v18275_v0  ;;  %15279 = vmatprep.subr.bf16.mxu1 %v18275_v0 }
 0xcc1   :  { %13946 = vmatmul.mubr.msk.f32.vlgmr.msra.gmra.mrb[50].mxu0 %vm259_vm1, %v17371_v17  ;;  %13957 = vmatmul.mubr.msk.f32.vlgmr.msra.gmra.mrb[50].mxu1 %vm259_vm1, %v17371_v17 }
 0xcc2   :  { %15275 = vmatpush3.bf16.msra.mxu0 %v16577_v32  ;;  %15281 = vmatpush3.bf16.msra.mxu1 %v16581_v33 }
 0xcc3   :  { %15276 = vmatprep.subr.bf16.mxu0 %v18275_v0  ;;  %15282 = vmatprep.subr.bf16.mxu1 %v18275_v0 }
 0xcc4   :  { %13967 = vmatprep.mubr.msk.f32.mxu0 %vm16449_vm0, %v18273_v1  ;;  %13978 = vmatprep.mubr.msk.f32.mxu1 %vm16449_vm0, %v18273_v1 }
 0xcc6   :  { %15278 = vmatpush3.bf16.msra.mxu0 %v16587_v38  ;;  %15284 = vmatpush3.bf16.msra.mxu1 %v16591_v39 }
 0xcc7   :  { %15285 = vmatprep.subr.bf16.mxu0 %v18275_v0  ;;  %15291 = vmatprep.subr.bf16.mxu1 %v18275_v0 }
 0xcc9   :  { %13968 = vmatmul.mubr.msk.f32.vlgmr.msra.gmra.mrb[52].mxu0 %vm259_vm1, %v17328_v40  ;;  %13979 = vmatmul.mubr.msk.f32.vlgmr.msra.gmra.mrb[52].mxu1 %vm259_vm1, %v17328_v40 }
 0xcca   :  { %15287 = vmatpush3.bf16.msra.mxu0 %v16599_v44  ;;  %15293 = vmatpush3.bf16.msra.mxu1 %v16603_v45 }
 0xccb   :  { %15288 = vmatprep.subr.bf16.mxu0 %v18275_v0  ;;  %15294 = vmatprep.subr.bf16.mxu1 %v18275_v0 }
 0xccc   :  { %13989 = vmatprep.mubr.msk.f32.mxu0 %vm16449_vm0, %v18273_v1  ;;  %14000 = vmatprep.mubr.msk.f32.mxu1 %vm16449_vm0, %v18273_v1 }
 0xcce   :  { %15290 = vmatpush3.bf16.msra.mxu0 %v16609_v50  ;;  %15296 = vmatpush3.bf16.msra.mxu1 %v16613_v51 }
 0xccf   :  { %15297 = vmatprep.subr.bf16.mxu0 %v18275_v0  ;;  %15303 = vmatprep.subr.bf16.mxu1 %v18275_v0 }
 0xcd1   :  { %13990 = vmatmul.mubr.msk.f32.vlgmr.msra.gmra.mrb[54].mxu0 %vm259_vm1, %v17328_v40  ;;  %14001 = vmatmul.mubr.msk.f32.vlgmr.msra.gmra.mrb[54].mxu1 %vm259_vm1, %v17328_v40  ;;  %v235_v40 = vmul.f32 %v233_v21, %v16652_v9 }
 0xcd2   :  { %15299 = vmatpush3.bf16.msra.mxu0 %v16630_v55  ;;  %15305 = vmatpush3.bf16.msra.mxu1 %v16632_v57 }
 0xcd3   :  { %15300 = vmatprep.subr.bf16.mxu0 %v18275_v0  ;;  %15306 = vmatprep.subr.bf16.mxu1 %v18275_v0  ;;  %v236_v54 = vadd.f32 %v235_v40, %v16663_v18 }
 0xcd4   :  { %14011 = vmatprep.mubr.msk.f32.mxu0 %vm16449_vm0, %v18273_v1  ;;  %14022 = vmatprep.mubr.msk.f32.mxu1 %vm16449_vm0, %v18273_v1 }
 0xcd6   :  { %15302 = vmatpush3.bf16.msra.mxu0 %v16638_v61  ;;  %15308 = vmatpush3.bf16.msra.mxu1 %v16640_v63 }
 0xcd7   :  { %15309 = vmatprep.subr.bf16.mxu0 %v18275_v0  ;;  %15315 = vmatprep.subr.bf16.mxu1 %v18275_v0 }
 0xd9c   :  { %v6033_v58 = vpop.f32.mrb[52].mxu0  ;;  %v6104_v11 = vpop.f32.mrb[52].mxu1 }
 0xd9d   :  { %v6037_v7 = vadd.f32 %v6033_v58, %v236_v54  ;;  %v6108_v35 = vadd.f32 %v6104_v11, %v238_v3  ;;  %v13969_v56 = vpop.f32.mrb[53].mxu0  ;;  %v13980_v34 = vpop.f32.mrb[53].mxu1  ;;  %v240_v54 = vadd.f32 %v239_v24, %v16692_v53 }
 0xd9f   :  { %v12239_v28 = vmul.f32 -1.442695, %v6037_v7  ;;  %v12240_v41 = vmul.f32 -1.442695, %v6108_v35 }
 0xda1   :  { %16118 = vpow2.f32 %v12239_v28 }
 0xda2   :  { %16120 = vpow2.f32 %v12240_v41 }
 0xda4   :  { %v6175_v52 = vpop.f32.mrb[54].mxu0  ;;  %v6246_v47 = vpop.f32.mrb[54].mxu1 }
 0xda5   :  { %v6250_v42 = vadd.f32 %v6246_v47, %v242_v29  ;;  %v13991_v40 = vpop.f32.mrb[55].mxu0  ;;  %v14002_v5 = vpop.f32.mrb[55].mxu1  ;;  %v6179_v58 = vadd.f32 %v6175_v52, %v240_v54 }
 0xda6   :  { %v16347_v5 = vld [vmem:[#allocation2] sm:$0x3] }
 0xda7   :  { %v12241_v3 = vmul.f32 -1.442695, %v6250_v42 }
 0xda9   :  { %16122 = vpow2.f32 %v12241_v3 }
 0xdaa   :  { %16124 = vtanh.f32 %v6179_v58 }
 0xdab   :  { %v16119_v11 = vpop.eup %16118 }
 0xdac   :  { %v16121_v7 = vpop.eup %16120  ;;  %v6254_v35 = vadd.f32 1.0, %v16119_v11 }
 0xdad   :  { %v6260_v56 = vadd.f32 1.0, %v16121_v7 }
 0xdae   :  { %16126 = vrcp.f32 %v6254_v35 }
 0xdaf   :  { %16128 = vrcp.f32 %v6260_v56 }
 0xdb3   :  { %v16123_v21 = vpop.eup %16122 }
 0xdb4   :  { %v16125_v34 = vpop.eup %16124  ;;  %v6267_v29 = vadd.f32 1.0, %v16123_v21 }
 0xdb6   :  { %16130 = vrcp.f32 %v6267_v29 }
 0xdb8   :  { %v16127_v28 = vpop.eup %16126 }
 0xdb9   :  { %v16129_v41 = vpop.eup %16128  ;;  %v6271_v46 = vmul.f32 %v16127_v28, %v16125_v34 }
 0xdba   :  { %v6270_v47 = vmul.f32 %v16129_v41, %v17325_v26  ;;  %v16458_v26 = vmov 7  }
 0xdbb   :  { %15923 = vset.pattern.permute.xlu1 %v16458_v26 }
 0xdbc   :  { %v17446_v40 = vadd.f32 %v6271_v46, %v6270_v47  ;;  %244 = vperm.xlu1 %15923, %v16347_v5  }
 0xdbe   :  { %16132 = vtanh.f32 %v17446_v40 }
 0xdc0   :  { %v16131_v24 = vpop.eup %16130  ;;  %15925 = vset.pattern.permute.xlu1 %v16451_v2 }
 0xdc8   :  { %v16133_v52 = vpop.eup %16132 }
 0xdc9   :  { %v17449_v42 = vmul.f32 %v16133_v52, %v16131_v24 }
 0xdcb   :  { %14012 = vmatmul.mubr.msk.f32.vlgmr.msra.gmra.mrb[48].mxu0 %vm259_vm1, %v17449_v42  ;;  %14023 = vmatmul.mubr.msk.f32.vlgmr.msra.gmra.mrb[48].mxu1 %vm259_vm1, %v17449_v42 }
 0xdcc   :  { %15311 = vmatpush3.bf16.msra.mxu0 %v16699_v60  ;;  %15317 = vmatpush3.bf16.msra.mxu1 %v16701_v62 }
 0xdcd   :  { %15312 = vmatprep.subr.bf16.mxu0 %v18275_v0  ;;  %15318 = vmatprep.subr.bf16.mxu1 %v18275_v0 }
 0xdce   :  { %14033 = vmatprep.mubr.msk.f32.mxu0 %vm16449_vm0, %v18273_v1  ;;  %14044 = vmatprep.mubr.msk.f32.mxu1 %vm16449_vm0, %v18273_v1 }
 0xdd0   :  { %15314 = vmatpush3.bf16.msra.mxu0 %v16711_v30  ;;  %15320 = vmatpush3.bf16.msra.mxu1 %v16713_v12 }
 0xdd1   :  { %15321 = vmatprep.subr.bf16.mxu0 %v18275_v0  ;;  %15327 = vmatprep.subr.bf16.mxu1 %v18275_v0 }
 0xdd3   :  { %14034 = vmatmul.mubr.msk.f32.vlgmr.msra.gmra.mrb[50].mxu0 %vm259_vm1, %v17449_v42  ;;  %14045 = vmatmul.mubr.msk.f32.vlgmr.msra.gmra.mrb[50].mxu1 %vm259_vm1, %v17449_v42 }
 0xdd4   :  { %15323 = vmatpush3.bf16.msra.mxu0 %v16539_v6  ;;  %15329 = vmatpush3.bf16.msra.mxu1 %v16541_v10 }
 0xdd5   :  { %15324 = vmatprep.subr.bf16.mxu0 %v18275_v0  ;;  %15330 = vmatprep.subr.bf16.mxu1 %v18275_v0 }
 0xdd6   :  { %14055 = vmatprep.mubr.msk.f32.mxu0 %vm16449_vm0, %v18273_v1  ;;  %14066 = vmatprep.mubr.msk.f32.mxu1 %vm16449_vm0, %v18273_v1 }
 0xdd8   :  { %15326 = vmatpush3.bf16.msra.mxu0 %v16544_v13  ;;  %15332 = vmatpush3.bf16.msra.mxu1 %v16548_v14 }
 0xdd9   :  { %15333 = vmatprep.subr.bf16.mxu0 %v18275_v0  ;;  %15339 = vmatprep.subr.bf16.mxu1 %v18275_v0 }
 0xe9e   :  { %v6344_v54 = vpop.f32.mrb[48].mxu0  ;;  %v6415_v3 = vpop.f32.mrb[48].mxu1 }
 0xe9f   :  { %v15769_v58 = vadd.f32 %v6344_v54, %v16744_v36  ;;  %v15770_v11 = vadd.f32 %v6415_v3, %v16748_v37  ;;  %v14013_v7 = vpop.f32.mrb[49].mxu0  ;;  %v14024_v35 = vpop.f32.mrb[49].mxu1 }
 0xea1   :  { %v12246_v56 = vmul.f32 -1.442695, %v15769_v58  ;;  %v12247_v21 = vmul.f32 -1.442695, %v15770_v11 }
 0xea3   :  { %16134 = vpow2.f32 %v12246_v56 }
 0xea4   :  { %16136 = vpow2.f32 %v12247_v21 }
 0xea6   :  { %v6486_v34 = vpop.f32.mrb[50].mxu0  ;;  %v6557_v28 = vpop.f32.mrb[50].mxu1 }
 0xea7   :  { %v15772_v41 = vadd.f32 %v6557_v28, %v16754_v59  ;;  %v14035_v46 = vpop.f32.mrb[51].mxu0  ;;  %v14046_v29 = vpop.f32.mrb[51].mxu1  ;;  %v15771_v2 = vadd.f32 %v6486_v34, %v16758_v8 }
 0xea9   :  { %v12248_v47 = vmul.f32 -1.442695, %v15772_v41  ;;  %v7494_v41 = vrot.slane %v17371_v17, 6 }
 0xeab   :  { %16138 = vpow2.f32 %v12248_v47 }
 0xeac   :  { %16140 = vtanh.f32 %v15771_v2 }
 0xead   :  { %v16135_v24 = vpop.eup %16134 }
 0xeae   :  { %v16137_v52 = vpop.eup %16136  ;;  %v6565_v26 = vadd.f32 1.0, %v16135_v24 }
 0xeaf   :  { %v6571_v5 = vadd.f32 1.0, %v16137_v52 }
 0xeb0   :  { %16142 = vrcp.f32 %v6565_v26 }
 0xeb1   :  { %16144 = vrcp.f32 %v6571_v5 }
 0xeb5   :  { %v16139_v54 = vpop.eup %16138 }
 0xeb6   :  { %v16141_v3 = vpop.eup %16140  ;;  %v6578_v35 = vadd.f32 1.0, %v16139_v54 }
 0xeb8   :  { %16146 = vrcp.f32 %v6578_v35 }
 0xeba   :  { %v16143_v58 = vpop.eup %16142 }
 0xebb   :  { %v16145_v11 = vpop.eup %16144  ;;  %v6582_v7 = vmul.f32 %v16143_v58, %v16141_v3 }
 0xebc   :  { %v6581_v56 = vmul.f32 %v16145_v11, %v17368_v23  ;;  %v7507_v23 = vsel %vm7501_vm2, %v17250_v16, %v7494_v41  ;;  %v245_v16 = vpop.permute.xlu1 %244 }
 0xebd   :  { %v247_v17 = vmul.f32 %v245_v16, %v16652_v9  ;;  %v253_v35 = vmul.f32 %v245_v16, %v16676_v31 }
 0xebe   :  { %v17489_v21 = vadd.f32 %v6582_v7, %v6581_v56  ;;  %v251_v56 = vmul.f32 %v245_v16, %v16681_v43 }
 0xebf   :  { %v248_v2 = vadd.f32 %v247_v17, %v16663_v18 }
 0xec0   :  { %16148 = vtanh.f32 %v17489_v21  ;;  %v252_v17 = vadd.f32 %v251_v56, %v16692_v53 }
 0xec2   :  { %v16147_v34 = vpop.eup %16146 }
 0xeca   :  { %v16149_v28 = vpop.eup %16148 }
 0xecb   :  { %v6585_v46 = vmul.f32 %v16149_v28, %v16147_v34  ;;  %v254_v34 = vadd.f32 %v253_v35, %v16687_v49 }
 0xecd   :  { %14056 = vmatmul.mubr.msk.f32.vlgmr.msra.gmra.mrb[56].mxu0 %vm259_vm1, %v6585_v46  ;;  %14067 = vmatmul.mubr.msk.f32.vlgmr.msra.gmra.mrb[56].mxu1 %vm259_vm1, %v6585_v46  ;;  %v7496_v29 = vrot.slane %v6585_v46, 4 }
 0xece   :  { %15335 = vmatpush3.bf16.msra.mxu0 %v16552_v19  ;;  %15341 = vmatpush3.bf16.msra.mxu1 %v16556_v20 }
 0xecf   :  { %15336 = vmatprep.subr.bf16.mxu0 %v18275_v0  ;;  %15342 = vmatprep.subr.bf16.mxu1 %v18275_v0  ;;  %v17502_v47 = vsel %vm7503_vm3, %v7507_v23, %v7496_v29 }
 0xed0   :  { %14077 = vmatprep.mubr.msk.f32.mxu0 %vm16449_vm0, %v18273_v1  ;;  %14088 = vmatprep.mubr.msk.f32.mxu1 %vm16449_vm0, %v18273_v1 }
 0xed2   :  { %15338 = vmatpush3.bf16.msra.mxu0 %v16562_v25  ;;  %15344 = vmatpush3.bf16.msra.mxu1 %v16568_v27 }
 0xed3   :  { %15345 = vmatprep.subr.bf16.mxu0 %v18275_v0  ;;  %15351 = vmatprep.subr.bf16.mxu1 %v18275_v0 }
 0xed5   :  { %14078 = vmatmul.mubr.msk.f32.vlgmr.msra.gmra.mrb[58].mxu0 %vm259_vm1, %v6585_v46  ;;  %14089 = vmatmul.mubr.msk.f32.vlgmr.msra.gmra.mrb[58].mxu1 %vm259_vm1, %v6585_v46 }
 0xed6   :  { %15347 = vmatpush3.bf16.msra.mxu0 %v16577_v32  ;;  %15353 = vmatpush3.bf16.msra.mxu1 %v16581_v33 }
 0xed7   :  { %15348 = vmatprep.subr.bf16.mxu0 %v18275_v0  ;;  %15354 = vmatprep.subr.bf16.mxu1 %v18275_v0 }
 0xed8   :  { %14099 = vmatprep.mubr.msk.f32.mxu0 %vm16449_vm0, %v18273_v1  ;;  %14110 = vmatprep.mubr.msk.f32.mxu1 %vm16449_vm0, %v18273_v1 }
 0xeda   :  { %15350 = vmatpush3.bf16.msra.mxu0 %v16587_v38  ;;  %15356 = vmatpush3.bf16.msra.mxu1 %v16591_v39 }
 0xedb   :  { %15357 = vmatprep.subr.bf16.mxu0 %v18275_v0  ;;  %15363 = vmatprep.subr.bf16.mxu1 %v18275_v0 }
 0xedd   :  { %14100 = vmatmul.mubr.msk.f32.vlgmr.msra.gmra.mrb[60].mxu0 %vm259_vm1, %v17449_v42  ;;  %14111 = vmatmul.mubr.msk.f32.vlgmr.msra.gmra.mrb[60].mxu1 %vm259_vm1, %v17449_v42 }
 0xede   :  { %15359 = vmatpush3.bf16.msra.mxu0 %v16599_v44  ;;  %15365 = vmatpush3.bf16.msra.mxu1 %v16603_v45 }
 0xedf   :  { %15360 = vmatprep.subr.bf16.mxu0 %v18275_v0  ;;  %15366 = vmatprep.subr.bf16.mxu1 %v18275_v0 }
 0xee0   :  { %14121 = vmatprep.mubr.msk.f32.mxu0 %vm16449_vm0, %v18273_v1  ;;  %14132 = vmatprep.mubr.msk.f32.mxu1 %vm16449_vm0, %v18273_v1 }
 0xee2   :  { %15362 = vmatpush3.bf16.msra.mxu0 %v16609_v50  ;;  %15368 = vmatpush3.bf16.msra.mxu1 %v16613_v51 }
 0xee3   :  { %15369 = vmatprep.subr.bf16.mxu0 %v18275_v0  ;;  %15375 = vmatprep.subr.bf16.mxu1 %v18275_v0 }
 0xee5   :  { %14122 = vmatmul.mubr.msk.f32.vlgmr.msra.gmra.mrb[62].mxu0 %vm259_vm1, %v17449_v42  ;;  %14133 = vmatmul.mubr.msk.f32.vlgmr.msra.gmra.mrb[62].mxu1 %vm259_vm1, %v17449_v42  ;;  %v249_v42 = vmul.f32 %v245_v16, %v16657_v15 }
 0xee6   :  { %15371 = vmatpush3.bf16.msra.mxu0 %v16630_v55  ;;  %15377 = vmatpush3.bf16.msra.mxu1 %v16632_v57 }
 0xee7   :  { %15372 = vmatprep.subr.bf16.mxu0 %v18275_v0  ;;  %15378 = vmatprep.subr.bf16.mxu1 %v18275_v0  ;;  %v250_v24 = vadd.f32 %v249_v42, %v16668_v22 }
 0xee8   :  { %14143 = vmatprep.mubr.msk.f32.mxu0 %vm16449_vm0, %v18273_v1  ;;  %14154 = vmatprep.mubr.msk.f32.mxu1 %vm16449_vm0, %v18273_v1 }
 0xeea   :  { %15374 = vmatpush3.bf16.msra.mxu0 %v16638_v61  ;;  %15380 = vmatpush3.bf16.msra.mxu1 %v16640_v63 }
 0xeeb   :  { %15381 = vmatprep.subr.bf16.mxu0 %v18275_v0  ;;  %15387 = vmatprep.subr.bf16.mxu1 %v18275_v0 }
 0xfb0   :  { %v6935_v52 = vpop.f32.mrb[60].mxu0  ;;  %v7006_v26 = vpop.f32.mrb[60].mxu1 }
 0xfb1   :  { %v6939_v5 = vadd.f32 %v6935_v52, %v248_v2  ;;  %v7010_v54 = vadd.f32 %v7006_v26, %v250_v24  ;;  %v14101_v3 = vpop.f32.mrb[61].mxu0  ;;  %v14112_v58 = vpop.f32.mrb[61].mxu1 }
 0xfb3   :  { %v12257_v11 = vmul.f32 -1.442695, %v6939_v5  ;;  %v12258_v7 = vmul.f32 -1.442695, %v7010_v54 }
 0xfb5   :  { %16150 = vpow2.f32 %v12257_v11 }
 0xfb6   :  { %16152 = vpow2.f32 %v12258_v7 }
 0xfb8   :  { %v7077_v28 = vpop.f32.mrb[62].mxu0  ;;  %v7148_v41 = vpop.f32.mrb[62].mxu1 }
 0xfb9   :  { %v7152_v46 = vadd.f32 %v7148_v41, %v254_v34  ;;  %v14123_v29 = vpop.f32.mrb[63].mxu0  ;;  %v14134_v23 = vpop.f32.mrb[63].mxu1  ;;  %v7081_v2 = vadd.f32 %v7077_v28, %v252_v17  ;;  %v120_v17 = vld [vmem:[#allocation7 + $0x198] sm:$0xff] }
 0xfba   :  { %v119_v23 = vld [vmem:[#allocation7 + $0x190] sm:$0xff] }
 0xfbb   :  { %v12259_v42 = vmul.f32 -1.442695, %v7152_v46  ;;  %v118_v46 = vld [vmem:[#allocation7 + $0x188] sm:$0xff] }
 0xfbd   :  { %16154 = vpow2.f32 %v12259_v42  ;;  %v17596_v42 = vpack.c.bf16 %v120_v17, %v119_v23 }
 0xfbe   :  { %16156 = vtanh.f32 %v7081_v2 }
 0xfbf   :  { %v16151_v24 = vpop.eup %16150 }
 0xfc0   :  { %v16153_v52 = vpop.eup %16152  ;;  %v7156_v26 = vadd.f32 1.0, %v16151_v24 }
 0xfc1   :  { %v7162_v5 = vadd.f32 1.0, %v16153_v52 }
 0xfc2   :  { %16158 = vrcp.f32 %v7156_v26 }
 0xfc3   :  { %16160 = vrcp.f32 %v7162_v5 }
 0xfc7   :  { %v16155_v16 = vpop.eup %16154 }
 0xfc8   :  { %v16157_v54 = vpop.eup %16156  ;;  %v7169_v7 = vadd.f32 1.0, %v16155_v16 }
 0xfca   :  { %16162 = vrcp.f32 %v7169_v7 }
 0xfcc   :  { %v16159_v3 = vpop.eup %16158 }
 0xfcd   :  { %v16161_v58 = vpop.eup %16160  ;;  %v7173_v11 = vmul.f32 %v16159_v3, %v16157_v54 }
 0xfce   :  { %v7172_v35 = vmul.f32 %v16161_v58, %v17446_v40  ;;  %v117_v40 = vld [vmem:[#allocation7 + $0x180] sm:$0xff] }
 0xfcf   :  { %v17592_v29 = vpack.c.bf16 %v118_v46, %v117_v40 }
 0xfd0   :  { %v17567_v34 = vadd.f32 %v7173_v11, %v7172_v35 }
 0xfd2   :  { %16164 = vtanh.f32 %v17567_v34 }
 0xfd4   :  { %v16163_v56 = vpop.eup %16162 }
 0xfdc   :  { %v16165_v28 = vpop.eup %16164 }
 0xfdd   :  { %v17570_v41 = vmul.f32 %v16165_v28, %v16163_v56 }
 0xfdf   :  { %14144 = vmatmul.mubr.msk.f32.vlgmr.msra.gmra.mrb[56].mxu0 %vm259_vm1, %v17570_v41  ;;  %14155 = vmatmul.mubr.msk.f32.vlgmr.msra.gmra.mrb[56].mxu1 %vm259_vm1, %v17570_v41 }
 0xfe0   :  { %15383 = vmatpush3.bf16.msra.mxu0 %v16699_v60  ;;  %15389 = vmatpush3.bf16.msra.mxu1 %v16701_v62 }
 0xfe1   :  { %15384 = vmatprep.subr.bf16.mxu0 %v18275_v0  ;;  %15390 = vmatprep.subr.bf16.mxu1 %v18275_v0 }
 0xfe2   :  { %14165 = vmatprep.mubr.msk.f32.mxu0 %vm16449_vm0, %v18273_v1  ;;  %14176 = vmatprep.mubr.msk.f32.mxu1 %vm16449_vm0, %v18273_v1 }
 0xfe4   :  { %15386 = vmatpush3.bf16.msra.mxu0 %v16711_v30  ;;  %15392 = vmatpush3.bf16.msra.mxu1 %v16713_v12 }
 0xfe5   :  { %15394 = vmatprep.subr.bf16.mxu0 %v17592_v29 }
 0xfe7   :  { %14166 = vmatmul.mubr.msk.f32.vlgmr.msra.gmra.mrb[58].mxu0 %vm259_vm1, %v17570_v41  ;;  %14177 = vmatmul.mubr.msk.f32.vlgmr.msra.gmra.mrb[58].mxu1 %vm259_vm1, %v17570_v41 }
 0xfe8   :  { %14187 = vmatprep.mubr.msk.f32.mxu0 %vm259_vm1, %v17138_v48  ;;  %15396 = vmatpush3.bf16.msra.mxu0 %v17592_v29 }
 0xfe9   :  { %15398 = vmatprep.subr.bf16.mxu0 %v17596_v42 }
 0xfec   :  { %15400 = vmatpush3.bf16.msra.mxu0 %v17596_v42 }
 0xfed   :  { %15409 = vmatprep.subr.bf16.mxu0 %v18275_v0 }
0x10b2   :  { %v7246_v2 = vpop.f32.mrb[56].mxu0  ;;  %v7317_v24 = vpop.f32.mrb[56].mxu1 }
0x10b3   :  { %v15773_v52 = vadd.f32 %v7246_v2, %v16744_v36  ;;  %v15774_v26 = vadd.f32 %v7317_v24, %v16748_v37  ;;  %v14145_v5 = vpop.f32.mrb[57].mxu0  ;;  %v14156_v16 = vpop.f32.mrb[57].mxu1 }
0x10b5   :  { %v12264_v54 = vmul.f32 -1.442695, %v15773_v52  ;;  %v12265_v3 = vmul.f32 -1.442695, %v15774_v26 }
0x10b7   :  { %16166 = vpow2.f32 %v12264_v54 }
0x10b8   :  { %16168 = vpow2.f32 %v12265_v3 }
0x10ba   :  { %v7388_v58 = vpop.f32.mrb[58].mxu0  ;;  %v7459_v11 = vpop.f32.mrb[58].mxu1 }
0x10bb   :  { %v15776_v7 = vadd.f32 %v7459_v11, %v16754_v59  ;;  %v14167_v35 = vpop.f32.mrb[59].mxu0  ;;  %v14178_v56 = vpop.f32.mrb[59].mxu1  ;;  %v15775_v40 = vadd.f32 %v7388_v58, %v16758_v8 }
0x10bd   :  { %v12266_v28 = vmul.f32 -1.442695, %v15776_v7 }
0x10bf   :  { %16170 = vpow2.f32 %v12266_v28 }
0x10c0   :  { %16172 = vtanh.f32 %v15775_v40  ;;  %v124_v40 = vld [vmem:[#allocation7 + $0x1b0] sm:$0xff] }
0x10c1   :  { %v16167_v46 = vpop.eup %16166 }
0x10c2   :  { %v16169_v23 = vpop.eup %16168  ;;  %v7467_v17 = vadd.f32 1.0, %v16167_v46 }
0x10c3   :  { %v7473_v2 = vadd.f32 1.0, %v16169_v23  ;;  %v125_v23 = vld [vmem:[#allocation7 + $0x1b8] sm:$0xff] }
0x10c4   :  { %16174 = vrcp.f32 %v7467_v17  ;;  %v17658_v17 = vpack.c.bf16 %v125_v23, %v124_v40 }
0x10c5   :  { %16176 = vrcp.f32 %v7473_v2  ;;  %v17665_v2 = vld [vmem:[#allocation5 + $0x8] sm:$0xff] }
0x10c9   :  { %v16171_v24 = vpop.eup %16170 }
0x10ca   :  { %v16173_v52 = vpop.eup %16172  ;;  %v7480_v54 = vadd.f32 1.0, %v16171_v24  ;;  %v18305_v24 = vsub.s32 4, %v16646_v4 }
0x10cc   :  { %16178 = vrcp.f32 %v7480_v54 }
0x10ce   :  { %v16175_v26 = vpop.eup %16174 }
0x10cf   :  { %v16177_v5 = vpop.eup %16176  ;;  %v7484_v16 = vmul.f32 %v16175_v26, %v16173_v52  ;;  %v17670_v52 = vrot.slane %v17665_v2, %v18305_v24 }
0x10d0   :  { %v7483_v3 = vmul.f32 %v16177_v5, %v17489_v21  ;;  %v122_v21 = vld [vmem:[#allocation7 + $0x1a0] sm:$0xff] }
0x10d2   :  { %v17606_v11 = vadd.f32 %v7484_v16, %v7483_v3 }
0x10d4   :  { %16180 = vtanh.f32 %v17606_v11 }
0x10d6   :  { %v16179_v58 = vpop.eup %16178 }
0x10de   :  { %v16181_v7 = vpop.eup %16180 }
0x10df   :  { %v17609_v35 = vmul.f32 %v16181_v7, %v16179_v58 }
0x10e1   :  { %v7499_v56 = vrot.slane %v17609_v35, 2 }
0x10e3   :  { %v17614_v28 = vsel %vm7505_vm4, %v17502_v47, %v7499_v56  ;;  %v123_v47 = vld [vmem:[#allocation7 + $0x1a8] sm:$0xff] }
0x10e4   :  { %14188 = vmatmul.mubr.msk.f32.vlgmr.msra.gmra.mrb[64].mxu0 %vm259_vm1, %v17614_v28  ;;  %v17656_v46 = vpack.c.bf16 %v123_v47, %v122_v21 }
0x10e5   :  { %15411 = vmatpush3.bf16.msra.mxu0 %v16539_v6  ;;  %14209 = vmatprep.mubr.msk.f32.mxu0 %vm16449_vm0, %v18273_v1 }
0x10e6   :  { %15412 = vmatprep.subr.bf16.mxu0 %v18275_v0  ;;  %15402 = vmatprep.subr.bf16.mxu1 %v17656_v46 }
0x10e7   :  { %15404 = vmatpush3.bf16.msra.mxu1 %v17656_v46 }
0x10e8   :  { %15406 = vmatprep.subr.bf16.mxu1 %v17658_v17 }
0x10e9   :  { %15414 = vmatpush3.bf16.msra.mxu0 %v16544_v13 }
0x10ea   :  { %15421 = vmatprep.subr.bf16.mxu0 %v18275_v0 }
0x10eb   :  { %15408 = vmatpush3.bf16.msra.mxu1 %v17658_v17 }
0x10ec   :  { %14210 = vmatmul.mubr.msk.f32.vlgmr.msra.gmra.mrb[66].mxu0 %vm259_vm1, %v17609_v35  ;;  %15415 = vmatprep.subr.bf16.mxu1 %v18275_v0 }
0x10ed   :  { %15423 = vmatpush3.bf16.msra.mxu0 %v16552_v19  ;;  %14231 = vmatprep.mubr.msk.f32.mxu0 %vm16449_vm0, %v18273_v1 }
0x10ee   :  { %15424 = vmatprep.subr.bf16.mxu0 %v18275_v0 }
0x10f1   :  { %15426 = vmatpush3.bf16.msra.mxu0 %v16562_v25 }
0x10f2   :  { %15433 = vmatprep.subr.bf16.mxu0 %v18275_v0 }
0x10f4   :  { %14232 = vmatmul.mubr.msk.f32.vlgmr.msra.gmra.mrb[68].mxu0 %vm259_vm1, %v17609_v35 }
0x10f5   :  { %15435 = vmatpush3.bf16.msra.mxu0 %v16577_v32  ;;  %14253 = vmatprep.mubr.msk.f32.mxu0 %vm16449_vm0, %v18273_v1 }
0x10f6   :  { %15436 = vmatprep.subr.bf16.mxu0 %v18275_v0 }
0x10f9   :  { %15438 = vmatpush3.bf16.msra.mxu0 %v16587_v38 }
0x10fa   :  { %15445 = vmatprep.subr.bf16.mxu0 %v18275_v0 }
0x10fc   :  { %14254 = vmatmul.mubr.msk.f32.vlgmr.msra.gmra.mrb[70].mxu0 %vm259_vm1, %v17570_v41 }
0x10fd   :  { %15447 = vmatpush3.bf16.msra.mxu0 %v16599_v44  ;;  %14275 = vmatprep.mubr.msk.f32.mxu0 %vm16449_vm0, %v18273_v1 }
0x10fe   :  { %15448 = vmatprep.subr.bf16.mxu0 %v18275_v0 }
0x1101   :  { %15450 = vmatpush3.bf16.msra.mxu0 %v16609_v50 }
0x1102   :  { %15457 = vmatprep.subr.bf16.mxu0 %v18275_v0 }
0x1104   :  { %14276 = vmatmul.mubr.msk.f32.vlgmr.msra.gmra.mrb[72].mxu0 %vm259_vm1, %v17570_v41 }
0x1105   :  { %15459 = vmatpush3.bf16.msra.mxu0 %v16630_v55  ;;  %14297 = vmatprep.mubr.msk.f32.mxu0 %vm16449_vm0, %v18273_v1 }
0x1106   :  { %15460 = vmatprep.subr.bf16.mxu0 %v18275_v0 }
0x1109   :  { %15462 = vmatpush3.bf16.msra.mxu0 %v16638_v61 }
0x110a   :  { %15469 = vmatprep.subr.bf16.mxu0 %v18275_v0 }
0x11b7   :  { %v14189_v26 = vpop.f32.mrb[64].mxu0 }
0x11b8   :  { %v7592_v5 = vadd.f32 %v14189_v26, %v17670_v52  ;;  %v7586_v16 = vpop.f32.mrb[65].mxu0 }
0x11b9   :  { %v7587_v54 = vadd.f32 %v7586_v16, %v17670_v52 }
0x11bb   :  { %16182 = vtanh.f32 %v7587_v54 }
0x11bc   :  { %16184 = vtanh.f32 %v7592_v5 }
0x11c5   :  { %v16183_v3 = vpop.eup %16182 }
0x11c6   :  { %v16185_v58 = vpop.eup %16184  ;;  %14198 = vmatprep.mubr.msk.f32.mxu1 %vm259_vm1, %v16183_v3 }
0x11c7   :  { %14199 = vmatmul.mubr.msk.f32.vlgmr.msra.gmra.mrb[64].mxu1 %vm259_vm1, %v16185_v58 }
0x11c8   :  { %15417 = vmatpush3.bf16.msra.mxu1 %v16541_v10  ;;  %14220 = vmatprep.mubr.msk.f32.mxu1 %vm16449_vm0, %v18273_v1 }
0x11c9   :  { %15418 = vmatprep.subr.bf16.mxu1 %v18275_v0 }
0x11cc   :  { %15420 = vmatpush3.bf16.msra.mxu1 %v16548_v14 }
0x11cd   :  { %15427 = vmatprep.subr.bf16.mxu1 %v18275_v0 }
0x11cf   :  { %14221 = vmatmul.mubr.msk.f32.vlgmr.msra.gmra.mrb[66].mxu1 %vm259_vm1, %v17609_v35  ;;  %v17684_v7 = vpop.f32.mrb[70].mxu0 }
0x11d0   :  { %15429 = vmatpush3.bf16.msra.mxu1 %v16556_v20  ;;  %v14255_v56 = vpop.f32.mrb[71].mxu0  ;;  %14242 = vmatprep.mubr.msk.f32.mxu1 %vm16449_vm0, %v18273_v1 }
0x11d1   :  { %15430 = vmatprep.subr.bf16.mxu1 %v18275_v0 }
0x11d4   :  { %15432 = vmatpush3.bf16.msra.mxu1 %v16568_v27 }
0x11d5   :  { %15439 = vmatprep.subr.bf16.mxu1 %v18275_v0 }
0x11d7   :  { %14243 = vmatmul.mubr.msk.f32.vlgmr.msra.gmra.mrb[68].mxu1 %vm259_vm1, %v17609_v35  ;;  %v17694_v21 = vpop.f32.mrb[72].mxu0  ;;  %v18306_v35 = vsub.s32 5, %v16646_v4 }
0x11d8   :  { %15441 = vmatpush3.bf16.msra.mxu1 %v16581_v33  ;;  %v14277_v47 = vpop.f32.mrb[73].mxu0  ;;  %14264 = vmatprep.mubr.msk.f32.mxu1 %vm16449_vm0, %v18273_v1 }
0x11d9   :  { %15442 = vmatprep.subr.bf16.mxu1 %v18275_v0  ;;  %v17721_v40 = vrot.slane %v17665_v2, %v18306_v35 }
0x11db   :  { %18307 = vst [vmem:[#allocation18_spill] sm:$0xff] %v17721_v40 }
0x11dc   :  { %15444 = vmatpush3.bf16.msra.mxu1 %v16591_v39 }
0x11dd   :  { %15451 = vmatprep.subr.bf16.mxu1 %v18275_v0 }
0x11df   :  { %14265 = vmatmul.mubr.msk.f32.vlgmr.msra.gmra.mrb[70].mxu1 %vm259_vm1, %v17570_v41 }
0x11e0   :  { %15453 = vmatpush3.bf16.msra.mxu1 %v16603_v45  ;;  %14286 = vmatprep.mubr.msk.f32.mxu1 %vm16449_vm0, %v18273_v1 }
0x11e1   :  { %15454 = vmatprep.subr.bf16.mxu1 %v18275_v0 }
0x11e4   :  { %15456 = vmatpush3.bf16.msra.mxu1 %v16613_v51 }
0x11e5   :  { %15463 = vmatprep.subr.bf16.mxu1 %v18275_v0 }
0x11e7   :  { %14287 = vmatmul.mubr.msk.f32.vlgmr.msra.gmra.mrb[72].mxu1 %vm259_vm1, %v17570_v41 }
0x11e8   :  { %15465 = vmatpush3.bf16.msra.mxu1 %v16632_v57  ;;  %14308 = vmatprep.mubr.msk.f32.mxu1 %vm16449_vm0, %v18273_v1  ;;  %v18309_v1 = vsub.s32 6, %v16646_v4 }
0x11e9   :  { %15466 = vmatprep.subr.bf16.mxu1 %v18275_v0 }
0x11ea   :  { %v17730_v35 = vrot.slane %v17665_v2, %v18309_v1 }
0x11ec   :  { %15468 = vmatpush3.bf16.msra.mxu1 %v16640_v63  ;;  %18310 = vst [vmem:[#allocation20_spill] sm:$0xff] %v17730_v35 }
0x11ed   :  { %15475 = vmatprep.subr.bf16.mxu1 %v18275_v0 }
0x129a   :  { %v14200_v23 = vpop.f32.mrb[64].mxu1 }
0x129b   :  { %v7679_v24 = vadd.f32 %v14200_v23, %v17721_v40  ;;  %v17724_v41 = vpop.f32.mrb[65].mxu1 }
0x129c   :  { %18308 = vst [vmem:[#allocation19_spill] sm:$0xff] %v17724_v41 }
0x129d   :  { %v7685_v26 = vsel %vm259_vm1, %v7679_v24, -inf }
0x129e   :  { %7686 = vmax.xlane.f32.xlu0 %v7685_v26 }
0x12b2   :  { %v8159_v5 = vpop.f32.mrb[70].mxu1 }
0x12b3   :  { %v14266_v16 = vpop.f32.mrb[71].mxu1 }
0x12ba   :  { %v8307_v54 = vpop.f32.mrb[72].mxu1 }
0x12bb   :  { %v14288_v3 = vpop.f32.mrb[73].mxu1 }
0x132b   :  { %v7687_v58 = vpop.xlane.xlu0 %7686 }
0x132c   :  { %v7689_v56 = vsub.f32 %v7679_v24, %v7687_v58  ;;  %v18311_v24 = vsub.s32 7, %v16646_v4 }
0x132e   :  { %v7692_v47 = vmul.f32 1.442695, %v7689_v56  ;;  %v17739_v58 = vrot.slane %v17665_v2, %v18311_v24 }
0x1330   :  { %16186 = vpow2.f32 %v7692_v47  ;;  %18312 = vst [vmem:[#allocation21_spill] sm:$0xff] %v17739_v58 }
0x133a   :  { %v16187_v0 = vpop.eup %16186 }
0x133b   :  { %v7711_v23 = vsel %vm259_vm1, %v16187_v0, 0.0  ;;  %v7695_v48 = vmul.f32 %v16187_v0, %v17614_v28 }
0x133c   :  { %7712 = vadd.xlane.f32.xlu1 %v7711_v23  ;;  %v8090_v23 = vrot.slane %v17684_v7, 2 }
0x133d   :  { %v7701_v26 = vmul.f32 %v17730_v35, %v7695_v48 }
0x133f   :  { %v7705_v16 = vsel %vm259_vm1, %v7701_v26, 0.0  ;;  %v8164_v26 = vrot.slane %v8159_v5, 2  ;;  %v8238_v5 = vrot.slane %v17694_v21, 2 }
0x1340   :  { %7706 = vadd.xlane.f32.xlu0 %v7705_v16 }
0x13c9   :  { %v7713_v3 = vpop.xlane.xlu1 %7712 }
0x13ca   :  { %16188 = vrcp.f32 %v7713_v3 }
0x13cd   :  { %v7707_v56 = vpop.xlane.xlu0 %7706 }
0x13d4   :  { %v16189_v1 = vpop.eup %16188 }
0x13d5   :  { %v7717_v47 = vmul.f32 %v16189_v1, %v7707_v56 }
0x13d7   :  { %v17742_v41 = vadd.f32 %v17739_v58, %v7717_v47 }
0x13d9   :  { %18313 = vst [vmem:[#allocation22_spill] sm:$0xff] %v17742_v41  ;;  %7726 = vperm.xlu0 %15924, %v17742_v41  }
0x1458   :  { %v7727_v0 = vpop.permute.xlu0 %7726 }
0x1459   :  { %v7729_v48 = vmul.f32 %v7727_v0, %v16652_v9  ;;  %v7731_v28 = vmul.f32 %v7727_v0, %v16657_v15  ;;  %v7735_v16 = vmul.f32 %v7727_v0, %v16676_v31  ;;  %v7733_v41 = vmul.f32 %v7727_v0, %v16681_v43 }
0x145a   :  { %v8312_v9 = vrot.slane %v8307_v54, 2  ;;  %v8335_v54 = vrot.slane %v17567_v34, 2  ;;  %v18314_v34 = vmov 0.0|0.0  }
0x145b   :  { %v7730_v4 = vadd.f32 %v7729_v48, %v16663_v18  ;;  %v7732_v2 = vadd.f32 %v7731_v28, %v16668_v22  ;;  %v7736_v47 = vadd.f32 %v7735_v16, %v16687_v49  ;;  %v7734_v7 = vadd.f32 %v7733_v41, %v16692_v53 }
0x145d   :  { %v8092_v3 = vadd.f32 %v8090_v23, %v7730_v4  ;;  %v8166_v24 = vadd.f32 %v8164_v26, %v7732_v2  ;;  %v8314_v15 = vadd.f32 %v8312_v9, %v7736_v47  ;;  %v8240_v28 = vadd.f32 %v8238_v5, %v7734_v7 }
0x145f   :  { %v12279_v1 = vmul.f32 -1.442695, %v8092_v3  ;;  %v12280_v56 = vmul.f32 -1.442695, %v8166_v24  ;;  %v12281_v48 = vmul.f32 -1.442695, %v8314_v15 }
0x1461   :  { %16190 = vpow2.f32 %v12279_v1  ;;  %v18315_v1 = vmov 0.0  }
0x1462   :  { %16192 = vpow2.f32 %v12280_v56 }
0x1463   :  { %16194 = vpow2.f32 %v12281_v48 }
0x1464   :  { %16196 = vtanh.f32 %v8240_v28 }
0x146b   :  { %v16191_v22 = vpop.eup %16190 }
0x146c   :  { %v16193_v31 = vpop.eup %16192  ;;  %v8318_v23 = vadd.f32 1.0, %v16191_v22 }
0x146d   :  { %v8324_v26 = vadd.f32 1.0, %v16193_v31  ;;  %v16195_v4 = vpop.eup %16194 }
0x146e   :  { %16198 = vrcp.f32 %v8318_v23  ;;  %v16197_v0 = vpop.eup %16196  ;;  %v8331_v16 = vadd.f32 1.0, %v16195_v4 }
0x146f   :  { %16200 = vrcp.f32 %v8324_v26 }
0x1470   :  { %16202 = vrcp.f32 %v8331_v16 }
0x1478   :  { %v16199_v2 = vpop.eup %16198 }
0x1479   :  { %v16201_v9 = vpop.eup %16200  ;;  %v8338_v41 = vmul.f32 %v16199_v2, %v16197_v0 }
0x147a   :  { %v8337_v3 = vmul.f32 %v16201_v9, %v8335_v54  ;;  %v16203_v15 = vpop.eup %16202 }
0x147c   :  { %v17756_v21 = vadd.f32 %v8338_v41, %v8337_v3 }
0x147e   :  { %16204 = vtanh.f32 %v17756_v21 }
0x1488   :  { %v16205_v22 = vpop.eup %16204 }
0x1489   :  { %v8341_v31 = vmul.f32 %v16205_v22, %v16203_v15 }
0x148b   :  { %v17759_v24 = vrot.slane %v8341_v31, 6 }
0x148d   :  { %14298 = vmatmul.mubr.msk.f32.vlgmr.msra.gmra.mrb[66].mxu0 %vm259_vm1, %v17759_v24  ;;  %14309 = vmatmul.mubr.msk.f32.vlgmr.msra.gmra.mrb[66].mxu1 %vm259_vm1, %v17759_v24 }
0x148e   :  { %15471 = vmatpush3.bf16.msra.mxu0 %v16699_v60  ;;  %15477 = vmatpush3.bf16.msra.mxu1 %v16701_v62 }
0x148f   :  { %15472 = vmatprep.subr.bf16.mxu0 %v18314_v34  ;;  %15478 = vmatprep.subr.bf16.mxu1 %v18314_v34 }
0x1490   :  { %14319 = vmatprep.mubr.msk.f32.mxu0 %vm16449_vm0, %v18315_v1  ;;  %14330 = vmatprep.mubr.msk.f32.mxu1 %vm16449_vm0, %v18315_v1 }
0x1492   :  { %15474 = vmatpush3.bf16.msra.mxu0 %v16711_v30  ;;  %15480 = vmatpush3.bf16.msra.mxu1 %v16713_v12 }
0x1493   :  { %15481 = vmatprep.subr.bf16.mxu0 %v18314_v34  ;;  %15487 = vmatprep.subr.bf16.mxu1 %v18314_v34 }
0x1495   :  { %14320 = vmatmul.mubr.msk.f32.vlgmr.msra.gmra.mrb[68].mxu0 %vm259_vm1, %v17759_v24  ;;  %14331 = vmatmul.mubr.msk.f32.vlgmr.msra.gmra.mrb[68].mxu1 %vm259_vm1, %v17759_v24 }
0x1496   :  { %15483 = vmatpush3.bf16.msra.mxu0 %v17592_v29  ;;  %14341 = vmatprep.mubr.msk.f32.mxu0 %vm16449_vm0, %v18315_v1 }
0x1497   :  { %15484 = vmatprep.subr.bf16.mxu0 %v18314_v34  ;;  %15489 = vmatpush3.bf16.msra.mxu1 %v17656_v46 }
0x1498   :  { %15490 = vmatprep.subr.bf16.mxu1 %v18314_v34  ;;  %14352 = vmatprep.mubr.msk.f32.mxu1 %vm16449_vm0, %v18315_v1 }
0x149a   :  { %15486 = vmatpush3.bf16.msra.mxu0 %v17596_v42 }
0x149b   :  { %15493 = vmatprep.subr.bf16.mxu0 %v18314_v34  ;;  %15492 = vmatpush3.bf16.msra.mxu1 %v17658_v17 }
0x149c   :  { %15499 = vmatprep.subr.bf16.mxu1 %v18314_v34 }
0x1560   :  { %v8412_v56 = vpop.f32.mrb[66].mxu0  ;;  %v8483_v47 = vpop.f32.mrb[66].mxu1 }
0x1561   :  { %v15777_v7 = vadd.f32 %v8412_v56, %v16744_v36  ;;  %v15778_v5 = vadd.f32 %v8483_v47, %v16748_v37  ;;  %v14299_v48 = vpop.f32.mrb[67].mxu0  ;;  %v14310_v28 = vpop.f32.mrb[67].mxu1 }
0x1563   :  { %v12286_v23 = vmul.f32 -1.442695, %v15777_v7  ;;  %v12287_v26 = vmul.f32 -1.442695, %v15778_v5 }
0x1565   :  { %16206 = vpow2.f32 %v12286_v23 }
0x1566   :  { %16208 = vpow2.f32 %v12287_v26 }
0x1568   :  { %v8554_v4 = vpop.f32.mrb[68].mxu0  ;;  %v8625_v0 = vpop.f32.mrb[68].mxu1 }
0x1569   :  { %v15780_v2 = vadd.f32 %v8625_v0, %v16754_v59  ;;  %v14321_v54 = vpop.f32.mrb[69].mxu0  ;;  %v14332_v9 = vpop.f32.mrb[69].mxu1  ;;  %v15779_v41 = vadd.f32 %v8554_v4, %v16758_v8 }
0x156b   :  { %v12288_v16 = vmul.f32 -1.442695, %v15780_v2 }
0x156d   :  { %16210 = vpow2.f32 %v12288_v16 }
0x156e   :  { %16212 = vtanh.f32 %v15779_v41 }
0x156f   :  { %v16207_v3 = vpop.eup %16206 }
0x1570   :  { %v16209_v15 = vpop.eup %16208  ;;  %v8633_v22 = vadd.f32 1.0, %v16207_v3 }
0x1571   :  { %v8639_v31 = vadd.f32 1.0, %v16209_v15 }
0x1572   :  { %16214 = vrcp.f32 %v8633_v22 }
0x1573   :  { %16216 = vrcp.f32 %v8639_v31 }
0x1577   :  { %v16211_v56 = vpop.eup %16210 }
0x1578   :  { %v16213_v47 = vpop.eup %16212  ;;  %v8646_v28 = vadd.f32 1.0, %v16211_v56 }
0x157a   :  { %16218 = vrcp.f32 %v8646_v28 }
0x157c   :  { %v16215_v7 = vpop.eup %16214 }
0x157d   :  { %v16217_v5 = vpop.eup %16216  ;;  %v8650_v48 = vmul.f32 %v16215_v7, %v16213_v47 }
0x157e   :  { %v8649_v23 = vmul.f32 %v16217_v5, %v17606_v11 }
0x1580   :  { %v17798_v26 = vadd.f32 %v8650_v48, %v8649_v23 }
0x1582   :  { %16220 = vtanh.f32 %v17798_v26 }
0x1584   :  { %v16219_v4 = vpop.eup %16218 }
0x158c   :  { %v16221_v0 = vpop.eup %16220 }
0x158d   :  { %v17801_v2 = vmul.f32 %v16221_v0, %v16219_v4 }
0x158f   :  { %14342 = vmatmul.mubr.msk.f32.vlgmr.msra.gmra.mrb[74].mxu0 %vm259_vm1, %v17801_v2 }
0x1590   :  { %15495 = vmatpush3.bf16.msra.mxu0 %v16539_v6  ;;  %14363 = vmatprep.mubr.msk.f32.mxu0 %vm16449_vm0, %v18315_v1 }
0x1591   :  { %15496 = vmatprep.subr.bf16.mxu0 %v18314_v34 }
0x1594   :  { %15498 = vmatpush3.bf16.msra.mxu0 %v16544_v13 }
0x1595   :  { %15505 = vmatprep.subr.bf16.mxu0 %v18314_v34 }
0x1597   :  { %14364 = vmatmul.mubr.msk.f32.vlgmr.msra.gmra.mrb[76].mxu0 %vm259_vm1, %v17801_v2 }
0x1598   :  { %15507 = vmatpush3.bf16.msra.mxu0 %v16552_v19  ;;  %14385 = vmatprep.mubr.msk.f32.mxu0 %vm16449_vm0, %v18315_v1 }
0x1599   :  { %15508 = vmatprep.subr.bf16.mxu0 %v18314_v34 }
0x159c   :  { %15510 = vmatpush3.bf16.msra.mxu0 %v16562_v25 }
0x159d   :  { %15517 = vmatprep.subr.bf16.mxu0 %v18314_v34 }
0x159f   :  { %14386 = vmatmul.mubr.msk.f32.vlgmr.msra.gmra.mrb[78].mxu0 %vm259_vm1, %v17801_v2 }
0x15a0   :  { %15519 = vmatpush3.bf16.msra.mxu0 %v16577_v32  ;;  %14407 = vmatprep.mubr.msk.f32.mxu0 %vm16449_vm0, %v18315_v1 }
0x15a1   :  { %15520 = vmatprep.subr.bf16.mxu0 %v18314_v34 }
0x15a4   :  { %15522 = vmatpush3.bf16.msra.mxu0 %v16587_v38 }
0x15a5   :  { %15529 = vmatprep.subr.bf16.mxu0 %v18314_v34 }
0x15a7   :  { %14408 = vmatmul.mubr.msk.f32.vlgmr.msra.gmra.mrb[80].mxu0 %vm259_vm1, %v17759_v24 }
0x15a8   :  { %15531 = vmatpush3.bf16.msra.mxu0 %v16599_v44  ;;  %14429 = vmatprep.mubr.msk.f32.mxu0 %vm16449_vm0, %v18315_v1 }
0x15a9   :  { %15532 = vmatprep.subr.bf16.mxu0 %v18314_v34 }
0x15ac   :  { %15534 = vmatpush3.bf16.msra.mxu0 %v16609_v50 }
0x15ad   :  { %15541 = vmatprep.subr.bf16.mxu0 %v18314_v34 }
0x15af   :  { %14430 = vmatmul.mubr.msk.f32.vlgmr.msra.gmra.mrb[82].mxu0 %vm259_vm1, %v17759_v24 }
0x15b0   :  { %15543 = vmatpush3.bf16.msra.mxu0 %v16630_v55  ;;  %14451 = vmatprep.mubr.msk.f32.mxu0 %vm16449_vm0, %v18315_v1 }
0x15b1   :  { %15544 = vmatprep.subr.bf16.mxu0 %v18314_v34 }
0x15b4   :  { %15546 = vmatpush3.bf16.msra.mxu0 %v16638_v61 }
0x15b5   :  { %15553 = vmatprep.subr.bf16.mxu0 %v18314_v34 }
0x1662   :  { %v8723_v11 = vpop.f32.mrb[74].mxu0 }
0x1663   :  { %v8724_v54 = vadd.f32 %v8723_v11, %v17670_v52  ;;  %v14343_v9 = vpop.f32.mrb[75].mxu0 }
0x1665   :  { %16222 = vtanh.f32 %v8724_v54 }
0x166f   :  { %v16223_v16 = vpop.eup %16222 }
0x1670   :  { %14353 = vmatmul.mubr.msk.f32.vlgmr.msra.gmra.mrb[74].mxu1 %vm259_vm1, %v16223_v16 }
0x1671   :  { %15501 = vmatpush3.bf16.msra.mxu1 %v16541_v10  ;;  %14374 = vmatprep.mubr.msk.f32.mxu1 %vm16449_vm0, %v18315_v1 }
0x1672   :  { %15502 = vmatprep.subr.bf16.mxu1 %v18314_v34 }
0x1675   :  { %15504 = vmatpush3.bf16.msra.mxu1 %v16548_v14 }
0x1676   :  { %15511 = vmatprep.subr.bf16.mxu1 %v18314_v34 }
0x1678   :  { %14375 = vmatmul.mubr.msk.f32.vlgmr.msra.gmra.mrb[76].mxu1 %vm259_vm1, %v17801_v2 }
0x1679   :  { %15513 = vmatpush3.bf16.msra.mxu1 %v16556_v20  ;;  %14396 = vmatprep.mubr.msk.f32.mxu1 %vm16449_vm0, %v18315_v1 }
0x167a   :  { %v9178_v41 = vpop.f32.mrb[80].mxu0  ;;  %15514 = vmatprep.subr.bf16.mxu1 %v18314_v34 }
0x167b   :  { %v14409_v3 = vpop.f32.mrb[81].mxu0 }
0x167d   :  { %15516 = vmatpush3.bf16.msra.mxu1 %v16568_v27 }
0x167e   :  { %15523 = vmatprep.subr.bf16.mxu1 %v18314_v34 }
0x1680   :  { %14397 = vmatmul.mubr.msk.f32.vlgmr.msra.gmra.mrb[78].mxu1 %vm259_vm1, %v17801_v2 }
0x1681   :  { %15525 = vmatpush3.bf16.msra.mxu1 %v16581_v33  ;;  %14418 = vmatprep.mubr.msk.f32.mxu1 %vm16449_vm0, %v18315_v1 }
0x1682   :  { %v9320_v15 = vpop.f32.mrb[82].mxu0  ;;  %15526 = vmatprep.subr.bf16.mxu1 %v18314_v34 }
0x1683   :  { %v14431_v22 = vpop.f32.mrb[83].mxu0 }
0x1685   :  { %15528 = vmatpush3.bf16.msra.mxu1 %v16591_v39 }
0x1686   :  { %15535 = vmatprep.subr.bf16.mxu1 %v18314_v34 }
0x1688   :  { %14419 = vmatmul.mubr.msk.f32.vlgmr.msra.gmra.mrb[80].mxu1 %vm259_vm1, %v17759_v24 }
0x1689   :  { %15537 = vmatpush3.bf16.msra.mxu1 %v16603_v45  ;;  %14440 = vmatprep.mubr.msk.f32.mxu1 %vm16449_vm0, %v18315_v1 }
0x168a   :  { %15538 = vmatprep.subr.bf16.mxu1 %v18314_v34 }
0x168d   :  { %15540 = vmatpush3.bf16.msra.mxu1 %v16613_v51 }
0x168e   :  { %15547 = vmatprep.subr.bf16.mxu1 %v18314_v34 }
0x1690   :  { %14441 = vmatmul.mubr.msk.f32.vlgmr.msra.gmra.mrb[82].mxu1 %vm259_vm1, %v17759_v24 }
0x1691   :  { %15549 = vmatpush3.bf16.msra.mxu1 %v16632_v57  ;;  %14462 = vmatprep.mubr.msk.f32.mxu1 %vm16449_vm0, %v18315_v1 }
0x1692   :  { %15550 = vmatprep.subr.bf16.mxu1 %v18314_v34 }
0x1695   :  { %15552 = vmatpush3.bf16.msra.mxu1 %v16640_v63 }
0x1696   :  { %15559 = vmatprep.subr.bf16.mxu1 %v18314_v34 }
0x1743   :  { %v8797_v31 = vpop.f32.mrb[74].mxu1 }
0x1744   :  { %v8798_v56 = vadd.f32 %v8797_v31, %v17721_v40  ;;  %v14354_v47 = vpop.f32.mrb[75].mxu1 }
0x1746   :  { %v8802_v7 = vsel %vm8801_vm5, %v8798_v56, -inf }
0x1747   :  { %8803 = vmax.xlane.f32.xlu1 %v8802_v7 }
0x175b   :  { %v9249_v24 = vpop.f32.mrb[80].mxu1 }
0x175c   :  { %v14420_v5 = vpop.f32.mrb[81].mxu1 }
0x1763   :  { %v9391_v48 = vpop.f32.mrb[82].mxu1 }
0x1764   :  { %v14442_v28 = vpop.f32.mrb[83].mxu1 }
0x1765   :  { %v18317_v28 = vld [vmem:[#allocation12_spill] sm:$0xff] }
0x17d4   :  { %v8804_v23 = vpop.xlane.xlu1 %8803 }
0x17d5   :  { %v8805_v4 = vsub.f32 %v8798_v56, %v8804_v23 }
0x17d7   :  { %v8806_v0 = vmul.f32 1.442695, %v8805_v4 }
0x17d9   :  { %16224 = vpow2.f32 %v8806_v0 }
0x17e3   :  { %v16225_v11 = vpop.eup %16224 }
0x17e4   :  { %v8813_v54 = vsel %vm8801_vm5, %v16225_v11, 0.0  ;;  %v8808_v9 = vmul.f32 %v16225_v11, %v17801_v2  ;;  %v18318_v2 = vld [vmem:[#allocation13_spill] sm:$0xff]  ;;  %v18319_v11 = vld [vmem:[#allocation15_spill] sm:$0xff] }
0x17e5   :  { %8814 = vadd.xlane.f32.xlu1 %v8813_v54 }
0x17e6   :  { %v8809_v16 = vmul.f32 %v8808_v9, %v17730_v35  ;;  %v18320_v9 = vld [vmem:[#allocation16_spill] sm:$0xff] }
0x17e8   :  { %v8810_v3 = vsel %vm8801_vm5, %v8809_v16, 0.0 }
0x17e9   :  { %8811 = vadd.xlane.f32.xlu1 %v8810_v3 }
0x1872   :  { %v8815_v22 = vpop.xlane.xlu1 %8814 }
0x1873   :  { %16226 = vrcp.f32 %v8815_v22 }
0x1876   :  { %v8812_v47 = vpop.xlane.xlu1 %8811 }
0x187d   :  { %v16227_v31 = vpop.eup %16226 }
0x187e   :  { %v8817_v7 = vmul.f32 %v16227_v31, %v8812_v47 }
0x1880   :  { %v17890_v56 = vadd.f32 %v8817_v7, %v17739_v58 }
0x1882   :  { %18316 = vst [vmem:[#allocation23_spill] sm:$0xff] %v17890_v56  ;;  %8821 = vperm.xlu1 %15925, %v17890_v56  }
0x1901   :  { %v8822_v5 = vpop.permute.xlu1 %8821 }
0x1902   :  { %v8824_v23 = vmul.f32 %v8822_v5, %v18317_v28  ;;  %v8826_v4 = vmul.f32 %v8822_v5, %v18318_v2  ;;  %v8830_v16 = vmul.f32 %v8822_v5, %v18320_v9  ;;  %v8828_v7 = vmul.f32 %v8822_v5, %v16681_v43 }
0x1903   :  { %v9416_v5 = vrot.slane %v17756_v21, 6 }
0x1904   :  { %v8825_v0 = vadd.f32 %v8824_v23, %v16663_v18  ;;  %v8827_v54 = vadd.f32 %v8826_v4, %v18319_v11  ;;  %v8831_v47 = vadd.f32 %v8830_v16, %v16687_v49  ;;  %v8829_v28 = vadd.f32 %v8828_v7, %v16692_v53 }
0x1906   :  { %v9182_v3 = vadd.f32 %v9178_v41, %v8825_v0  ;;  %v9253_v22 = vadd.f32 %v9249_v24, %v8827_v54  ;;  %v9395_v56 = vadd.f32 %v9391_v48, %v8831_v47  ;;  %v9324_v58 = vadd.f32 %v9320_v15, %v8829_v28 }
0x1908   :  { %v12299_v35 = vmul.f32 -1.442695, %v9182_v3  ;;  %v12300_v31 = vmul.f32 -1.442695, %v9253_v22  ;;  %v12301_v2 = vmul.f32 -1.442695, %v9395_v56 }
0x190a   :  { %16228 = vpow2.f32 %v12299_v35 }
0x190b   :  { %16230 = vpow2.f32 %v12300_v31 }
0x190c   :  { %16232 = vpow2.f32 %v12301_v2 }
0x190d   :  { %16234 = vtanh.f32 %v9324_v58 }
0x1914   :  { %v16229_v23 = vpop.eup %16228 }
0x1915   :  { %v16231_v18 = vpop.eup %16230  ;;  %v9399_v4 = vadd.f32 1.0, %v16229_v23 }
0x1916   :  { %v9405_v9 = vadd.f32 1.0, %v16231_v18  ;;  %v16233_v41 = vpop.eup %16232 }
0x1917   :  { %16236 = vrcp.f32 %v9399_v4  ;;  %v16235_v24 = vpop.eup %16234  ;;  %v9412_v54 = vadd.f32 1.0, %v16233_v41 }
0x1918   :  { %16238 = vrcp.f32 %v9405_v9 }
0x1919   :  { %16240 = vrcp.f32 %v9412_v54 }
0x1921   :  { %v16237_v0 = vpop.eup %16236 }
0x1922   :  { %v16239_v35 = vpop.eup %16238  ;;  %v9419_v48 = vmul.f32 %v16237_v0, %v16235_v24 }
0x1923   :  { %v9418_v16 = vmul.f32 %v16239_v35, %v9416_v5  ;;  %v16241_v15 = vpop.eup %16240 }
0x1925   :  { %v17902_v3 = vadd.f32 %v9419_v48, %v9418_v16 }
0x1927   :  { %16242 = vtanh.f32 %v17902_v3 }
0x1931   :  { %v16243_v56 = vpop.eup %16242 }
0x1932   :  { %v17905_v18 = vmul.f32 %v16243_v56, %v16241_v15 }
0x1934   :  { %14452 = vmatmul.mubr.msk.f32.vlgmr.msra.gmra.mrb[76].mxu0 %vm259_vm1, %v17905_v18  ;;  %14463 = vmatmul.mubr.msk.f32.vlgmr.msra.gmra.mrb[76].mxu1 %vm259_vm1, %v17905_v18 }
0x1935   :  { %15555 = vmatpush3.bf16.msra.mxu0 %v16699_v60  ;;  %15561 = vmatpush3.bf16.msra.mxu1 %v16701_v62 }
0x1936   :  { %15556 = vmatprep.subr.bf16.mxu0 %v18314_v34  ;;  %15562 = vmatprep.subr.bf16.mxu1 %v18314_v34 }
0x1937   :  { %14473 = vmatprep.mubr.msk.f32.mxu0 %vm16449_vm0, %v18315_v1  ;;  %14484 = vmatprep.mubr.msk.f32.mxu1 %vm16449_vm0, %v18315_v1 }
0x1939   :  { %15558 = vmatpush3.bf16.msra.mxu0 %v16711_v30  ;;  %15564 = vmatpush3.bf16.msra.mxu1 %v16713_v12 }
0x193a   :  { %15565 = vmatprep.subr.bf16.mxu0 %v18314_v34  ;;  %15571 = vmatprep.subr.bf16.mxu1 %v18314_v34 }
0x193c   :  { %14474 = vmatmul.mubr.msk.f32.vlgmr.msra.gmra.mrb[78].mxu0 %vm259_vm1, %v17905_v18  ;;  %14485 = vmatmul.mubr.msk.f32.vlgmr.msra.gmra.mrb[78].mxu1 %vm259_vm1, %v17905_v18 }
0x193d   :  { %15567 = vmatpush3.bf16.msra.mxu0 %v17592_v29  ;;  %14495 = vmatprep.mubr.msk.f32.mxu0 %vm16449_vm0, %v18315_v1 }
0x193e   :  { %15568 = vmatprep.subr.bf16.mxu0 %v18314_v34  ;;  %15573 = vmatpush3.bf16.msra.mxu1 %v17656_v46 }
0x193f   :  { %15574 = vmatprep.subr.bf16.mxu1 %v18314_v34  ;;  %14506 = vmatprep.mubr.msk.f32.mxu1 %vm16449_vm0, %v18315_v1 }
0x1941   :  { %15570 = vmatpush3.bf16.msra.mxu0 %v17596_v42 }
0x1942   :  { %15577 = vmatprep.subr.bf16.mxu0 %v18314_v34  ;;  %15576 = vmatpush3.bf16.msra.mxu1 %v17658_v17 }
0x1943   :  { %15583 = vmatprep.subr.bf16.mxu1 %v18314_v34 }
0x1a07   :  { %v9492_v58 = vpop.f32.mrb[76].mxu0  ;;  %v9563_v21 = vpop.f32.mrb[76].mxu1 }
0x1a08   :  { %v15781_v28 = vadd.f32 %v9492_v58, %v16744_v36  ;;  %v15782_v2 = vadd.f32 %v9563_v21, %v16748_v37  ;;  %v14453_v9 = vpop.f32.mrb[77].mxu0  ;;  %v14464_v22 = vpop.f32.mrb[77].mxu1 }
0x1a0a   :  { %v12306_v31 = vmul.f32 -1.442695, %v15781_v28  ;;  %v12307_v47 = vmul.f32 -1.442695, %v15782_v2 }
0x1a0c   :  { %16244 = vpow2.f32 %v12306_v31 }
0x1a0d   :  { %16246 = vpow2.f32 %v12307_v47 }
0x1a0f   :  { %v9634_v7 = vpop.f32.mrb[78].mxu0  ;;  %v9705_v23 = vpop.f32.mrb[78].mxu1 }
0x1a10   :  { %v15784_v4 = vadd.f32 %v9705_v23, %v16754_v59  ;;  %v14475_v41 = vpop.f32.mrb[79].mxu0  ;;  %v14486_v24 = vpop.f32.mrb[79].mxu1  ;;  %v15783_v5 = vadd.f32 %v9634_v7, %v16758_v8 }
0x1a12   :  { %v12308_v0 = vmul.f32 -1.442695, %v15784_v4 }
0x1a14   :  { %16248 = vpow2.f32 %v12308_v0 }
0x1a15   :  { %16250 = vtanh.f32 %v15783_v5 }
0x1a16   :  { %v16245_v35 = vpop.eup %16244 }
0x1a17   :  { %v16247_v54 = vpop.eup %16246  ;;  %v9713_v48 = vadd.f32 1.0, %v16245_v35 }
0x1a18   :  { %v9719_v16 = vadd.f32 1.0, %v16247_v54 }
0x1a19   :  { %16252 = vrcp.f32 %v9713_v48 }
0x1a1a   :  { %16254 = vrcp.f32 %v9719_v16 }
0x1a1e   :  { %v16249_v15 = vpop.eup %16248 }
0x1a1f   :  { %v16251_v56 = vpop.eup %16250  ;;  %v9726_v2 = vadd.f32 1.0, %v16249_v15 }
0x1a21   :  { %16256 = vrcp.f32 %v9726_v2 }
0x1a23   :  { %v16253_v58 = vpop.eup %16252 }
0x1a24   :  { %v16255_v21 = vpop.eup %16254  ;;  %v9730_v28 = vmul.f32 %v16253_v58, %v16251_v56 }
0x1a25   :  { %v9729_v9 = vmul.f32 %v16255_v21, %v17798_v26 }
0x1a27   :  { %v17944_v22 = vadd.f32 %v9730_v28, %v9729_v9 }
0x1a29   :  { %16258 = vtanh.f32 %v17944_v22 }
0x1a2b   :  { %v16257_v31 = vpop.eup %16256 }
0x1a33   :  { %v16259_v47 = vpop.eup %16258 }
0x1a34   :  { %v17947_v7 = vmul.f32 %v16259_v47, %v16257_v31 }
0x1a36   :  { %14496 = vmatmul.mubr.msk.f32.vlgmr.msra.gmra.mrb[84].mxu0 %vm259_vm1, %v17947_v7 }
0x1a37   :  { %15579 = vmatpush3.bf16.msra.mxu0 %v16539_v6  ;;  %14517 = vmatprep.mubr.msk.f32.mxu0 %vm16449_vm0, %v18315_v1 }
0x1a38   :  { %15580 = vmatprep.subr.bf16.mxu0 %v18314_v34 }
0x1a3b   :  { %15582 = vmatpush3.bf16.msra.mxu0 %v16544_v13 }
0x1a3c   :  { %15589 = vmatprep.subr.bf16.mxu0 %v18314_v34 }
0x1a3e   :  { %14518 = vmatmul.mubr.msk.f32.vlgmr.msra.gmra.mrb[86].mxu0 %vm259_vm1, %v17947_v7 }
0x1a3f   :  { %15591 = vmatpush3.bf16.msra.mxu0 %v16552_v19  ;;  %14539 = vmatprep.mubr.msk.f32.mxu0 %vm16449_vm0, %v18315_v1 }
0x1a40   :  { %15592 = vmatprep.subr.bf16.mxu0 %v18314_v34 }
0x1a43   :  { %15594 = vmatpush3.bf16.msra.mxu0 %v16562_v25 }
0x1a44   :  { %15601 = vmatprep.subr.bf16.mxu0 %v18314_v34 }
0x1a46   :  { %14540 = vmatmul.mubr.msk.f32.vlgmr.msra.gmra.mrb[88].mxu0 %vm259_vm1, %v17947_v7 }
0x1a47   :  { %15603 = vmatpush3.bf16.msra.mxu0 %v16577_v32  ;;  %14561 = vmatprep.mubr.msk.f32.mxu0 %vm16449_vm0, %v18315_v1 }
0x1a48   :  { %15604 = vmatprep.subr.bf16.mxu0 %v18314_v34 }
0x1a4b   :  { %15606 = vmatpush3.bf16.msra.mxu0 %v16587_v38 }
0x1a4c   :  { %15613 = vmatprep.subr.bf16.mxu0 %v18314_v34 }
0x1a4e   :  { %14562 = vmatmul.mubr.msk.f32.vlgmr.msra.gmra.mrb[90].mxu0 %vm259_vm1, %v17905_v18 }
0x1a4f   :  { %15615 = vmatpush3.bf16.msra.mxu0 %v16599_v44  ;;  %14583 = vmatprep.mubr.msk.f32.mxu0 %vm16449_vm0, %v18315_v1 }
0x1a50   :  { %15616 = vmatprep.subr.bf16.mxu0 %v18314_v34 }
0x1a53   :  { %15618 = vmatpush3.bf16.msra.mxu0 %v16609_v50 }
0x1a54   :  { %15625 = vmatprep.subr.bf16.mxu0 %v18314_v34 }
0x1a56   :  { %14584 = vmatmul.mubr.msk.f32.vlgmr.msra.gmra.mrb[92].mxu0 %vm259_vm1, %v17905_v18 }
0x1a57   :  { %15627 = vmatpush3.bf16.msra.mxu0 %v16630_v55  ;;  %14605 = vmatprep.mubr.msk.f32.mxu0 %vm16449_vm0, %v18315_v1 }
0x1a58   :  { %15628 = vmatprep.subr.bf16.mxu0 %v18314_v34 }
0x1a5b   :  { %15630 = vmatpush3.bf16.msra.mxu0 %v16638_v61 }
0x1a5c   :  { %15637 = vmatprep.subr.bf16.mxu0 %v18314_v34 }
0x1b09   :  { %v9803_v26 = vpop.f32.mrb[84].mxu0 }
0x1b0a   :  { %v9804_v23 = vadd.f32 %v9803_v26, %v17670_v52  ;;  %v14497_v4 = vpop.f32.mrb[85].mxu0 }
0x1b0c   :  { %16260 = vtanh.f32 %v9804_v23  ;;  %v18321_v23 = vld [vmem:[#allocation20_spill] sm:$0xff] }
0x1b16   :  { %v16261_v41 = vpop.eup %16260 }
0x1b17   :  { %14507 = vmatmul.mubr.msk.f32.vlgmr.msra.gmra.mrb[84].mxu1 %vm259_vm1, %v16261_v41 }
0x1b18   :  { %15585 = vmatpush3.bf16.msra.mxu1 %v16541_v10  ;;  %14528 = vmatprep.mubr.msk.f32.mxu1 %vm16449_vm0, %v18315_v1 }
0x1b19   :  { %15586 = vmatprep.subr.bf16.mxu1 %v18314_v34 }
0x1b1c   :  { %15588 = vmatpush3.bf16.msra.mxu1 %v16548_v14 }
0x1b1d   :  { %15595 = vmatprep.subr.bf16.mxu1 %v18314_v34 }
0x1b1f   :  { %14529 = vmatmul.mubr.msk.f32.vlgmr.msra.gmra.mrb[86].mxu1 %vm259_vm1, %v17947_v7 }
0x1b20   :  { %15597 = vmatpush3.bf16.msra.mxu1 %v16556_v20  ;;  %14550 = vmatprep.mubr.msk.f32.mxu1 %vm16449_vm0, %v18315_v1 }
0x1b21   :  { %v10257_v24 = vpop.f32.mrb[90].mxu0  ;;  %15598 = vmatprep.subr.bf16.mxu1 %v18314_v34 }
0x1b22   :  { %v14563_v0 = vpop.f32.mrb[91].mxu0 }
0x1b24   :  { %15600 = vmatpush3.bf16.msra.mxu1 %v16568_v27 }
0x1b25   :  { %15607 = vmatprep.subr.bf16.mxu1 %v18314_v34 }
0x1b27   :  { %14551 = vmatmul.mubr.msk.f32.vlgmr.msra.gmra.mrb[88].mxu1 %vm259_vm1, %v17947_v7 }
0x1b28   :  { %15609 = vmatpush3.bf16.msra.mxu1 %v16581_v33  ;;  %14572 = vmatprep.mubr.msk.f32.mxu1 %vm16449_vm0, %v18315_v1 }
0x1b29   :  { %v18010_v5 = vpop.f32.mrb[92].mxu0  ;;  %15610 = vmatprep.subr.bf16.mxu1 %v18314_v34 }
0x1b2a   :  { %v14585_v35 = vpop.f32.mrb[93].mxu0 }
0x1b2c   :  { %15612 = vmatpush3.bf16.msra.mxu1 %v16591_v39 }
0x1b2d   :  { %15619 = vmatprep.subr.bf16.mxu1 %v18314_v34 }
0x1b2f   :  { %14573 = vmatmul.mubr.msk.f32.vlgmr.msra.gmra.mrb[90].mxu1 %vm259_vm1, %v17905_v18 }
0x1b30   :  { %15621 = vmatpush3.bf16.msra.mxu1 %v16603_v45  ;;  %14594 = vmatprep.mubr.msk.f32.mxu1 %vm16449_vm0, %v18315_v1 }
0x1b31   :  { %15622 = vmatprep.subr.bf16.mxu1 %v18314_v34 }
0x1b34   :  { %15624 = vmatpush3.bf16.msra.mxu1 %v16613_v51 }
0x1b35   :  { %15631 = vmatprep.subr.bf16.mxu1 %v18314_v34 }
0x1b37   :  { %14595 = vmatmul.mubr.msk.f32.vlgmr.msra.gmra.mrb[92].mxu1 %vm259_vm1, %v17905_v18 }
0x1b38   :  { %15633 = vmatpush3.bf16.msra.mxu1 %v16632_v57  ;;  %14616 = vmatprep.mubr.msk.f32.mxu1 %vm16449_vm0, %v18315_v1 }
0x1b39   :  { %15634 = vmatprep.subr.bf16.mxu1 %v18314_v34 }
0x1b3c   :  { %15636 = vmatpush3.bf16.msra.mxu1 %v16640_v63 }
0x1b3d   :  { %15643 = vmatprep.subr.bf16.mxu1 %v18314_v34 }
0x1bea   :  { %v9877_v54 = vpop.f32.mrb[84].mxu1 }
0x1beb   :  { %v9878_v48 = vadd.f32 %v9877_v54, %v17721_v40  ;;  %v14508_v16 = vpop.f32.mrb[85].mxu1 }
0x1bed   :  { %v9881_v15 = vsel %vm8801_vm5, %v9878_v48, -inf }
0x1bee   :  { %9882 = vmax.xlane.f32.xlu1 %v9881_v15  ;;  %v18322_v15 = vld [vmem:[#allocation21_spill] sm:$0xff] }
0x1c02   :  { %v10328_v56 = vpop.f32.mrb[90].mxu1 }
0x1c03   :  { %v14574_v18 = vpop.f32.mrb[91].mxu1 }
0x1c04   :  { %v18324_v18 = vld [vmem:[#allocation19_spill] sm:$0xff] }
0x1c0a   :  { %v10470_v58 = vpop.f32.mrb[92].mxu1 }
0x1c0b   :  { %v14596_v21 = vpop.f32.mrb[93].mxu1 }
0x1c0c   :  { %v7674_v21 = vadd.f32 %v18324_v18, %v17721_v40 }
0x1c7b   :  { %v9883_v28 = vpop.xlane.xlu1 %9882 }
0x1c7c   :  { %v9884_v2 = vsub.f32 %v9878_v48, %v9883_v28 }
0x1c7e   :  { %v9885_v9 = vmul.f32 1.442695, %v9884_v2  ;;  %v18325_v2 = vld [vmem:[#allocation12_spill] sm:$0xff] }
0x1c80   :  { %16262 = vpow2.f32 %v9885_v9 }
0x1c8a   :  { %v16263_v31 = vpop.eup %16262 }
0x1c8b   :  { %v9892_v47 = vsel %vm8801_vm5, %v16263_v31, 0.0  ;;  %v9887_v26 = vmul.f32 %v16263_v31, %v17947_v7  ;;  %v7682_v7 = vsel %vm259_vm1, %v7674_v21, -inf  ;;  %v18326_v31 = vld [vmem:[#allocation13_spill] sm:$0xff] }
0x1c8c   :  { %9893 = vadd.xlane.f32.xlu0 %v9892_v47 }
0x1c8d   :  { %v9888_v4 = vmul.f32 %v9887_v26, %v18321_v23  ;;  %v18327_v26 = vld [vmem:[#allocation14_spill] sm:$0xff] }
0x1c8f   :  { %v9889_v41 = vsel %vm8801_vm5, %v9888_v4, 0.0 }
0x1c90   :  { %9890 = vadd.xlane.f32.xlu1 %v9889_v41 }
0x1d19   :  { %v9894_v0 = vpop.xlane.xlu0 %9893 }
0x1d1a   :  { %16264 = vrcp.f32 %v9894_v0  ;;  %v18328_v0 = vld [vmem:[#allocation16_spill] sm:$0xff] }
0x1d1d   :  { %v9891_v54 = vpop.xlane.xlu1 %9890 }
0x1d24   :  { %v16265_v35 = vpop.eup %16264 }
0x1d25   :  { %v9896_v16 = vmul.f32 %v16265_v35, %v9891_v54 }
0x1d27   :  { %v18038_v48 = vadd.f32 %v9896_v16, %v18322_v15 }
0x1d29   :  { %18323 = vst [vmem:[#allocation20_spill] sm:$0xff] %v18038_v48  ;;  %9900 = vperm.xlu1 %15925, %v18038_v48  }
0x1d4d   :  { %7683 = vmax.xlane.f32.xlu1 %v7682_v7 }
0x1da8   :  { %v9901_v28 = vpop.permute.xlu1 %9900 }
0x1da9   :  { %v9903_v9 = vmul.f32 %v9901_v28, %v18325_v2  ;;  %v9905_v47 = vmul.f32 %v9901_v28, %v18326_v31  ;;  %v9909_v35 = vmul.f32 %v9901_v28, %v18328_v0  ;;  %v9907_v40 = vmul.f32 %v9901_v28, %v16681_v43 }
0x1dab   :  { %v9904_v4 = vadd.f32 %v9903_v9, %v18327_v26  ;;  %v9906_v41 = vadd.f32 %v9905_v47, %v18319_v11  ;;  %v9910_v18 = vadd.f32 %v9909_v35, %v16687_v49  ;;  %v9908_v2 = vadd.f32 %v9907_v40, %v16692_v53 }
0x1dad   :  { %v10261_v54 = vadd.f32 %v10257_v24, %v9904_v4  ;;  %v10332_v16 = vadd.f32 %v10328_v56, %v9906_v41  ;;  %v10474_v7 = vadd.f32 %v10470_v58, %v9910_v18  ;;  %v10403_v9 = vadd.f32 %v18010_v5, %v9908_v2 }
0x1daf   :  { %v12319_v48 = vmul.f32 -1.442695, %v10261_v54  ;;  %v12320_v15 = vmul.f32 -1.442695, %v10332_v16  ;;  %v12321_v31 = vmul.f32 -1.442695, %v10474_v7 }
0x1db0   :  { %v18329_v54 = vld [vmem:[#allocation17_spill] sm:$0xff] }
0x1db1   :  { %16266 = vpow2.f32 %v12319_v48 }
0x1db2   :  { %16268 = vpow2.f32 %v12320_v15 }
0x1db3   :  { %16270 = vpow2.f32 %v12321_v31 }
0x1db4   :  { %16272 = vtanh.f32 %v10403_v9 }
0x1dbb   :  { %v16267_v26 = vpop.eup %16266 }
0x1dbc   :  { %v16269_v47 = vpop.eup %16268  ;;  %v10478_v11 = vadd.f32 1.0, %v16267_v26 }
0x1dbd   :  { %v10484_v24 = vadd.f32 1.0, %v16269_v47  ;;  %v16271_v56 = vpop.eup %16270 }
0x1dbe   :  { %16274 = vrcp.f32 %v10478_v11  ;;  %v16273_v4 = vpop.eup %16272  ;;  %v10491_v48 = vadd.f32 1.0, %v16271_v56 }
0x1dbf   :  { %16276 = vrcp.f32 %v10484_v24 }
0x1dc0   :  { %16278 = vrcp.f32 %v10491_v48 }
0x1dc8   :  { %v16275_v41 = vpop.eup %16274 }
0x1dc9   :  { %v16277_v28 = vpop.eup %16276  ;;  %v10495_v15 = vmul.f32 %v16275_v41, %v16273_v4 }
0x1dca   :  { %v10494_v58 = vmul.f32 %v16277_v28, %v17902_v3  ;;  %v16279_v5 = vpop.eup %16278 }
0x1dcc   :  { %v18054_v40 = vadd.f32 %v10495_v15, %v10494_v58 }
0x1dce   :  { %16280 = vtanh.f32 %v18054_v40 }
0x1dd8   :  { %v16281_v2 = vpop.eup %16280 }
0x1dd9   :  { %v18057_v31 = vmul.f32 %v16281_v2, %v16279_v5 }
0x1dda   :  { %v7684_v26 = vpop.xlane.xlu1 %7683 }
0x1ddb   :  { %14606 = vmatmul.mubr.msk.f32.vlgmr.msra.gmra.mrb[86].mxu0 %vm259_vm1, %v18057_v31  ;;  %14617 = vmatmul.mubr.msk.f32.vlgmr.msra.gmra.mrb[86].mxu1 %vm259_vm1, %v18057_v31  ;;  %v7688_v11 = vsub.f32 %v7674_v21, %v7684_v26 }
0x1ddc   :  { %15639 = vmatpush3.bf16.msra.mxu0 %v16699_v60  ;;  %15645 = vmatpush3.bf16.msra.mxu1 %v16701_v62 }
0x1ddd   :  { %v7690_v3 = vmul.f32 1.442695, %v7688_v11  ;;  %15640 = vmatprep.subr.bf16.mxu0 %v18314_v34  ;;  %15646 = vmatprep.subr.bf16.mxu1 %v18314_v34 }
0x1dde   :  { %14627 = vmatprep.mubr.msk.f32.mxu0 %vm16449_vm0, %v18315_v1  ;;  %14638 = vmatprep.mubr.msk.f32.mxu1 %vm16449_vm0, %v18315_v1 }
0x1ddf   :  { %16282 = vpow2.f32 %v7690_v3 }
0x1de0   :  { %15642 = vmatpush3.bf16.msra.mxu0 %v16711_v30  ;;  %15648 = vmatpush3.bf16.msra.mxu1 %v16713_v12 }
0x1de1   :  { %15649 = vmatprep.subr.bf16.mxu0 %v18314_v34  ;;  %15655 = vmatprep.subr.bf16.mxu1 %v18314_v34 }
0x1de3   :  { %14628 = vmatmul.mubr.msk.f32.vlgmr.msra.gmra.mrb[88].mxu0 %vm259_vm1, %v18057_v31  ;;  %14639 = vmatmul.mubr.msk.f32.vlgmr.msra.gmra.mrb[88].mxu1 %vm259_vm1, %v18057_v31 }
0x1de4   :  { %15651 = vmatpush3.bf16.msra.mxu0 %v17592_v29  ;;  %14649 = vmatprep.mubr.msk.f32.mxu0 %vm16449_vm0, %v18315_v1 }
0x1de5   :  { %15652 = vmatprep.subr.bf16.mxu0 %v18314_v34  ;;  %15657 = vmatpush3.bf16.msra.mxu1 %v17656_v46 }
0x1de6   :  { %15658 = vmatprep.subr.bf16.mxu1 %v18314_v34  ;;  %14660 = vmatprep.mubr.msk.f32.mxu1 %vm16449_vm0, %v18315_v1 }
0x1de8   :  { %15654 = vmatpush3.bf16.msra.mxu0 %v17596_v42 }
0x1de9   :  { %v16283_v21 = vpop.eup %16282  ;;  %15661 = vmatprep.subr.bf16.mxu0 %v18314_v34  ;;  %15660 = vmatpush3.bf16.msra.mxu1 %v17658_v17 }
0x1dea   :  { %v7708_v35 = vsel %vm259_vm1, %v16283_v21, 0.0  ;;  %v7694_v16 = vmul.f32 %v16283_v21, %v18329_v54  ;;  %15667 = vmatprep.subr.bf16.mxu1 %v18314_v34 }
0x1deb   :  { %7709 = vadd.xlane.f32.xlu1 %v7708_v35 }
0x1dec   :  { %v7700_v18 = vmul.f32 %v18321_v23, %v7694_v16 }
0x1dee   :  { %v7702_v7 = vsel %vm259_vm1, %v7700_v18, 0.0 }
0x1def   :  { %7703 = vadd.xlane.f32.xlu1 %v7702_v7 }
0x1eae   :  { %v10568_v9 = vpop.f32.mrb[86].mxu0  ;;  %v10639_v47 = vpop.f32.mrb[86].mxu1 }
0x1eaf   :  { %v15785_v24 = vadd.f32 %v10568_v9, %v16744_v36  ;;  %v15786_v56 = vadd.f32 %v10639_v47, %v16748_v37  ;;  %v14607_v4 = vpop.f32.mrb[87].mxu0  ;;  %v14618_v41 = vpop.f32.mrb[87].mxu1 }
0x1eb1   :  { %v12326_v28 = vmul.f32 -1.442695, %v15785_v24  ;;  %v12327_v48 = vmul.f32 -1.442695, %v15786_v56 }
0x1eb3   :  { %16284 = vpow2.f32 %v12326_v28 }
0x1eb4   :  { %16286 = vpow2.f32 %v12327_v48 }
0x1eb6   :  { %v10710_v15 = vpop.f32.mrb[88].mxu0  ;;  %v10781_v58 = vpop.f32.mrb[88].mxu1 }
0x1eb7   :  { %v15788_v5 = vadd.f32 %v10781_v58, %v16754_v59  ;;  %v14629_v2 = vpop.f32.mrb[89].mxu0  ;;  %v14640_v26 = vpop.f32.mrb[89].mxu1  ;;  %v15787_v3 = vadd.f32 %v10710_v15, %v16758_v8 }
0x1eb9   :  { %v12328_v11 = vmul.f32 -1.442695, %v15788_v5 }
0x1ebb   :  { %16288 = vpow2.f32 %v12328_v11 }
0x1ebc   :  { %16290 = vtanh.f32 %v15787_v3 }
0x1ebd   :  { %v16285_v21 = vpop.eup %16284 }
0x1ebe   :  { %v16287_v35 = vpop.eup %16286  ;;  %v10789_v54 = vadd.f32 1.0, %v16285_v21 }
0x1ebf   :  { %v10795_v16 = vadd.f32 1.0, %v16287_v35  ;;  %v18331_v35 = vld [vmem:[#allocation21_spill] sm:$0xff] }
0x1ec0   :  { %16292 = vrcp.f32 %v10789_v54 }
0x1ec1   :  { %16294 = vrcp.f32 %v10795_v16 }
0x1ec5   :  { %v16289_v18 = vpop.eup %16288 }
0x1ec6   :  { %v16291_v7 = vpop.eup %16290  ;;  %v10802_v56 = vadd.f32 1.0, %v16289_v18  ;;  %v18332_v18 = vld [vmem:[#allocation12_spill] sm:$0xff] }
0x1ec8   :  { %16296 = vrcp.f32 %v10802_v56 }
0x1eca   :  { %v16293_v9 = vpop.eup %16292 }
0x1ecb   :  { %v16295_v47 = vpop.eup %16294  ;;  %v10806_v24 = vmul.f32 %v16293_v9, %v16291_v7  ;;  %v18333_v9 = vld [vmem:[#allocation13_spill] sm:$0xff] }
0x1ecc   :  { %v10805_v4 = vmul.f32 %v16295_v47, %v17944_v22 }
0x1ece   :  { %v18100_v41 = vadd.f32 %v10806_v24, %v10805_v4  ;;  %v18334_v24 = vld [vmem:[#allocation14_spill] sm:$0xff]  ;;  %v18335_v4 = vld [vmem:[#allocation15_spill] sm:$0xff] }
0x1ed0   :  { %16298 = vtanh.f32 %v18100_v41 }
0x1ed2   :  { %v16297_v28 = vpop.eup %16296 }
0x1eda   :  { %v16299_v48 = vpop.eup %16298 }
0x1edb   :  { %v18103_v15 = vmul.f32 %v16299_v48, %v16297_v28 }
0x1edd   :  { %14650 = vmatmul.mubr.msk.f32.vlgmr.msra.gmra.mrb[94].mxu0 %vm259_vm1, %v18103_v15 }
0x1ede   :  { %15663 = vmatpush3.bf16.msra.mxu0 %v16539_v6  ;;  %14671 = vmatprep.mubr.msk.f32.mxu0 %vm16449_vm0, %v18315_v1 }
0x1edf   :  { %15664 = vmatprep.subr.bf16.mxu0 %v18314_v34 }
0x1ee2   :  { %15666 = vmatpush3.bf16.msra.mxu0 %v16544_v13 }
0x1ee3   :  { %15673 = vmatprep.subr.bf16.mxu0 %v18314_v34 }
0x1ee5   :  { %14672 = vmatmul.mubr.msk.f32.vlgmr.msra.gmra.mrb[96].mxu0 %vm259_vm1, %v18103_v15 }
0x1ee6   :  { %15675 = vmatpush3.bf16.msra.mxu0 %v16552_v19  ;;  %14693 = vmatprep.mubr.msk.f32.mxu0 %vm16449_vm0, %v18315_v1 }
0x1ee7   :  { %15676 = vmatprep.subr.bf16.mxu0 %v18314_v34 }
0x1eea   :  { %15678 = vmatpush3.bf16.msra.mxu0 %v16562_v25 }
0x1eeb   :  { %15685 = vmatprep.subr.bf16.mxu0 %v18314_v34 }
0x1eed   :  { %14694 = vmatmul.mubr.msk.f32.vlgmr.msra.gmra.mrb[98].mxu0 %vm259_vm1, %v18103_v15 }
0x1eee   :  { %15687 = vmatpush3.bf16.msra.mxu0 %v16577_v32  ;;  %14715 = vmatprep.mubr.msk.f32.mxu0 %vm16449_vm0, %v18315_v1 }
0x1eef   :  { %15688 = vmatprep.subr.bf16.mxu0 %v18314_v34 }
0x1ef2   :  { %15690 = vmatpush3.bf16.msra.mxu0 %v16587_v38 }
0x1ef3   :  { %15697 = vmatprep.subr.bf16.mxu0 %v18314_v34 }
0x1ef5   :  { %14716 = vmatmul.mubr.msk.f32.vlgmr.msra.gmra.mrb[100].mxu0 %vm259_vm1, %v18057_v31 }
0x1ef6   :  { %15699 = vmatpush3.bf16.msra.mxu0 %v16599_v44  ;;  %14737 = vmatprep.mubr.msk.f32.mxu0 %vm16449_vm0, %v18315_v1 }
0x1ef7   :  { %15700 = vmatprep.subr.bf16.mxu0 %v18314_v34 }
0x1efa   :  { %15702 = vmatpush3.bf16.msra.mxu0 %v16609_v50 }
0x1efb   :  { %15709 = vmatprep.subr.bf16.mxu0 %v18314_v34 }
0x1efd   :  { %14738 = vmatmul.mubr.msk.f32.vlgmr.msra.gmra.mrb[102].mxu0 %vm259_vm1, %v18057_v31 }
0x1efe   :  { %15711 = vmatpush3.bf16.msra.mxu0 %v16630_v55  ;;  %14759 = vmatprep.mubr.msk.f32.mxu0 %vm16449_vm0, %v18315_v1 }
0x1eff   :  { %15712 = vmatprep.subr.bf16.mxu0 %v18314_v34 }
0x1f02   :  { %15714 = vmatpush3.bf16.msra.mxu0 %v16638_v61 }
0x1f03   :  { %15721 = vmatprep.subr.bf16.mxu0 %v18314_v34 }
0x1fb0   :  { %v10879_v6 = vpop.f32.mrb[94].mxu0 }
0x1fb1   :  { %v10880_v13 = vadd.f32 %v10879_v6, %v17670_v52  ;;  %v14651_v19 = vpop.f32.mrb[95].mxu0 }
0x1fb3   :  { %16300 = vtanh.f32 %v10880_v13 }
0x1fbd   :  { %v16301_v25 = vpop.eup %16300 }
0x1fbe   :  { %14661 = vmatmul.mubr.msk.f32.vlgmr.msra.gmra.mrb[94].mxu1 %vm259_vm1, %v16301_v25 }
0x1fbf   :  { %15669 = vmatpush3.bf16.msra.mxu1 %v16541_v10  ;;  %14682 = vmatprep.mubr.msk.f32.mxu1 %vm16449_vm0, %v18315_v1 }
0x1fc0   :  { %15670 = vmatprep.subr.bf16.mxu1 %v18314_v34 }
0x1fc3   :  { %15672 = vmatpush3.bf16.msra.mxu1 %v16548_v14 }
0x1fc4   :  { %15679 = vmatprep.subr.bf16.mxu1 %v18314_v34 }
0x1fc6   :  { %14683 = vmatmul.mubr.msk.f32.vlgmr.msra.gmra.mrb[96].mxu1 %vm259_vm1, %v18103_v15 }
0x1fc7   :  { %15681 = vmatpush3.bf16.msra.mxu1 %v16556_v20  ;;  %14704 = vmatprep.mubr.msk.f32.mxu1 %vm16449_vm0, %v18315_v1 }
0x1fc8   :  { %v11333_v32 = vpop.f32.mrb[100].mxu0  ;;  %15682 = vmatprep.subr.bf16.mxu1 %v18314_v34 }
0x1fc9   :  { %v14717_v10 = vpop.f32.mrb[101].mxu0 }
0x1fcb   :  { %15684 = vmatpush3.bf16.msra.mxu1 %v16568_v27 }
0x1fcc   :  { %15691 = vmatprep.subr.bf16.mxu1 %v18314_v34 }
0x1fce   :  { %14705 = vmatmul.mubr.msk.f32.vlgmr.msra.gmra.mrb[98].mxu1 %vm259_vm1, %v18103_v15 }
0x1fcf   :  { %15693 = vmatpush3.bf16.msra.mxu1 %v16581_v33  ;;  %14726 = vmatprep.mubr.msk.f32.mxu1 %vm16449_vm0, %v18315_v1  ;;  %v18330_v33 = vld [vmem:[#allocation18_spill] sm:$0xff] }
0x1fd0   :  { %v11475_v14 = vpop.f32.mrb[102].mxu0  ;;  %15694 = vmatprep.subr.bf16.mxu1 %v18314_v34 }
0x1fd1   :  { %v14739_v20 = vpop.f32.mrb[103].mxu0 }
0x1fd3   :  { %15696 = vmatpush3.bf16.msra.mxu1 %v16591_v39 }
0x1fd4   :  { %15703 = vmatprep.subr.bf16.mxu1 %v18314_v34 }
0x1fd6   :  { %14727 = vmatmul.mubr.msk.f32.vlgmr.msra.gmra.mrb[100].mxu1 %vm259_vm1, %v18057_v31 }
0x1fd7   :  { %15705 = vmatpush3.bf16.msra.mxu1 %v16603_v45  ;;  %14748 = vmatprep.mubr.msk.f32.mxu1 %vm16449_vm0, %v18315_v1 }
0x1fd8   :  { %15706 = vmatprep.subr.bf16.mxu1 %v18314_v34 }
0x1fdb   :  { %15708 = vmatpush3.bf16.msra.mxu1 %v16613_v51 }
0x1fdc   :  { %15715 = vmatprep.subr.bf16.mxu1 %v18314_v34 }
0x1fde   :  { %14749 = vmatmul.mubr.msk.f32.vlgmr.msra.gmra.mrb[102].mxu1 %vm259_vm1, %v18057_v31 }
0x1fdf   :  { %15717 = vmatpush3.bf16.msra.mxu1 %v16632_v57  ;;  %14770 = vmatprep.mubr.msk.f32.mxu1 %vm16449_vm0, %v18315_v1 }
0x1fe0   :  { %15718 = vmatprep.subr.bf16.mxu1 %v18314_v34 }
0x1fe3   :  { %15720 = vmatpush3.bf16.msra.mxu1 %v16640_v63 }
0x1fe4   :  { %15727 = vmatprep.subr.bf16.mxu1 %v18314_v34 }
0x2091   :  { %v10953_v27 = vpop.f32.mrb[94].mxu1 }
0x2092   :  { %v10954_v38 = vadd.f32 %v10953_v27, %v18330_v33  ;;  %v14662_v39 = vpop.f32.mrb[95].mxu1 }
0x2094   :  { %v10957_v44 = vsel %vm8801_vm5, %v10954_v38, -inf }
0x2095   :  { %10958 = vmax.xlane.f32.xlu0 %v10957_v44 }
0x20a9   :  { %v11404_v45 = vpop.f32.mrb[100].mxu1 }
0x20aa   :  { %v14728_v50 = vpop.f32.mrb[101].mxu1 }
0x20b1   :  { %v11546_v51 = vpop.f32.mrb[102].mxu1 }
0x20b2   :  { %v14750_v55 = vpop.f32.mrb[103].mxu1 }
0x2122   :  { %v10959_v57 = vpop.xlane.xlu0 %10958 }
0x2123   :  { %v10960_v61 = vsub.f32 %v10954_v38, %v10959_v57 }
0x2125   :  { %v10961_v22 = vmul.f32 1.442695, %v10960_v61 }
0x2127   :  { %16302 = vpow2.f32 %v10961_v22 }
0x2131   :  { %v16303_v31 = vpop.eup %16302 }
0x2132   :  { %v10968_v63 = vsel %vm8801_vm5, %v16303_v31, 0.0  ;;  %v10963_v58 = vmul.f32 %v16303_v31, %v18103_v15 }
0x2133   :  { %10969 = vadd.xlane.f32.xlu0 %v10968_v63 }
0x2134   :  { %v10964_v5 = vmul.f32 %v10963_v58, %v18321_v23 }
0x2136   :  { %v10965_v2 = vsel %vm8801_vm5, %v10964_v5, 0.0 }
0x2137   :  { %10966 = vadd.xlane.f32.xlu0 %v10965_v2 }
0x21c0   :  { %v10970_v26 = vpop.xlane.xlu0 %10969 }
0x21c1   :  { %16304 = vrcp.f32 %v10970_v26 }
0x21c4   :  { %v10967_v3 = vpop.xlane.xlu0 %10966 }
0x21cb   :  { %v16305_v11 = vpop.eup %16304 }
0x21cc   :  { %v10972_v21 = vmul.f32 %v16305_v11, %v10967_v3 }
0x21ce   :  { %v18192_v54 = vadd.f32 %v10972_v21, %v18331_v35 }
0x21d0   :  { %10976 = vperm.xlu0 %15924, %v18192_v54  }
0x224f   :  { %v10977_v16 = vpop.permute.xlu0 %10976 }
0x2250   :  { %v10979_v7 = vmul.f32 %v10977_v16, %v18332_v18  ;;  %v10981_v47 = vmul.f32 %v10977_v16, %v18333_v9  ;;  %v10985_v48 = vmul.f32 %v10977_v16, %v18328_v0  ;;  %v10983_v10 = vmul.f32 %v10977_v16, %v16681_v43 }
0x2252   :  { %v10980_v56 = vadd.f32 %v10979_v7, %v18334_v24  ;;  %v10982_v28 = vadd.f32 %v10981_v47, %v18335_v4  ;;  %v10986_v25 = vadd.f32 %v10985_v48, %v16687_v49  ;;  %v10984_v27 = vadd.f32 %v10983_v10, %v16692_v53 }
0x2254   :  { %v11337_v15 = vadd.f32 %v11333_v32, %v10980_v56  ;;  %v11408_v6 = vadd.f32 %v11404_v45, %v10982_v28  ;;  %v11550_v20 = vadd.f32 %v11546_v51, %v10986_v25  ;;  %v11479_v39 = vadd.f32 %v11475_v14, %v10984_v27 }
0x2256   :  { %v12339_v13 = vmul.f32 -1.442695, %v11337_v15  ;;  %v12340_v19 = vmul.f32 -1.442695, %v11408_v6  ;;  %v12341_v38 = vmul.f32 -1.442695, %v11550_v20  ;;  %v7710_v6 = vpop.xlane.xlu1 %7709 }
0x2258   :  { %16306 = vpow2.f32 %v12339_v13 }
0x2259   :  { %16308 = vpow2.f32 %v12340_v19 }
0x225a   :  { %16310 = vpow2.f32 %v12341_v38  ;;  %v7704_v20 = vpop.xlane.xlu1 %7703 }
0x225b   :  { %16312 = vtanh.f32 %v11479_v39  ;;  %v18336_v39 = vld [vmem:[#allocation22_spill] sm:$0xff] }
0x2262   :  { %v16307_v44 = vpop.eup %16306 }
0x2263   :  { %v16309_v50 = vpop.eup %16308  ;;  %v11554_v55 = vadd.f32 1.0, %v16307_v44  ;;  %v12066_v44 = vrot.slane %v18336_v39, 2 }
0x2264   :  { %v11560_v0 = vadd.f32 1.0, %v16309_v50  ;;  %v16311_v32 = vpop.eup %16310  ;;  %v12074_v50 = vrot.slane %v18336_v39, 6 }
0x2265   :  { %16314 = vrcp.f32 %v11554_v55  ;;  %v16313_v45 = vpop.eup %16312  ;;  %v11567_v43 = vadd.f32 1.0, %v16311_v32 }
0x2266   :  { %16316 = vrcp.f32 %v11560_v0 }
0x2267   :  { %16318 = vrcp.f32 %v11567_v43 }
0x226f   :  { %v16315_v49 = vpop.eup %16314 }
0x2270   :  { %v16317_v57 = vpop.eup %16316  ;;  %v11571_v61 = vmul.f32 %v16315_v49, %v16313_v45 }
0x2271   :  { %v11570_v51 = vmul.f32 %v16317_v57, %v18054_v40  ;;  %v16319_v53 = vpop.eup %16318 }
0x2273   :  { %v11572_v22 = vadd.f32 %v11571_v61, %v11570_v51 }
0x2275   :  { %16320 = vtanh.f32 %v11572_v22 }
0x227f   :  { %v16321_v14 = vpop.eup %16320 }
0x2280   :  { %v11574_v31 = vmul.f32 %v16321_v14, %v16319_v53  ;;  %v12070_v53 = vrot.slane %v18336_v39, 4  ;;  %v18338_v14 = vld [vmem:[#allocation23_spill] sm:$0xff] }
0x2282   :  { %14760 = vmatmul.mubr.msk.f32.vlgmr.msra.gmra.mrb[96].mxu0 %vm259_vm1, %v11574_v31  ;;  %14771 = vmatmul.mubr.msk.f32.vlgmr.msra.gmra.mrb[96].mxu1 %vm259_vm1, %v11574_v31 }
0x2283   :  { %15723 = vmatpush3.bf16.msra.mxu0 %v16699_v60  ;;  %15729 = vmatpush3.bf16.msra.mxu1 %v16701_v62 }
0x2284   :  { %15724 = vmatprep.subr.bf16.mxu0 %v18314_v34  ;;  %15730 = vmatprep.subr.bf16.mxu1 %v18314_v34 }
0x2285   :  { %14781 = vmatprep.mubr.msk.f32.mxu0 %vm16449_vm0, %v18315_v1  ;;  %14792 = vmatprep.mubr.msk.f32.mxu1 %vm16449_vm0, %v18315_v1 }
0x2287   :  { %15726 = vmatpush3.bf16.msra.mxu0 %v16711_v30  ;;  %15732 = vmatpush3.bf16.msra.mxu1 %v16713_v12 }
0x2288   :  { %15733 = vmatprep.subr.bf16.mxu0 %v18314_v34  ;;  %15739 = vmatprep.subr.bf16.mxu1 %v18314_v34 }
0x228a   :  { %14782 = vmatmul.mubr.msk.f32.vlgmr.msra.gmra.mrb[98].mxu0 %vm259_vm1, %v11574_v31  ;;  %14793 = vmatmul.mubr.msk.f32.vlgmr.msra.gmra.mrb[98].mxu1 %vm259_vm1, %v11574_v31 }
0x228b   :  { %15735 = vmatpush3.bf16.msra.mxu0 %v17592_v29  ;;  %14803 = vmatprep.mubr.msk.f32.mxu0 %vm16449_vm0, %v18315_v1 }
0x228c   :  { %15736 = vmatprep.subr.bf16.mxu0 %v18314_v34  ;;  %15741 = vmatpush3.bf16.msra.mxu1 %v17656_v46 }
0x228d   :  { %15742 = vmatprep.subr.bf16.mxu1 %v18314_v34  ;;  %14814 = vmatprep.mubr.msk.f32.mxu1 %vm16449_vm0, %v18315_v1  ;;  %vm12111_vm0 = vcmask 89088  }
0x228f   :  { %15738 = vmatpush3.bf16.msra.mxu0 %v17596_v42 }
0x2290   :  { %15744 = vmatpush3.bf16.msra.mxu1 %v17658_v17 }
0x2355   :  { %v11644_v60 = vpop.f32.mrb[96].mxu0  ;;  %v11715_v62 = vpop.f32.mrb[96].mxu1 }
0x2356   :  { %v15789_v30 = vadd.f32 %v11644_v60, %v16744_v36  ;;  %v15790_v12 = vadd.f32 %v11715_v62, %v16748_v37  ;;  %v14761_v29 = vpop.f32.mrb[97].mxu0  ;;  %v14772_v40 = vpop.f32.mrb[97].mxu1 }
0x2358   :  { %v12346_v63 = vmul.f32 -1.442695, %v15789_v30  ;;  %v12347_v58 = vmul.f32 -1.442695, %v15790_v12 }
0x235a   :  { %16322 = vpow2.f32 %v12346_v63 }
0x235b   :  { %16324 = vpow2.f32 %v12347_v58 }
0x235d   :  { %v11786_v46 = vpop.f32.mrb[98].mxu0  ;;  %v11857_v34 = vpop.f32.mrb[98].mxu1 }
0x235e   :  { %v15792_v1 = vadd.f32 %v11857_v34, %v16754_v59  ;;  %v14783_v5 = vpop.f32.mrb[99].mxu0  ;;  %v14794_v42 = vpop.f32.mrb[99].mxu1  ;;  %v15791_v17 = vadd.f32 %v11786_v46, %v16758_v8 }
0x2360   :  { %v12348_v2 = vmul.f32 -1.442695, %v15792_v1 }
0x2362   :  { %16326 = vpow2.f32 %v12348_v2 }
0x2363   :  { %16328 = vtanh.f32 %v15791_v17 }
0x2364   :  { %v16323_v26 = vpop.eup %16322 }
0x2365   :  { %v16325_v11 = vpop.eup %16324  ;;  %v11865_v36 = vadd.f32 1.0, %v16323_v26 }
0x2366   :  { %v11871_v37 = vadd.f32 1.0, %v16325_v11 }
0x2367   :  { %16330 = vrcp.f32 %v11865_v36 }
0x2368   :  { %16332 = vrcp.f32 %v11871_v37 }
0x236c   :  { %v16327_v3 = vpop.eup %16326 }
0x236d   :  { %v16329_v21 = vpop.eup %16328  ;;  %v11878_v9 = vadd.f32 1.0, %v16327_v3 }
0x236f   :  { %16334 = vrcp.f32 %v11878_v9 }
0x2371   :  { %v16331_v16 = vpop.eup %16330 }
0x2372   :  { %v16333_v18 = vpop.eup %16332  ;;  %v11882_v7 = vmul.f32 %v16331_v16, %v16329_v21 }
0x2373   :  { %v11881_v59 = vmul.f32 %v16333_v18, %v18100_v41 }
0x2375   :  { %v11883_v47 = vadd.f32 %v11882_v7, %v11881_v59 }
0x2377   :  { %16336 = vtanh.f32 %v11883_v47 }
0x2379   :  { %v16335_v8 = vpop.eup %16334 }
0x2381   :  { %v16337_v24 = vpop.eup %16336 }
0x2382   :  { %v11885_v56 = vmul.f32 %v16337_v24, %v16335_v8 }
0x2384   :  { %14804 = vmatmul.mubr.msk.f32.vlgmr.msra.gmra.mrb[104].mxu0 %vm259_vm1, %v11885_v56 }
0x2457   :  { %v11955_v4 = vpop.f32.mrb[104].mxu0 }
0x2458   :  { %v11956_v28 = vadd.f32 %v11955_v4, %v17670_v52  ;;  %v14805_v48 = vpop.f32.mrb[105].mxu0 }
0x245a   :  { %16338 = vtanh.f32 %v11956_v28 }
0x245b   :  { %16340 = vrcp.f32 %v7710_v6 }
0x2464   :  { %v16339_v15 = vpop.eup %16338 }
0x2465   :  { %14815 = vmatmul.mubr.msk.f32.vlgmr.msra.gmra.mrb[104].mxu1 %vm259_vm1, %v16339_v15  ;;  %v16341_v10 = vpop.eup %16340  ;;  %vm12113_vm1 = vcmask 91136  }
0x2466   :  { %v7716_v27 = vmul.f32 %v16341_v10, %v7704_v20 }
0x2468   :  { %v7722_v38 = vadd.f32 %v18331_v35, %v7716_v27 }
0x246a   :  { %v12055_v52 = vrot.slane %v7722_v38, 4  ;;  %v12051_v51 = vrot.slane %v7722_v38, 2  ;;  %v12059_v22 = vrot.slane %v7722_v38, 6 }
0x2538   :  { %v12029_v13 = vpop.f32.mrb[104].mxu1 }
0x2539   :  { %v12030_v41 = vadd.f32 %v12029_v13, %v18330_v33  ;;  %v14816_v19 = vpop.f32.mrb[105].mxu1  ;;  %v18337_v33 = vld [vmem:[#allocation20_spill] sm:$0xff] }
0x253b   :  { %v12033_v25 = vsel %vm8801_vm5, %v12030_v41, -inf }
0x253c   :  { %12034 = vmax.xlane.f32.xlu0 %v12033_v25 }
0x2552   :  { %12056 = vrot.lane.b32.xlu0 %v12055_v52, %s16459_s2 }
0x2556   :  { %12067 = vrot.lane.b32.xlu0 %v12066_v44, %s16460_s21 }
0x255a   :  { %12075 = vrot.lane.b32.xlu0 %v12074_v50, %s16461_s22 }
0x255e   :  { %12081 = vrot.lane.b32.xlu0 %v18337_v33, %s16462_s24 }
0x25c9   :  { %v12035_v55 = vpop.xlane.xlu0 %12034 }
0x25ca   :  { %v12036_v0 = vsub.f32 %v12030_v41, %v12035_v55 }
0x25cc   :  { %v12037_v32 = vmul.f32 1.442695, %v12036_v0 }
0x25cd   :  { %v12057_v40 = vpop.permute.xlu0 %12056 }
0x25ce   :  { %16342 = vpow2.f32 %v12037_v32 }
0x25d1   :  { %v12068_v46 = vpop.permute.xlu0 %12067 }
0x25d5   :  { %v12076_v42 = vpop.permute.xlu0 %12075 }
0x25d8   :  { %v16343_v45 = vpop.eup %16342 }
0x25d9   :  { %v12044_v49 = vsel %vm8801_vm5, %v16343_v45, 0.0  ;;  %v12039_v57 = vmul.f32 %v16343_v45, %v11885_v56  ;;  %v12082_v11 = vpop.permute.xlu0 %12081 }
0x25da   :  { %12045 = vadd.xlane.f32.xlu1 %v12044_v49 }
0x25db   :  { %v12040_v43 = vmul.f32 %v12039_v57, %v18321_v23 }
0x25dd   :  { %v12041_v61 = vsel %vm8801_vm5, %v12040_v43, 0.0 }
0x25de   :  { %12042 = vadd.xlane.f32.xlu1 %v12041_v61 }
0x25ef   :  { %12052 = vrot.lane.b32.xlu1 %v12051_v51, %s16463_s25 }
0x25f3   :  { %12060 = vrot.lane.b32.xlu1 %v12059_v22, %s16464_s26 }
0x25f7   :  { %12063 = vrot.lane.b32.xlu1 %v18336_v39, %s16465_s27 }
0x25fb   :  { %12071 = vrot.lane.b32.xlu1 %v12070_v53, %s16466_s28 }
0x25ff   :  { %12078 = vrot.lane.b32.xlu1 %v18338_v14, %s16445_s23  ;;  %s16469_s23 = smov [#allocation8]  }
0x2600   :  { %s12121_s4 = sshll.u32 %s16469_s23, 4  ;;  %s12122_s4 = int_to_ptr.vmem [resolvable:$true] %s12121_s4 }
0x2601   :  { %s16415_s5 = scalar_lea.vmem %s12122_s4, 32  ;;  %p16420_p11 = scmp.lt.s32.totalorder %s12122_s4, %s12122_s4 }
0x2602   :  { %p16416_p10 = scmp.ne.s32.totalorder %s12122_s4, %s16415_s5  ;;  %p16421_p12 = scmp.lt.s32.totalorder %s16415_s5, %s16415_s5 }
0x2603   :  { %12084 = vrot.lane.b32.xlu1 %v18192_v54, %s16467_s29 }
0x2604   :  { %p16422_p13 = por %p16421_p12, %p16420_p11 }
0x2606   :  { %p16423_p0 = pnand %p16422_p13, %p16416_p10 }
0x2667   :  { %v12046_v23 = vpop.xlane.xlu1 %12045 }
0x2668   :  { %16344 = vrcp.f32 %v12046_v23 }
0x266b   :  { %v12043_v60 = vpop.xlane.xlu1 %12042 }
0x266f   :  { %v12053_v12 = vpop.permute.xlu1 %12052 }
0x2670   :  { %v12092_v58 = vsel %vm12091_vm6, %v7722_v38, %v12053_v12 }
0x2671   :  { %v12094_v34 = vsel %vm12093_vm7, %v12092_v58, %v12057_v40 }
0x2672   :  { %v16345_v31 = vpop.eup %16344 }
0x2673   :  { %v12048_v62 = vmul.f32 %v16345_v31, %v12043_v60  ;;  %v12061_v29 = vpop.permute.xlu1 %12060 }
0x2674   :  { %v12096_v1 = vsel %vm12095_vm8, %v12094_v34, %v12061_v29 }
0x2675   :  { %v12049_v30 = vadd.f32 %v12048_v62, %v18331_v35 }
0x2677   :  { %12088 = vrot.lane.b32.xlu0 %v12049_v30, %s16468_s30  ;;  %v12064_v63 = vpop.permute.xlu1 %12063 }
0x2678   :  { %v12098_v5 = vsel %vm12097_vm9, %v12096_v1, %v12064_v63 }
0x2679   :  { %v12100_v35 = vsel %vm12099_vm10, %v12098_v5, %v12068_v46 }
0x267b   :  { %v12072_v54 = vpop.permute.xlu1 %12071 }
0x267c   :  { %v12102_v17 = vsel %vm12101_vm11, %v12100_v35, %v12072_v54 }
0x267d   :  { %v12104_v26 = vsel %vm12103_vm12, %v12102_v17, %v12076_v42 }
0x267f   :  { %v12079_v2 = vpop.permute.xlu1 %12078 }
0x2680   :  { %v12106_v36 = vsel %vm12105_vm13, %v12104_v26, %v12079_v2 }
0x2681   :  { %v12108_v3 = vsel %vm12107_vm14, %v12106_v36, %v12082_v11 }
0x2683   :  { %v12085_v37 = vpop.permute.xlu1 %12084 }
0x2684   :  { %v12110_v21 = vsel %vm12109_vm15, %v12108_v3, %v12085_v37 }
0x26e9   :  { %v12089_v16 = vpop.permute.xlu0 %12088 }
0x26ea   :  { %v12112_v18 = vsel %vm12111_vm0, %v12110_v21, %v12089_v16 }
0x26eb   :  { %12114 = vst.msk [vmem:[#allocation8] sm:$0x3] %vm12113_vm1, %v12112_v18 }
0x26ec   :  { %16426 = shalt.err (!%p16423_p0)
}
0x26ed   :  { %s16427_s8 = scalar_lea.hbm %s18268_s3, 32 }
0x26ee   :  { %p16428_p1 = scmp.ne.s32.totalorder %s18268_s3, %s16427_s8  ;;  %p16431_p2 = scmp.lt.u32.totalorder %s16427_s8, %s18268_s3 }
0x26f0   :  { %p16433_p3 = pnand %p16431_p2, %p16428_p1 }
0x26f2   :  { %16436 = shalt.err (!%p16433_p3)
}
0x26f3   :  { %12124 = dma.vmem_to_hbm [thread:$0]  %s12122_s4, 32, %s18268_s3, [#allocation4]  }
0x26f4   :  { %16441 = dma.done.wait [#allocation4], 32  }
0x26f5   :  { %16442 = vsyncadd [#allocation4], 4294967264 }
0x26f6   :  { %12128 = vsyncpa [#allocation3], 1 }
0x26f7   :  { %12129 = vsyncpa [#allocation6], 1 }
0x26f8   :  { %12130 = vsyncpa [#allocation4], 1 }

</bundles_post_ra>
